<compile_context>
chip_gen: v5e
topology: v5e:2x2
jax: 0.10.0
libtpu: 0.0.40
codegen_flags: <defaults>
</compile_context>

<pallas_src>
import jax
import jax.numpy as jnp
from jax.experimental import pallas as pl
from jax.experimental.pallas import tpu as pltpu

EPS = 1e-5  # nn.InstanceNorm2d default


# ----------------------------- VMEM budgeting --------------------------------
def _step_bytes(bt, H, W, C):
    """Rough peak per-grid-step VMEM footprint estimate (bytes)."""
    f32, bf16 = 4, 2
    img = bt * H * W * C
    pad = bt * (H + 2) * (W + 2) * C
    return (
        2 * 2 * img * f32             # x block + out block, double-buffered
        + 2 * 2 * 9 * C * C * bf16    # w1 + w2, double-buffered
        + img * bf16                  # bf16 cast of conv input
        + pad * bf16                  # reflection-padded image (bf16)
        + 3 * img * bf16              # per-dy patch matrix (bf16)
        + 2 * img * f32               # conv accumulator + centered diff (f32)
        + 2 * img * f32               # normalized result / y1 (f32)
        + img * bf16                  # y1 bf16 re-cast for second conv
    )


def _vmem_cap_bytes():
    """~85% of this generation's physical VMEM; conservative fallback."""
    try:
        cap = int(pltpu.get_tpu_info().vmem_capacity_bytes)
        return int(0.85 * cap)
    except Exception:
        return 48 * 2**20  # safe on every generation (v7x has 64 MiB)


def _choose_bt(B, H, W, C, cap_bytes):
    """Largest divisor of B that fits the VMEM budget; stop once M >= 256."""
    budget = int(0.75 * cap_bytes)
    bt = 1
    for cand in range(1, B + 1):
        if B % cand:
            continue
        if _step_bytes(cand, H, W, C) <= budget:
            bt = cand
            if cand * H * W >= 256:   # enough MXU rows; no need to grow more
                break
        else:
            break                     # footprint is monotone in cand
    return bt


# ------------------------------- fused kernel --------------------------------
def _make_resblock_call(B, H, W, C, dtype):
    """Build the fused ResBlock pallas_call (both convs + residual, one kernel)."""
    cap = _vmem_cap_bytes()
    Bt = _choose_bt(B, H, W, C, cap)
    vmem_limit = int(min(cap, max(32 * 2**20, 1.3 * _step_bytes(Bt, H, W, C))))

    def kernel(x_ref, w1_ref, w2_ref, aff_ref, o_ref):
        x = x_ref[...]                 # (Bt, H, W, C) f32 — also the residual
        aff = aff_ref[...]             # (4, C): [scale1, shift1, scale2, shift2]
        inv_n = 1.0 / float(H * W)

        def conv_in_affine(src_bf16, w_ref, scale, shift, relu):
            """3x3 reflect-pad conv + instance norm + fused affine (+ReLU).

            src_bf16: (Bt, H, W, C) bf16.  Returns (Bt, H*W, C) f32.
            """
            # Reflection pad (padding=1), per image, entirely in bf16.
            xr = jnp.concatenate(
                [src_bf16[:, 1:2], src_bf16, src_bf16[:, H - 2:H - 1]], axis=1)
            xp = jnp.concatenate(
                [xr[:, :, 1:2], xr, xr[:, :, W - 2:W - 1]], axis=2)
            # Per-dy grouped matmuls: 3 accumulating (Bt*H*W, 3C) x (3C, C)
            # matmuls with f32 accumulation instead of one K=9C im2col matmul
            # (shrinks the patch temporary to 3x image in bf16).
            acc = jnp.zeros((Bt * H * W, C), jnp.float32)
            for dy in range(3):
                patch = jnp.concatenate(
                    [xp[:, dy:dy + H, dx:dx + W, :].reshape(Bt * H * W, C)
                     for dx in range(3)],
                    axis=-1)                                    # (M, 3C) bf16
                acc = acc + jnp.dot(
                    patch, w_ref[dy * 3 * C:(dy + 1) * 3 * C, :],
                    preferred_element_type=jnp.float32)         # (M, C) f32
            acc = acc.reshape(Bt, H * W, C)
            # Two-pass instance-norm statistics (per image, biased variance).
            mean = jnp.sum(acc, axis=1, keepdims=True) * inv_n  # (Bt, 1, C)
            diff = acc - mean
            var = jnp.sum(diff * diff, axis=1, keepdims=True) * inv_n
            # Fused normalize + affine: y = diff * (rsqrt*scale) + shift.
            # (conv bias is cancelled exactly by the mean subtraction above)
            s = jax.lax.rsqrt(var + EPS) * scale[None, None, :]
            y = diff * s + shift[None, None, :]
            if relu:
                y = jnp.maximum(y, 0.0)
            return y

        # Conv1 (+ReLU): intermediate stays in VMEM temporaries (no scratch).
        y1 = conv_in_affine(x.astype(jnp.bfloat16), w1_ref, aff[0], aff[1],
                            relu=True)
        # Conv2 (no ReLU) + fused residual add.
        y2 = conv_in_affine(y1.reshape(Bt, H, W, C).astype(jnp.bfloat16),
                            w2_ref, aff[2], aff[3], relu=False)
        o_ref[...] = (y2.reshape(Bt, H, W, C) + x).astype(o_ref.dtype)

    in_specs = [
        # unpadded input images (also the residual), Bt per grid step
        pl.BlockSpec((Bt, H, W, C), lambda b: (b, 0, 0, 0)),
        # conv weights, pre-reshaped to (9*Cin, Cout) bf16, constant index_map
        pl.BlockSpec((9 * C, C), lambda b: (0, 0)),
        pl.BlockSpec((9 * C, C), lambda b: (0, 0)),
        # packed per-channel affine: [scale1, shift1, scale2, shift2]
        pl.BlockSpec((4, C), lambda b: (0, 0)),
    ]

    return pl.pallas_call(
        kernel,
        out_shape=jax.ShapeDtypeStruct((B, H, W, C), dtype),
        grid_spec=pltpu.PrefetchScalarGridSpec(
            num_scalar_prefetch=0,
            grid=(B // Bt,),
            in_specs=in_specs,
            out_specs=pl.BlockSpec((Bt, H, W, C), lambda b: (b, 0, 0, 0)),
        ),
        compiler_params=pltpu.CompilerParams(
            dimension_semantics=("parallel",),
            vmem_limit_bytes=vmem_limit,
        ),
    )


# ------------------------------- JAX wrappers ---------------------------------
def _mix_style(gamma, beta, style_no, style_no2, alpha):
    """Conditional gamma/beta interpolation (matches the PyTorch branch)."""
    if alpha is not None and style_no2 is not None:
        g = alpha * gamma[style_no] + (1.0 - alpha) * gamma[style_no2]
        bt = alpha * beta[style_no] + (1.0 - alpha) * beta[style_no2]
    else:
        g = gamma[style_no]
        bt = beta[style_no]
    return g, bt


def resblock_forward_nhwc(params, x_nhwc, style_no, style_no2=None, alpha=None):
    """Fused ResBlock forward, NHWC in / NHWC out (preferred layout)."""
    B, H, W, C = x_nhwc.shape

    g1, bt1 = _mix_style(params["gamma1"], params["beta1"], style_no, style_no2, alpha)
    g2, bt2 = _mix_style(params["gamma2"], params["beta2"], style_no, style_no2, alpha)

    # Fold instance-norm affine (inw, inb) with (g, bt):
    #   (x_norm*inw + inb)*g + bt == x_norm*(inw*g) + (inb*g + bt)
    aff = jnp.stack(
        [params["inw1"] * g1, params["inb1"] * g1 + bt1,
         params["inw2"] * g2, params["inb2"] * g2 + bt2],
        axis=0,
    ).astype(jnp.float32)                                     # (4, C)

    # (3, 3, Cin, Cout) -> (9*Cin, Cout), bf16 operands for the MXU.
    # Conv bias is intentionally NOT passed: instance norm cancels it exactly.
    w1 = params["w1"].reshape(9 * C, C).astype(jnp.bfloat16)
    w2 = params["w2"].reshape(9 * C, C).astype(jnp.bfloat16)

    call = _make_resblock_call(B, H, W, C, x_nhwc.dtype)
    return call(x_nhwc, w1, w2, aff)


def resblock_forward(params, x_nchw, style_no, style_no2=None, alpha=None):
    """NCHW convenience wrapper (demo boundary only; keep NHWC inside a model)."""
    x = jnp.transpose(x_nchw, (0, 2, 3, 1))
    out = resblock_forward_nhwc(params, x, style_no, style_no2, alpha)
    return jnp.transpose(out, (0, 3, 1, 2))


# ---------------- pure-JAX f32 reference (for correctness check) ----------------
def _ref_cond_conv(x_nchw, w_oihw, b, in_w, in_b, gamma, beta, s1, s2, alpha, act):
    x_pad = jnp.pad(x_nchw, ((0, 0), (0, 0), (1, 1), (1, 1)), mode="reflect")
    y = jax.lax.conv_general_dilated(
        x_pad, w_oihw, (1, 1), "VALID",
        dimension_numbers=("NCHW", "OIHW", "NCHW")) + b[None, :, None, None]
    mean = y.mean(axis=(2, 3), keepdims=True)
    var = ((y - mean) ** 2).mean(axis=(2, 3), keepdims=True)
    y = (y - mean) / jnp.sqrt(var + EPS)
    y = y * in_w[None, :, None, None] + in_b[None, :, None, None]
    g, bt = _mix_style(gamma, beta, s1, s2, alpha)
    y = y * g[None, :, None, None] + bt[None, :, None, None]
    if act:
        y = jnp.maximum(y, 0.0)
    return y


def _ref_resblock(params, x_nchw, s1, s2, alpha):
    w1 = jnp.transpose(params["w1"], (3, 2, 0, 1))  # HWIO -> OIHW
    w2 = jnp.transpose(params["w2"], (3, 2, 0, 1))
    out = _ref_cond_conv(x_nchw, w1, params["b1"], params["inw1"], params["inb1"],
                         params["gamma1"], params["beta1"], s1, s2, alpha, True)
    out = _ref_cond_conv(out, w2, params["b2"], params["inw2"], params["inb2"],
                         params["gamma2"], params["beta2"], s1, s2, alpha, False)
    return out + x_nchw


# ---------------- deterministic parameter init (matches module __init__) ----------------
def init_params(key, num_styles=4, channels=128):
    ks = jax.random.split(key, 4)
    k_bound = 1.0 / jnp.sqrt(channels * 9.0)  # PyTorch Conv2d default bias bound

    def conv_init(kw, kb):
        # nn.init.normal_(weight, mean=0, std=0.01); OIHW -> HWIO for the kernel
        w_oihw = 0.01 * jax.random.normal(kw, (channels, channels, 3, 3), jnp.float32)
        w_hwio = jnp.transpose(w_oihw, (2, 3, 1, 0))
        b = jax.random.uniform(kb, (channels,), jnp.float32, -k_bound, k_bound)
        return w_hwio, b

    w1, b1 = conv_init(ks[0], ks[1])
    w2, b2 = conv_init(ks[2], ks[3])
    return {
        "w1": w1, "b1": b1,
        "inw1": jnp.ones((channels,), jnp.float32),   # InstanceNorm weight = 1
        "inb1": jnp.zeros((channels,), jnp.float32),  # InstanceNorm bias = 0
        "gamma1": jnp.ones((num_styles, channels), jnp.float32),   # uniform_(1,1)
        "beta1": jnp.zeros((num_styles, channels), jnp.float32),   # uniform_(0,0)
        "w2": w2, "b2": b2,
        "inw2": jnp.ones((channels,), jnp.float32),
        "inb2": jnp.zeros((channels,), jnp.float32),
        "gamma2": jnp.ones((num_styles, channels), jnp.float32),
        "beta2": jnp.zeros((num_styles, channels), jnp.float32),
    }


if __name__ == "__main__":
    key = jax.random.PRNGKey(0)
    k_params, k_x = jax.random.split(key)

    B, C, H, W = 2, 128, 8, 8          # ResBlock hard-codes 128 channels
    num_styles = 4
    style_no, style_no2, alpha = 1, 3, 0.3

    params = init_params(k_params, num_styles=num_styles, channels=C)
    x = jax.random.normal(k_x, (B, C, H, W), jnp.float32)  # NCHW, like PyTorch

    out = resblock_forward(params, x, style_no, style_no2, alpha)
    out = jax.block_until_ready(out)

    ref = jax.block_until_ready(_ref_resblock(params, x, style_no, style_no2, alpha))
    assert out.shape == (B, C, H, W)
    # Tolerance accounts for bf16 MXU operands (f32 accumulation) vs f32 reference.
    err = jnp.max(jnp.abs(out - ref))
    assert err < 5e-2, f"max diff {err}"

    print("KERNEL_OK")
</pallas_src>

<mosaic_0001>
module attributes {stable_mosaic.version = 11 : i64} {
  func.func @kernel(%arg0: i32, %arg1: memref<2x8x8x128xf32, #tpu.memory_space<vmem>>, %arg2: memref<1152x128xbf16, #tpu.memory_space<vmem>>, %arg3: memref<1152x128xbf16, #tpu.memory_space<vmem>>, %arg4: memref<4x128xf32, #tpu.memory_space<vmem>>, %arg5: memref<2x8x8x128xf32, #tpu.memory_space<vmem>>) attributes {dimension_semantics = [#tpu.dimension_semantics<parallel>], iteration_bounds = array<i64: 1>, scalar_prefetch = 0 : i64, scratch_operands = 0 : i64, tpu.core_type = #tpu.core_type<tc>, window_params = [{transform_indices = @transform_0, window_bounds = array<i64: 2, 8, 8, 128>}, {pipeline_mode = #tpu.pipeline_mode<synchronous>, transform_indices = @transform_1, window_bounds = array<i64: 1152, 128>}, {pipeline_mode = #tpu.pipeline_mode<synchronous>, transform_indices = @transform_2, window_bounds = array<i64: 1152, 128>}, {pipeline_mode = #tpu.pipeline_mode<synchronous>, transform_indices = @transform_3, window_bounds = array<i64: 4, 128>}, {transform_indices = @transform_4, window_bounds = array<i64: 2, 8, 8, 128>}]} {
    %c0 = arith.constant 0 : index
    %c0_0 = arith.constant 0 : index
    %c0_1 = arith.constant 0 : index
    %c0_2 = arith.constant 0 : index
    %0 = vector.load %arg1[%c0, %c0_0, %c0_1, %c0_2] : memref<2x8x8x128xf32, #tpu.memory_space<vmem>>, vector<2x8x8x128xf32>
    %c0_3 = arith.constant 0 : index
    %c0_4 = arith.constant 0 : index
    %1 = vector.load %arg4[%c0_3, %c0_4] : memref<4x128xf32, #tpu.memory_space<vmem>>, vector<4x128xf32>
    %2 = arith.truncf %0 : vector<2x8x8x128xf32> to vector<2x8x8x128xbf16>
    %3 = vector.extract_strided_slice %1 {offsets = [0, 0], sizes = [1, 128], strides = [1, 1]} : vector<4x128xf32> to vector<1x128xf32>
    %4 = vector.shape_cast %3 : vector<1x128xf32> to vector<128xf32>
    %5 = vector.extract_strided_slice %1 {offsets = [1, 0], sizes = [1, 128], strides = [1, 1]} : vector<4x128xf32> to vector<1x128xf32>
    %6 = vector.shape_cast %5 : vector<1x128xf32> to vector<128xf32>
    %7 = vector.extract_strided_slice %2 {offsets = [0, 1, 0, 0], sizes = [2, 1, 8, 128], strides = [1, 1, 1, 1]} : vector<2x8x8x128xbf16> to vector<2x1x8x128xbf16>
    %8 = vector.extract_strided_slice %2 {offsets = [0, 6, 0, 0], sizes = [2, 1, 8, 128], strides = [1, 1, 1, 1]} : vector<2x8x8x128xbf16> to vector<2x1x8x128xbf16>
    %9 = tpu.concatenate %7, %2, %8 in 1 : vector<2x1x8x128xbf16>, vector<2x8x8x128xbf16>, vector<2x1x8x128xbf16> -> vector<2x10x8x128xbf16>
    %10 = vector.extract_strided_slice %9 {offsets = [0, 0, 1, 0], sizes = [2, 10, 1, 128], strides = [1, 1, 1, 1]} : vector<2x10x8x128xbf16> to vector<2x10x1x128xbf16>
    %11 = vector.extract_strided_slice %9 {offsets = [0, 0, 6, 0], sizes = [2, 10, 1, 128], strides = [1, 1, 1, 1]} : vector<2x10x8x128xbf16> to vector<2x10x1x128xbf16>
    %12 = tpu.concatenate %10, %9, %11 in 2 : vector<2x10x1x128xbf16>, vector<2x10x8x128xbf16>, vector<2x10x1x128xbf16> -> vector<2x10x10x128xbf16>
    %cst = arith.constant 0.000000e+00 : f32
    %13 = vector.broadcast %cst : f32 to vector<128x128xf32>
    %14 = vector.extract_strided_slice %12 {offsets = [0, 0, 0, 0], sizes = [2, 8, 8, 128], strides = [1, 1, 1, 1]} : vector<2x10x10x128xbf16> to vector<2x8x8x128xbf16>
    %15 = vector.shape_cast %14 : vector<2x8x8x128xbf16> to vector<128x128xbf16>
    %16 = vector.extract_strided_slice %12 {offsets = [0, 0, 1, 0], sizes = [2, 8, 8, 128], strides = [1, 1, 1, 1]} : vector<2x10x10x128xbf16> to vector<2x8x8x128xbf16>
    %17 = vector.shape_cast %16 : vector<2x8x8x128xbf16> to vector<128x128xbf16>
    %18 = vector.extract_strided_slice %12 {offsets = [0, 0, 2, 0], sizes = [2, 8, 8, 128], strides = [1, 1, 1, 1]} : vector<2x10x10x128xbf16> to vector<2x8x8x128xbf16>
    %19 = vector.shape_cast %18 : vector<2x8x8x128xbf16> to vector<128x128xbf16>
    %20 = tpu.concatenate %15, %17, %19 in 1 : vector<128x128xbf16>, vector<128x128xbf16>, vector<128x128xbf16> -> vector<128x384xbf16>
    %c0_5 = arith.constant 0 : index
    %c0_6 = arith.constant 0 : index
    %21 = vector.load %arg2[%c0_5, %c0_6] : memref<1152x128xbf16, #tpu.memory_space<vmem>>, vector<384x128xbf16>
    %cst_7 = arith.constant dense<0.000000e+00> : vector<128x128xf32>
    %22 = tpu.matmul %20, %21, %cst_7 {dimension_numbers = #tpu.dot_dimension_numbers<[1], [0], [0], [1], [0, 0, 1, 1], [], []>} : vector<128x384xbf16>, vector<384x128xbf16>, vector<128x128xf32> -> vector<128x128xf32>
    %23 = arith.addf %13, %22 : vector<128x128xf32>
    %24 = vector.extract_strided_slice %12 {offsets = [0, 1, 0, 0], sizes = [2, 8, 8, 128], strides = [1, 1, 1, 1]} : vector<2x10x10x128xbf16> to vector<2x8x8x128xbf16>
    %25 = vector.shape_cast %24 : vector<2x8x8x128xbf16> to vector<128x128xbf16>
    %26 = vector.extract_strided_slice %12 {offsets = [0, 1, 1, 0], sizes = [2, 8, 8, 128], strides = [1, 1, 1, 1]} : vector<2x10x10x128xbf16> to vector<2x8x8x128xbf16>
    %27 = vector.shape_cast %26 : vector<2x8x8x128xbf16> to vector<128x128xbf16>
    %28 = vector.extract_strided_slice %12 {offsets = [0, 1, 2, 0], sizes = [2, 8, 8, 128], strides = [1, 1, 1, 1]} : vector<2x10x10x128xbf16> to vector<2x8x8x128xbf16>
    %29 = vector.shape_cast %28 : vector<2x8x8x128xbf16> to vector<128x128xbf16>
    %30 = tpu.concatenate %25, %27, %29 in 1 : vector<128x128xbf16>, vector<128x128xbf16>, vector<128x128xbf16> -> vector<128x384xbf16>
    %c384 = arith.constant 384 : index
    %c0_8 = arith.constant 0 : index
    %31 = vector.load %arg2[%c384, %c0_8] : memref<1152x128xbf16, #tpu.memory_space<vmem>>, vector<384x128xbf16>
    %cst_9 = arith.constant dense<0.000000e+00> : vector<128x128xf32>
    %32 = tpu.matmul %30, %31, %cst_9 {dimension_numbers = #tpu.dot_dimension_numbers<[1], [0], [0], [1], [0, 0, 1, 1], [], []>} : vector<128x384xbf16>, vector<384x128xbf16>, vector<128x128xf32> -> vector<128x128xf32>
    %33 = arith.addf %23, %32 : vector<128x128xf32>
    %34 = vector.extract_strided_slice %12 {offsets = [0, 2, 0, 0], sizes = [2, 8, 8, 128], strides = [1, 1, 1, 1]} : vector<2x10x10x128xbf16> to vector<2x8x8x128xbf16>
    %35 = vector.shape_cast %34 : vector<2x8x8x128xbf16> to vector<128x128xbf16>
    %36 = vector.extract_strided_slice %12 {offsets = [0, 2, 1, 0], sizes = [2, 8, 8, 128], strides = [1, 1, 1, 1]} : vector<2x10x10x128xbf16> to vector<2x8x8x128xbf16>
    %37 = vector.shape_cast %36 : vector<2x8x8x128xbf16> to vector<128x128xbf16>
    %38 = vector.extract_strided_slice %12 {offsets = [0, 2, 2, 0], sizes = [2, 8, 8, 128], strides = [1, 1, 1, 1]} : vector<2x10x10x128xbf16> to vector<2x8x8x128xbf16>
    %39 = vector.shape_cast %38 : vector<2x8x8x128xbf16> to vector<128x128xbf16>
    %40 = tpu.concatenate %35, %37, %39 in 1 : vector<128x128xbf16>, vector<128x128xbf16>, vector<128x128xbf16> -> vector<128x384xbf16>
    %c768 = arith.constant 768 : index
    %c0_10 = arith.constant 0 : index
    %41 = vector.load %arg2[%c768, %c0_10] : memref<1152x128xbf16, #tpu.memory_space<vmem>>, vector<384x128xbf16>
    %cst_11 = arith.constant dense<0.000000e+00> : vector<128x128xf32>
    %42 = tpu.matmul %40, %41, %cst_11 {dimension_numbers = #tpu.dot_dimension_numbers<[1], [0], [0], [1], [0, 0, 1, 1], [], []>} : vector<128x384xbf16>, vector<384x128xbf16>, vector<128x128xf32> -> vector<128x128xf32>
    %43 = arith.addf %33, %42 : vector<128x128xf32>
    %44 = vector.shape_cast %43 : vector<128x128xf32> to vector<2x64x128xf32>
    %cst_12 = arith.constant dense<0.000000e+00> : vector<2x128xf32>
    %45 = vector.multi_reduction <add>, %44, %cst_12 [1] : vector<2x64x128xf32> to vector<2x128xf32>
    %46 = vector.shape_cast %45 : vector<2x128xf32> to vector<2x1x128xf32>
    %cst_13 = arith.constant 1.562500e-02 : f32
    %47 = vector.broadcast %cst_13 : f32 to vector<2x1x128xf32>
    %48 = arith.mulf %46, %47 : vector<2x1x128xf32>
    %49 = vector.broadcast %48 : vector<2x1x128xf32> to vector<2x64x128xf32>
    %50 = arith.subf %44, %49 : vector<2x64x128xf32>
    %51 = arith.mulf %50, %50 : vector<2x64x128xf32>
    %cst_14 = arith.constant dense<0.000000e+00> : vector<2x128xf32>
    %52 = vector.multi_reduction <add>, %51, %cst_14 [1] : vector<2x64x128xf32> to vector<2x128xf32>
    %53 = vector.shape_cast %52 : vector<2x128xf32> to vector<2x1x128xf32>
    %cst_15 = arith.constant 1.562500e-02 : f32
    %54 = vector.broadcast %cst_15 : f32 to vector<2x1x128xf32>
    %55 = arith.mulf %53, %54 : vector<2x1x128xf32>
    %cst_16 = arith.constant 9.99999974E-6 : f32
    %56 = vector.broadcast %cst_16 : f32 to vector<2x1x128xf32>
    %57 = arith.addf %55, %56 : vector<2x1x128xf32>
    %58 = math.rsqrt %57 : vector<2x1x128xf32>
    %59 = vector.shape_cast %4 : vector<128xf32> to vector<1x1x128xf32>
    %60 = vector.broadcast %59 : vector<1x1x128xf32> to vector<2x1x128xf32>
    %61 = arith.mulf %58, %60 : vector<2x1x128xf32>
    %62 = vector.broadcast %61 : vector<2x1x128xf32> to vector<2x64x128xf32>
    %63 = arith.mulf %50, %62 : vector<2x64x128xf32>
    %64 = vector.shape_cast %6 : vector<128xf32> to vector<1x1x128xf32>
    %65 = vector.broadcast %64 : vector<1x1x128xf32> to vector<2x64x128xf32>
    %66 = arith.addf %63, %65 : vector<2x64x128xf32>
    %cst_17 = arith.constant 0.000000e+00 : f32
    %67 = vector.broadcast %cst_17 : f32 to vector<2x64x128xf32>
    %68 = arith.maximumf %66, %67 : vector<2x64x128xf32>
    %69 = vector.shape_cast %68 : vector<2x64x128xf32> to vector<2x8x8x128xf32>
    %70 = arith.truncf %69 : vector<2x8x8x128xf32> to vector<2x8x8x128xbf16>
    %71 = vector.extract_strided_slice %1 {offsets = [2, 0], sizes = [1, 128], strides = [1, 1]} : vector<4x128xf32> to vector<1x128xf32>
    %72 = vector.shape_cast %71 : vector<1x128xf32> to vector<128xf32>
    %73 = vector.extract_strided_slice %1 {offsets = [3, 0], sizes = [1, 128], strides = [1, 1]} : vector<4x128xf32> to vector<1x128xf32>
    %74 = vector.shape_cast %73 : vector<1x128xf32> to vector<128xf32>
    %75 = vector.extract_strided_slice %70 {offsets = [0, 1, 0, 0], sizes = [2, 1, 8, 128], strides = [1, 1, 1, 1]} : vector<2x8x8x128xbf16> to vector<2x1x8x128xbf16>
    %76 = vector.extract_strided_slice %70 {offsets = [0, 6, 0, 0], sizes = [2, 1, 8, 128], strides = [1, 1, 1, 1]} : vector<2x8x8x128xbf16> to vector<2x1x8x128xbf16>
    %77 = tpu.concatenate %75, %70, %76 in 1 : vector<2x1x8x128xbf16>, vector<2x8x8x128xbf16>, vector<2x1x8x128xbf16> -> vector<2x10x8x128xbf16>
    %78 = vector.extract_strided_slice %77 {offsets = [0, 0, 1, 0], sizes = [2, 10, 1, 128], strides = [1, 1, 1, 1]} : vector<2x10x8x128xbf16> to vector<2x10x1x128xbf16>
    %79 = vector.extract_strided_slice %77 {offsets = [0, 0, 6, 0], sizes = [2, 10, 1, 128], strides = [1, 1, 1, 1]} : vector<2x10x8x128xbf16> to vector<2x10x1x128xbf16>
    %80 = tpu.concatenate %78, %77, %79 in 2 : vector<2x10x1x128xbf16>, vector<2x10x8x128xbf16>, vector<2x10x1x128xbf16> -> vector<2x10x10x128xbf16>
    %cst_18 = arith.constant 0.000000e+00 : f32
    %81 = vector.broadcast %cst_18 : f32 to vector<128x128xf32>
    %82 = vector.extract_strided_slice %80 {offsets = [0, 0, 0, 0], sizes = [2, 8, 8, 128], strides = [1, 1, 1, 1]} : vector<2x10x10x128xbf16> to vector<2x8x8x128xbf16>
    %83 = vector.shape_cast %82 : vector<2x8x8x128xbf16> to vector<128x128xbf16>
    %84 = vector.extract_strided_slice %80 {offsets = [0, 0, 1, 0], sizes = [2, 8, 8, 128], strides = [1, 1, 1, 1]} : vector<2x10x10x128xbf16> to vector<2x8x8x128xbf16>
    %85 = vector.shape_cast %84 : vector<2x8x8x128xbf16> to vector<128x128xbf16>
    %86 = vector.extract_strided_slice %80 {offsets = [0, 0, 2, 0], sizes = [2, 8, 8, 128], strides = [1, 1, 1, 1]} : vector<2x10x10x128xbf16> to vector<2x8x8x128xbf16>
    %87 = vector.shape_cast %86 : vector<2x8x8x128xbf16> to vector<128x128xbf16>
    %88 = tpu.concatenate %83, %85, %87 in 1 : vector<128x128xbf16>, vector<128x128xbf16>, vector<128x128xbf16> -> vector<128x384xbf16>
    %c0_19 = arith.constant 0 : index
    %c0_20 = arith.constant 0 : index
    %89 = vector.load %arg3[%c0_19, %c0_20] : memref<1152x128xbf16, #tpu.memory_space<vmem>>, vector<384x128xbf16>
    %cst_21 = arith.constant dense<0.000000e+00> : vector<128x128xf32>
    %90 = tpu.matmul %88, %89, %cst_21 {dimension_numbers = #tpu.dot_dimension_numbers<[1], [0], [0], [1], [0, 0, 1, 1], [], []>} : vector<128x384xbf16>, vector<384x128xbf16>, vector<128x128xf32> -> vector<128x128xf32>
    %91 = arith.addf %81, %90 : vector<128x128xf32>
    %92 = vector.extract_strided_slice %80 {offsets = [0, 1, 0, 0], sizes = [2, 8, 8, 128], strides = [1, 1, 1, 1]} : vector<2x10x10x128xbf16> to vector<2x8x8x128xbf16>
    %93 = vector.shape_cast %92 : vector<2x8x8x128xbf16> to vector<128x128xbf16>
    %94 = vector.extract_strided_slice %80 {offsets = [0, 1, 1, 0], sizes = [2, 8, 8, 128], strides = [1, 1, 1, 1]} : vector<2x10x10x128xbf16> to vector<2x8x8x128xbf16>
    %95 = vector.shape_cast %94 : vector<2x8x8x128xbf16> to vector<128x128xbf16>
    %96 = vector.extract_strided_slice %80 {offsets = [0, 1, 2, 0], sizes = [2, 8, 8, 128], strides = [1, 1, 1, 1]} : vector<2x10x10x128xbf16> to vector<2x8x8x128xbf16>
    %97 = vector.shape_cast %96 : vector<2x8x8x128xbf16> to vector<128x128xbf16>
    %98 = tpu.concatenate %93, %95, %97 in 1 : vector<128x128xbf16>, vector<128x128xbf16>, vector<128x128xbf16> -> vector<128x384xbf16>
    %c384_22 = arith.constant 384 : index
    %c0_23 = arith.constant 0 : index
    %99 = vector.load %arg3[%c384_22, %c0_23] : memref<1152x128xbf16, #tpu.memory_space<vmem>>, vector<384x128xbf16>
    %cst_24 = arith.constant dense<0.000000e+00> : vector<128x128xf32>
    %100 = tpu.matmul %98, %99, %cst_24 {dimension_numbers = #tpu.dot_dimension_numbers<[1], [0], [0], [1], [0, 0, 1, 1], [], []>} : vector<128x384xbf16>, vector<384x128xbf16>, vector<128x128xf32> -> vector<128x128xf32>
    %101 = arith.addf %91, %100 : vector<128x128xf32>
    %102 = vector.extract_strided_slice %80 {offsets = [0, 2, 0, 0], sizes = [2, 8, 8, 128], strides = [1, 1, 1, 1]} : vector<2x10x10x128xbf16> to vector<2x8x8x128xbf16>
    %103 = vector.shape_cast %102 : vector<2x8x8x128xbf16> to vector<128x128xbf16>
    %104 = vector.extract_strided_slice %80 {offsets = [0, 2, 1, 0], sizes = [2, 8, 8, 128], strides = [1, 1, 1, 1]} : vector<2x10x10x128xbf16> to vector<2x8x8x128xbf16>
    %105 = vector.shape_cast %104 : vector<2x8x8x128xbf16> to vector<128x128xbf16>
    %106 = vector.extract_strided_slice %80 {offsets = [0, 2, 2, 0], sizes = [2, 8, 8, 128], strides = [1, 1, 1, 1]} : vector<2x10x10x128xbf16> to vector<2x8x8x128xbf16>
    %107 = vector.shape_cast %106 : vector<2x8x8x128xbf16> to vector<128x128xbf16>
    %108 = tpu.concatenate %103, %105, %107 in 1 : vector<128x128xbf16>, vector<128x128xbf16>, vector<128x128xbf16> -> vector<128x384xbf16>
    %c768_25 = arith.constant 768 : index
    %c0_26 = arith.constant 0 : index
    %109 = vector.load %arg3[%c768_25, %c0_26] : memref<1152x128xbf16, #tpu.memory_space<vmem>>, vector<384x128xbf16>
    %cst_27 = arith.constant dense<0.000000e+00> : vector<128x128xf32>
    %110 = tpu.matmul %108, %109, %cst_27 {dimension_numbers = #tpu.dot_dimension_numbers<[1], [0], [0], [1], [0, 0, 1, 1], [], []>} : vector<128x384xbf16>, vector<384x128xbf16>, vector<128x128xf32> -> vector<128x128xf32>
    %111 = arith.addf %101, %110 : vector<128x128xf32>
    %112 = vector.shape_cast %111 : vector<128x128xf32> to vector<2x64x128xf32>
    %cst_28 = arith.constant dense<0.000000e+00> : vector<2x128xf32>
    %113 = vector.multi_reduction <add>, %112, %cst_28 [1] : vector<2x64x128xf32> to vector<2x128xf32>
    %114 = vector.shape_cast %113 : vector<2x128xf32> to vector<2x1x128xf32>
    %cst_29 = arith.constant 1.562500e-02 : f32
    %115 = vector.broadcast %cst_29 : f32 to vector<2x1x128xf32>
    %116 = arith.mulf %114, %115 : vector<2x1x128xf32>
    %117 = vector.broadcast %116 : vector<2x1x128xf32> to vector<2x64x128xf32>
    %118 = arith.subf %112, %117 : vector<2x64x128xf32>
    %119 = arith.mulf %118, %118 : vector<2x64x128xf32>
    %cst_30 = arith.constant dense<0.000000e+00> : vector<2x128xf32>
    %120 = vector.multi_reduction <add>, %119, %cst_30 [1] : vector<2x64x128xf32> to vector<2x128xf32>
    %121 = vector.shape_cast %120 : vector<2x128xf32> to vector<2x1x128xf32>
    %cst_31 = arith.constant 1.562500e-02 : f32
    %122 = vector.broadcast %cst_31 : f32 to vector<2x1x128xf32>
    %123 = arith.mulf %121, %122 : vector<2x1x128xf32>
    %cst_32 = arith.constant 9.99999974E-6 : f32
    %124 = vector.broadcast %cst_32 : f32 to vector<2x1x128xf32>
    %125 = arith.addf %123, %124 : vector<2x1x128xf32>
    %126 = math.rsqrt %125 : vector<2x1x128xf32>
    %127 = vector.shape_cast %72 : vector<128xf32> to vector<1x1x128xf32>
    %128 = vector.broadcast %127 : vector<1x1x128xf32> to vector<2x1x128xf32>
    %129 = arith.mulf %126, %128 : vector<2x1x128xf32>
    %130 = vector.broadcast %129 : vector<2x1x128xf32> to vector<2x64x128xf32>
    %131 = arith.mulf %118, %130 : vector<2x64x128xf32>
    %132 = vector.shape_cast %74 : vector<128xf32> to vector<1x1x128xf32>
    %133 = vector.broadcast %132 : vector<1x1x128xf32> to vector<2x64x128xf32>
    %134 = arith.addf %131, %133 : vector<2x64x128xf32>
    %135 = vector.shape_cast %134 : vector<2x64x128xf32> to vector<2x8x8x128xf32>
    %136 = arith.addf %135, %0 : vector<2x8x8x128xf32>
    %c0_33 = arith.constant 0 : index
    %c0_34 = arith.constant 0 : index
    %c0_35 = arith.constant 0 : index
    %c0_36 = arith.constant 0 : index
    %137 = vector.load %arg5[%c0_33, %c0_34, %c0_35, %c0_36] : memref<2x8x8x128xf32, #tpu.memory_space<vmem>>, vector<2x8x8x128xf32>
    tpu.vector_store %arg5[%c0_33, %c0_34, %c0_35, %c0_36], %136 {strides = array<i32>} : memref<2x8x8x128xf32, #tpu.memory_space<vmem>>, vector<2x8x8x128xf32>,
    return
  }
  func.func @transform_0(%arg0: i32) -> (i32, i32, i32, i32) {
    %c0_i32 = arith.constant 0 : i32
    %c0_i32_0 = arith.constant 0 : i32
    %c0_i32_1 = arith.constant 0 : i32
    %c0_i32_2 = arith.constant 0 : i32
    return %arg0, %c0_i32, %c0_i32_0, %c0_i32_1 : i32, i32, i32, i32
  }
  func.func @transform_1(%arg0: i32) -> (i32, i32) {
    %c0_i32 = arith.constant 0 : i32
    %c0_i32_0 = arith.constant 0 : i32
    %c0_i32_1 = arith.constant 0 : i32
    return %c0_i32, %c0_i32_0 : i32, i32
  }
  func.func @transform_2(%arg0: i32) -> (i32, i32) {
    %c0_i32 = arith.constant 0 : i32
    %c0_i32_0 = arith.constant 0 : i32
    %c0_i32_1 = arith.constant 0 : i32
    return %c0_i32, %c0_i32_0 : i32, i32
  }
  func.func @transform_3(%arg0: i32) -> (i32, i32) {
    %c0_i32 = arith.constant 0 : i32
    %c0_i32_0 = arith.constant 0 : i32
    %c0_i32_1 = arith.constant 0 : i32
    return %c0_i32, %c0_i32_0 : i32, i32
  }
  func.func @transform_4(%arg0: i32) -> (i32, i32, i32, i32) {
    %c0_i32 = arith.constant 0 : i32
    %c0_i32_0 = arith.constant 0 : i32
    %c0_i32_1 = arith.constant 0 : i32
    %c0_i32_2 = arith.constant 0 : i32
    return %arg0, %c0_i32, %c0_i32_0, %c0_i32_1 : i32, i32, i32, i32
  }
}

</mosaic_0001>

<bundles_post_ra>
// kernel: tpu_custom_call.1
= control target key start
LH: loop header
LB: loop body
LE: loop exit
PB: predicated region body
PF: predicated region fallthrough
CT: control target
= control target key end

     0   :  { %9 = vsyncpa [#allocation3], 0  ;;  %s6698_s0 = inlined_call_operand.hbm [shape: f32[2,8,8,128], index: 0, kind: input, shape index: {}]   ;;  %s6699_s1 = inlined_call_operand.hbm [shape: bf16[1152,128], index: 1, kind: input, shape index: {}]   ;;  %s6700_s2 = inlined_call_operand.hbm [shape: bf16[1152,128], index: 2, kind: input, shape index: {}]   ;;  %s6701_s3 = inlined_call_operand.hbm [shape: f32[4,128], index: 3, kind: input, shape index: {}]   ;;  %s6702_s4 = inlined_call_operand.hbm [shape: f32[2,8,8,128], index: 4, kind: output, shape index: {}]  }
   0x1   :  { %10 = vsyncpa [#allocation6], 0 }
   0x2   :  { %11 = vsyncpa [#allocation9], 0  ;;  %s30_s17 = sshll.u32 %s6699_s1, 4  ;;  %s31_s17 = int_to_ptr.hbm [resolvable:$true] %s30_s17 }
   0x3   :  { %12 = vsyncpa [#allocation4], 0  ;;  %s5027_s18 = smov [#allocation5]   ;;  %s17_s22 = sshll.u32 %s6698_s0, 4  ;;  %s18_s22 = int_to_ptr.hbm [resolvable:$true] %s17_s22 }
   0x4   :  { %s32_s19 = sshll.u32 %s5027_s18, 4  ;;  %s5028_s23 = smov 64   ;;  %s33_s19 = int_to_ptr.vmem [resolvable:$true] %s32_s19 }
   0x5   :  { %s5029_s24 = smov 4   ;;  %s5030_s25 = smov [#allocation2]  }
   0x6   :  { %38 = dma.hbm_to_vmem [thread:$0]  %s31_s17, 9216, %s33_s19, [#allocation6], %s5028_s23, %s5028_s23, %s5029_s24  }
   0x7   :  { %s19_s26 = sshll.u32 %s5030_s25, 4  ;;  %s5031_s27 = smov 128   ;;  %s20_s26 = int_to_ptr.vmem [resolvable:$true] %s19_s26 }
   0x8   :  { %s5032_s28 = smov 8   ;;  %s43_s30 = sshll.u32 %s6700_s2, 4  ;;  %s44_s30 = int_to_ptr.hbm [resolvable:$true] %s43_s30 }
   0x9   :  { %25 = dma.hbm_to_vmem [thread:$0]  %s18_s22, 2048, %s20_s26, [#allocation3], %s5031_s27, %s5031_s27, %s5032_s28  }
   0xa   :  { %s5033_s5 = smov [#allocation7]   ;;  %s57_s8 = sshll.u32 %s6701_s3, 4  ;;  %s58_s8 = int_to_ptr.hbm [resolvable:$true] %s57_s8 }
   0xb   :  { %s45_s0 = sshll.u32 %s5033_s5, 4  ;;  %s5034_s9 = smov [#allocation8]   ;;  %s46_s0 = int_to_ptr.vmem [resolvable:$true] %s45_s0 }
   0xc   :  { %51 = dma.hbm_to_vmem [thread:$0]  %s44_s30, 9216, %s46_s0, [#allocation6], %s5028_s23, %s5028_s23, %s5029_s24  }
   0xd   :  { %s59_s10 = sshll.u32 %s5034_s9, 4  ;;  %s60_s10 = int_to_ptr.vmem [resolvable:$true] %s59_s10 }
   0xe   :  { %62 = dma.hbm_to_vmem [thread:$0]  %s58_s8, 64, %s60_s10, [#allocation9]  }
   0xf   :  { %5019 = dma.done.wait [#allocation3], 2048  }
  0x10   :  { %5020 = vsyncadd [#allocation3], 4294965248 }
  0x11   :  { %5021 = dma.done.wait [#allocation6], 18432  }
  0x12   :  { %5022 = vsyncadd [#allocation6], 4294948864 }
  0x13   :  { %5023 = dma.done.wait [#allocation9], 64  }
  0x14   :  { %5024 = vsyncadd [#allocation9], 4294967232  ;;  %v4736_v0 = vld [vmem:[#allocation5 + $0xf8] sm:$0xff]  ;;  %v4735_v2 = vld [vmem:[#allocation5 + $0xf0] sm:$0xff]  ;;  %vm336_vm0 = vcmask 1040384   ;;  %vm355_vm2 = vcmask 1044480  }
  0x15   :  { %v4744_v1 = vld [vmem:[#allocation5 + $0x138] sm:$0xff]  ;;  %1116 = vmatpush.bf16.msra.mxu0 %v4736_v0  ;;  %4849 = vmatpush.bf16.msra.mxu2 %v4736_v0  ;;  %v4743_v3 = vld [vmem:[#allocation5 + $0x130] sm:$0xff]  ;;  %v4734_v4 = vld [vmem:[#allocation5 + $0xe8] sm:$0xff]  ;;  %vm337_vm1 = vsmask.f32 256  ;;  %v6739_v56 = vmov 0 }
  0x16   :  { %1165 = vmatpush.bf16.msra.mxu1 %v4744_v1  ;;  %4857 = vmatpush.bf16.msra.mxu3 %v4744_v1  ;;  %v79_v5 = vld [vmem:[#allocation2] sm:$0xff]  ;;  %v80_v6 = vld [vmem:[#allocation2 + $0x8] sm:$0xff]  ;;  %vm356_vm3 = vsmask.f32 4352  ;;  %v81_v14 = vld [vmem:[#allocation2 + $0x10] sm:$0xff]  ;;  %vm643_vm9 = vcmask 1042432  }
  0x17   :  { %v4742_v7 = vld [vmem:[#allocation5 + $0x128] sm:$0xff]  ;;  %v96_v8 = vpack.c.bf16 %v79_v5, %v79_v5  ;;  %v97_v9 = vpack.c.bf16 %v80_v6, %v80_v6  ;;  %v87_v10 = vld [vmem:[#allocation2 + $0x40] sm:$0xff]  ;;  %v82_v15 = vld [vmem:[#allocation2 + $0x18] sm:$0xff]  ;;  %v98_v19 = vpack.c.bf16 %v81_v14, %v81_v14  ;;  %vm444_vm6 = vsmask.f32 3328  ;;  %s5035_s2 = smov [#allocation10]  }
  0x18   :  { %v88_v11 = vld [vmem:[#allocation2 + $0x48] sm:$0xff]  ;;  %v104_v12 = vpack.c.bf16 %v87_v10, %v87_v10  ;;  %v89_v16 = vld [vmem:[#allocation2 + $0x50] sm:$0xff]  ;;  %v99_v20 = vpack.c.bf16 %v82_v15, %v82_v15  ;;  %v90_v21 = vld [vmem:[#allocation2 + $0x58] sm:$0xff]  ;;  %vm445_vm7 = vsmask.f32 7440  ;;  %vm644_vm10 = vcmask 1046532  }
  0x19   :  { %1117 = vmatpush.bf16.msra.mxu0 %v4735_v2  ;;  %4850 = vmatpush.bf16.msra.mxu2 %v4735_v2  ;;  %v105_v13 = vpack.c.bf16 %v88_v11, %v88_v11  ;;  %v128_v17 = vunpack.c.l.b16 %v97_v9  ;;  %v129_v18 = vunpack.c.l.b16 %v96_v8  ;;  %v106_v24 = vpack.c.bf16 %v89_v16, %v89_v16  ;;  %v4733_v26 = vld [vmem:[#allocation5 + $0xe0] sm:$0xff]  ;;  %v4732_v44 = vld [vmem:[#allocation5 + $0xd8] sm:$0xff]  ;;  %vm5078_vm4 = vmand %vm336_vm0, %vm337_vm1  ;;  %s4080_s3 = sshll.u32 %s5035_s2, 4  ;;  %s4082_s13 = sshll.u32 %s6702_s4, 4  ;;  %s4081_s3 = int_to_ptr.vmem [resolvable:$true] %s4080_s3  ;;  %s4083_s13 = int_to_ptr.hbm [resolvable:$true] %s4082_s13 }
  0x1a   :  { %1166 = vmatpush.bf16.msra.mxu1 %v4743_v3  ;;  %4858 = vmatpush.bf16.msra.mxu3 %v4743_v3  ;;  %v137_v23 = vunpack.c.l.b16 %v104_v12  ;;  %v107_v25 = vpack.c.bf16 %v90_v21, %v90_v21  ;;  %v130_v29 = vunpack.c.l.b16 %v98_v19  ;;  %v131_v30 = vunpack.c.l.b16 %v99_v20  ;;  %v4741_v31 = vld [vmem:[#allocation5 + $0x120] sm:$0xff]  ;;  %v4740_v48 = vld [vmem:[#allocation5 + $0x118] sm:$0xff]  ;;  %vm5084_vm5 = vmand %vm355_vm2, %vm356_vm3 }
  0x1b   :  { %v136_v22 = vunpack.c.l.b16 %v105_v13  ;;  %v144_v27 = vpack.c.b16 %v128_v17, %v128_v17  ;;  %v145_v28 = vpack.c.b16 %v129_v18, %v129_v18  ;;  %v138_v34 = vunpack.c.l.b16 %v106_v24  ;;  %v4731_v63 = vld [vmem:[#allocation5 + $0xd0] sm:$0xff]  ;;  %v4730_v17 = vld [vmem:[#allocation5 + $0xc8] sm:$0xff]  ;;  %vm5171_vm8 = vmor %vm444_vm6, %vm445_vm7 }
  0x1c   :  { %v153_v33 = vpack.c.b16 %v137_v23, %v137_v23  ;;  %v139_v35 = vunpack.c.l.b16 %v107_v25  ;;  %v6740_v56 = vsel %vm5084_vm5, 4294967295, %v6739_v56  ;;  %v5088_v57 = vpack.c.b16 %v130_v29, %v130_v29  ;;  %vm5470_vm11 = vmor %vm643_vm9, %vm644_vm10 }
  0x1d   :  { %1118 = vmatpush.bf16.msra.mxu0 %v4734_v4  ;;  %4851 = vmatpush.bf16.msra.mxu2 %v4734_v4  ;;  %v152_v32 = vpack.c.b16 %v136_v22, %v136_v22  ;;  %v161_v36 = vshrl.u32 %v144_v27, 16  ;;  %v164_v37 = vshrl.u32 %v145_v28, 16  ;;  %v225_v38 = vshll.u32 %v144_v27, 16  ;;  %6741 = vst [vmem:[#allocation15_spill] sm:$0xff] %v6740_v56  ;;  %v4739_v4 = vld [vmem:[#allocation5 + $0x110] sm:$0xff]  ;;  %v4738_v22 = vld [vmem:[#allocation5 + $0x108] sm:$0xff] }
  0x1e   :  { %1167 = vmatpush.bf16.msra.mxu1 %v4742_v7  ;;  %4859 = vmatpush.bf16.msra.mxu3 %v4742_v7  ;;  %v229_v39 = vshll.u32 %v145_v28, 16  ;;  %v188_v41 = vshrl.u32 %v153_v33, 16  ;;  %v261_v43 = vshll.u32 %v153_v33, 16  ;;  %v5090_v58 = vpack.c.b16 %v131_v30, %v131_v30 }
  0x1f   :  { %v185_v40 = vshrl.u32 %v152_v32, 16  ;;  %v257_v42 = vshll.u32 %v152_v32, 16  ;;  %v224_v45 = vrot.slane %v161_v36, 7  ;;  %v228_v46 = vrot.slane %v164_v37, 7 }
  0x20   :  { %v304_v47 = vrot.slane %v225_v38, 7  ;;  %v305_v49 = vrot.slane %v229_v39, 7  ;;  %v260_v52 = vrot.slane %v188_v41, 7  ;;  %v5092_v61 = vpack.c.b16 %v138_v34, %v138_v34 }
  0x21   :  { %1119 = vmatpush.bf16.msra.mxu0 %v4733_v26  ;;  %4852 = vmatpush.bf16.msra.mxu2 %v4733_v26  ;;  %v256_v51 = vrot.slane %v185_v40, 7  ;;  %v312_v53 = vrot.slane %v257_v42, 7  ;;  %v227_v54 = vor.u32 %v225_v38, %v224_v45  ;;  %v231_v55 = vor.u32 %v229_v39, %v228_v46 }
  0x22   :  { %1168 = vmatpush.bf16.msra.mxu1 %v4741_v31  ;;  %4860 = vmatpush.bf16.msra.mxu3 %v4741_v31  ;;  %v263_v60 = vor.u32 %v261_v43, %v260_v52  ;;  %v5094_v62 = vpack.c.b16 %v139_v35, %v139_v35  ;;  %v167_v2 = vshrl.u32 %v5088_v57, 16  ;;  %v170_v3 = vshrl.u32 %v5090_v58, 16  ;;  %v4729_v35 = vld [vmem:[#allocation5 + $0xc0] sm:$0xff] }
  0x23   :  { %v259_v59 = vor.u32 %v257_v42, %v256_v51  ;;  %v339_v0 = vsel %vm5078_vm4, %v161_v36, %v227_v54  ;;  %v340_v1 = vsel %vm5078_vm4, %v164_v37, %v231_v55  ;;  %v313_v7 = vrot.slane %v261_v43, 7  ;;  %v4712_v51 = vld [vmem:[#allocation5 + $0x38] sm:$0xff] }
  0x24   :  { %v358_v5 = vsel %vm5084_vm5, %v339_v0, %v304_v47  ;;  %v359_v6 = vsel %vm5084_vm5, %v340_v1, %v305_v49  ;;  %v348_v13 = vsel %vm5078_vm4, %v188_v41, %v263_v60  ;;  %v5118_v15 = vrot.slane %v167_v2, 7  ;;  %v4752_v49 = vld [vmem:[#allocation5 + $0x178] sm:$0xff] }
  0x25   :  { %1120 = vmatpush.bf16.msra.mxu0 %v4732_v44  ;;  %4853 = vmatpush.bf16.msra.mxu2 %v4732_v44  ;;  %v347_v8 = vsel %vm5078_vm4, %v185_v40, %v259_v59  ;;  %v5108_v9 = vunpack.c.l.b16 %v358_v5  ;;  %v389_v10 = vunpack.c.h.b16 %v358_v5  ;;  %v5110_v11 = vunpack.c.l.b16 %v359_v6  ;;  %v4737_v40 = vld [vmem:[#allocation5 + $0x100] sm:$0xff] }
  0x26   :  { %1169 = vmatpush.bf16.msra.mxu1 %v4740_v48  ;;  %4861 = vmatpush.bf16.msra.mxu3 %v4740_v48  ;;  %v391_v12 = vunpack.c.h.b16 %v359_v6  ;;  %v366_v14 = vsel %vm5084_vm5, %v347_v8, %v312_v53  ;;  %v233_v16 = vshll.u32 %v5088_v57, 16  ;;  %v5131_v21 = vrot.slane %v170_v3, 7 }
  0x27   :  { %v5123_v18 = vpack.c.b16 %v5108_v9, %v5108_v9  ;;  %v5125_v19 = vpack.c.b16 %v389_v10, %v389_v10  ;;  %v5127_v20 = vunpack.c.l.b16 %v366_v14  ;;  %v5135_v23 = vpack.c.b16 %v5110_v11, %v5110_v11 }
  0x28   :  { %v5137_v24 = vpack.c.b16 %v391_v12, %v391_v12  ;;  %v367_v25 = vsel %vm5084_vm5, %v348_v13, %v313_v7  ;;  %v403_v26 = vunpack.c.h.b16 %v366_v14  ;;  %v872_v31 = vpack.c.b16 %v5108_v9, %v5110_v11  ;;  %v4751_v13 = vld [vmem:[#allocation5 + $0x170] sm:$0xff] }
  0x29   :  { %1121 = vmatpush.bf16.msra.mxu0 %v4731_v63  ;;  %4854 = vmatpush.bf16.msra.mxu2 %v4731_v63  ;;  %6742 = vst [vmem:[#allocation16_spill] sm:$0xff] %v5127_v20  ;;  %v5141_v27 = vunpack.c.l.b16 %v367_v25  ;;  %v405_v28 = vunpack.c.h.b16 %v367_v25  ;;  %v5145_v29 = vpack.c.b16 %v5127_v20, %v5127_v20  ;;  %v448_v30 = vshrl.u32 %v5123_v18, 16  ;;  %v4711_v14 = vld [vmem:[#allocation5 + $0x30] sm:$0xff] }
  0x2a   :  { %1170 = vmatpush.bf16.msra.mxu1 %v4739_v4  ;;  %4862 = vmatpush.bf16.msra.mxu3 %v4739_v4  ;;  %v5150_v32 = vpack.c.b16 %v403_v26, %v403_v26  ;;  %v451_v33 = vshll.u32 %v5123_v18, 16  ;;  %v457_v34 = vshll.u32 %v5125_v19, 16  ;;  %v462_v43 = vshrl.u32 %v5135_v23, 16  ;;  %v4720_v4 = vld [vmem:[#allocation5 + $0x78] sm:$0xff] }
  0x2b   :  { %6743 = vst [vmem:[#allocation17_spill] sm:$0xff] %v5141_v27  ;;  %v5156_v36 = vpack.c.b16 %v5141_v27, %v5141_v27  ;;  %v5158_v37 = vpack.c.b16 %v405_v28, %v405_v28  ;;  %v876_v38 = vpack.c.b16 %v5127_v20, %v5141_v27  ;;  %v450_v39 = vrot.slane %v448_v30, 4  ;;  %v93_v20 = vld [vmem:[#allocation2 + $0x70] sm:$0xff] }
  0x2c   :  { %v453_v41 = vrot.slane %v451_v33, 5  ;;  %v459_v42 = vrot.slane %v457_v34, 5  ;;  %v465_v44 = vshll.u32 %v5135_v23, 16  ;;  %v471_v45 = vshll.u32 %v5137_v24, 16 }
  0x2d   :  { %1122 = vmatpush.bf16.msra.mxu0 %v4730_v17  ;;  %4855 = vmatpush.bf16.msra.mxu2 %v4730_v17  ;;  %v546_v46 = vshrl.u32 %v5145_v29, 16  ;;  %v549_v47 = vshll.u32 %v5145_v29, 16  ;;  %v555_v48 = vshll.u32 %v5150_v32, 16  ;;  %v464_v53 = vrot.slane %v462_v43, 4 }
  0x2e   :  { %1171 = vmatpush.bf16.msra.mxu1 %v4738_v22  ;;  %4863 = vmatpush.bf16.msra.mxu3 %v4738_v22  ;;  %v454_v52 = vor.u32 %v453_v41, %v450_v39  ;;  %v467_v54 = vrot.slane %v465_v44, 5  ;;  %v560_v55 = vshrl.u32 %v5156_v36, 16  ;;  %v6744_v59 = vmov 0  ;;  %v4750_v44 = vld [vmem:[#allocation5 + $0x168] sm:$0xff] }
  0x2f   :  { %v6745_v59 = vsel %vm5171_vm8, 4294967295, %v6744_v59  ;;  %v473_v60 = vrot.slane %v471_v45, 5  ;;  %v548_v63 = vrot.slane %v546_v46, 4  ;;  %v551_v0 = vrot.slane %v549_v47, 5  ;;  %v4710_v47 = vld [vmem:[#allocation5 + $0x28] sm:$0xff] }
  0x30   :  { %6746 = vst [vmem:[#allocation18_spill] sm:$0xff] %v6745_v59  ;;  %v557_v1 = vrot.slane %v555_v48, 5  ;;  %v455_v5 = vrot.slane %v454_v52, 4  ;;  %v468_v6 = vor.u32 %v467_v54, %v464_v53  ;;  %v562_v7 = vrot.slane %v560_v55, 4 }
  0x31   :  { %1123 = vmatpush.bf16.msra.mxu0 %v4729_v35  ;;  %4856 = vmatpush.bf16.msra.mxu2 %v4729_v35  ;;  %v563_v8 = vshll.u32 %v5156_v36, 16  ;;  %v552_v10 = vor.u32 %v551_v0, %v548_v63  ;;  %v569_v12 = vshll.u32 %v5158_v37, 16  ;;  %v235_v17 = vor.u32 %v233_v16, %v5118_v15  ;;  %v4719_v15 = vld [vmem:[#allocation5 + $0x70] sm:$0xff] }
  0x32   :  { %1172 = vmatpush.bf16.msra.mxu1 %v4737_v40  ;;  %4864 = vmatpush.bf16.msra.mxu3 %v4737_v40  ;;  %v237_v22 = vshll.u32 %v5090_v58, 16  ;;  %v460_v25 = vsel %vm5171_vm8, %v455_v5, %v459_v42  ;;  %v469_v26 = vrot.slane %v468_v6, 4  ;;  %v306_v30 = vrot.slane %v233_v16, 7 }
  0x33   :  { %v565_v28 = vrot.slane %v563_v8, 5  ;;  %v5185_v33 = vunpack.c.l.b16 %v460_v25  ;;  %v553_v34 = vrot.slane %v552_v10, 4  ;;  %v571_v35 = vrot.slane %v569_v12, 5  ;;  %v4709_v10 = vld [vmem:[#allocation5 + $0x20] sm:$0xff] }
  0x34   :  { %1124 = vmatmul.bf16.vlgmr.msra.gmra.mxu0 %v872_v31  ;;  %1144 = vmatmul.bf16.vlgmr.msra.gmra.mxu2 %v876_v38  ;;  %v239_v39 = vor.u32 %v237_v22, %v5131_v21  ;;  %v474_v31 = vsel %vm5171_vm8, %v469_v26, %v473_v60  ;;  %v307_v40 = vrot.slane %v237_v22, 7  ;;  %v341_v41 = vsel %vm5078_vm4, %v167_v2, %v235_v17 }
  0x35   :  { %1214 = vmatpush.bf16.msrb.mxu2 %v4752_v49  ;;  %1456 = vmatpush.bf16.msrb.mxu0 %v4720_v4  ;;  %v566_v38 = vor.u32 %v565_v28, %v562_v7  ;;  %v5194_v42 = vunpack.c.l.b16 %v474_v31  ;;  %v558_v16 = vsel %vm5171_vm8, %v553_v34, %v557_v1  ;;  %v360_v43 = vsel %vm5084_vm5, %v341_v41, %v306_v30  ;;  %v4749_v4 = vld [vmem:[#allocation5 + $0x160] sm:$0xff] }
  0x36   :  { %1407 = vmatpush.bf16.msrb.mxu3 %v4712_v51  ;;  %v342_v21 = vsel %vm5078_vm4, %v170_v3, %v239_v39  ;;  %v5204_v45 = vunpack.c.l.b16 %v558_v16  ;;  %v5208_v46 = vunpack.c.l.b16 %v360_v43  ;;  %v393_v58 = vunpack.c.h.b16 %v360_v43  ;;  %v4718_v51 = vld [vmem:[#allocation5 + $0x68] sm:$0xff] }
  0x37   :  { %v567_v57 = vrot.slane %v566_v38, 4  ;;  %v361_v2 = vsel %vm5084_vm5, %v342_v21, %v307_v40  ;;  %v890_v48 = vpack.c.b16 %v5185_v33, %v5194_v42  ;;  %v191_v54 = vshrl.u32 %v5092_v61, 16  ;;  %v83_v21 = vld [vmem:[#allocation2 + $0x20] sm:$0xff] }
  0x38   :  { %v5212_v49 = vunpack.c.l.b16 %v361_v2  ;;  %v395_v3 = vunpack.c.h.b16 %v361_v2  ;;  %v5218_v53 = vpack.c.b16 %v5208_v46, %v5208_v46  ;;  %v194_v55 = vshrl.u32 %v5094_v62, 16 }
  0x39   :  { %1215 = vmatpush.bf16.msrb.mxu2 %v4751_v13  ;;  %1457 = vmatpush.bf16.msrb.mxu0 %v4719_v15  ;;  %v572_v52 = vsel %vm5171_vm8, %v567_v57, %v571_v35  ;;  %v5224_v63 = vpack.c.b16 %v393_v58, %v393_v58  ;;  %v264_v6 = vrot.slane %v191_v54, 7  ;;  %v265_v7 = vshll.u32 %v5092_v61, 16 }
  0x3a   :  { %1408 = vmatpush.bf16.msrb.mxu3 %v4711_v14  ;;  %1173 = vmatmul.bf16.vlgmr.msra.gmra.mxu1 %v890_v48  ;;  %v5222_v60 = vunpack.c.l.b16 %v572_v52  ;;  %v5228_v0 = vpack.c.b16 %v5212_v49, %v5212_v49  ;;  %v5230_v1 = vpack.c.b16 %v395_v3, %v395_v3  ;;  %v873_v5 = vpack.c.b16 %v5212_v49, %v5208_v46 }
  0x3b   :  { %v268_v8 = vrot.slane %v194_v55, 7  ;;  %v269_v13 = vshll.u32 %v5094_v62, 16  ;;  %v476_v14 = vshrl.u32 %v5218_v53, 16  ;;  %v479_v17 = vshll.u32 %v5218_v53, 16 }
  0x3c   :  { %v894_v12 = vpack.c.b16 %v5204_v45, %v5222_v60  ;;  %v267_v22 = vor.u32 %v265_v7, %v264_v6  ;;  %v314_v25 = vrot.slane %v265_v7, 7  ;;  %v485_v26 = vshll.u32 %v5224_v63, 16 }
  0x3d   :  { %1216 = vmatpush.bf16.msrb.mxu2 %v4750_v44  ;;  %1458 = vmatpush.bf16.msrb.mxu0 %v4718_v51  ;;  %v490_v28 = vshrl.u32 %v5228_v0, 16  ;;  %v271_v61 = vor.u32 %v269_v13, %v268_v8  ;;  %v315_v30 = vrot.slane %v269_v13, 7  ;;  %v478_v34 = vrot.slane %v476_v14, 4  ;;  %v84_v8 = vld [vmem:[#allocation2 + $0x28] sm:$0xff] }
  0x3e   :  { %1409 = vmatpush.bf16.msrb.mxu3 %v4710_v47  ;;  %v481_v35 = vrot.slane %v479_v17, 5  ;;  %v349_v62 = vsel %vm5078_vm4, %v191_v54, %v267_v22  ;;  %v487_v39 = vrot.slane %v485_v26, 5  ;;  %v493_v31 = vshll.u32 %v5228_v0, 16 }
  0x3f   :  { %1193 = vmatmul.bf16.vlgmr.msra.gmra.mxu3 %v894_v12  ;;  %v492_v15 = vrot.slane %v490_v28, 4  ;;  %v350_v38 = vsel %vm5078_vm4, %v194_v55, %v271_v61  ;;  %v368_v40 = vsel %vm5084_vm5, %v349_v62, %v314_v25  ;;  %v499_v16 = vshll.u32 %v5230_v1, 16  ;;  %v92_v62 = vld [vmem:[#allocation2 + $0x68] sm:$0xff] }
  0x40   :  { %v482_v41 = vor.u32 %v481_v35, %v478_v34  ;;  %v369_v43 = vsel %vm5084_vm5, %v350_v38, %v315_v30  ;;  %v5252_v44 = vunpack.c.l.b16 %v368_v40  ;;  %v407_v57 = vunpack.c.h.b16 %v368_v40  ;;  %v91_v35 = vld [vmem:[#allocation2 + $0x60] sm:$0xff]  ;;  %v85_v40 = vld [vmem:[#allocation2 + $0x30] sm:$0xff] }
  0x41   :  { %1217 = vmatpush.bf16.msrb.mxu2 %v4749_v4  ;;  %v495_v2 = vrot.slane %v493_v31, 5  ;;  %v5254_v47 = vunpack.c.l.b16 %v369_v43  ;;  %v409_v48 = vunpack.c.h.b16 %v369_v43  ;;  %v501_v3 = vrot.slane %v499_v16, 5 }
  0x42   :  { %1410 = vmatpush.bf16.msrb.mxu3 %v4709_v10  ;;  %6747 = vst [vmem:[#allocation19_spill] sm:$0xff] %v5252_v44  ;;  %v483_v58 = vrot.slane %v482_v41, 4  ;;  %v5258_v51 = vpack.c.b16 %v5252_v44, %v5252_v44  ;;  %v5260_v52 = vpack.c.b16 %v407_v57, %v407_v57  ;;  %v100_v55 = vpack.c.bf16 %v83_v21, %v83_v21  ;;  %v86_v57 = vld [vmem:[#allocation2 + $0x38] sm:$0xff] }
  0x43   :  { %6748 = vst [vmem:[#allocation20_spill] sm:$0xff] %v5254_v47  ;;  %v496_v54 = vor.u32 %v495_v2, %v492_v15  ;;  %v5264_v4 = vpack.c.b16 %v5254_v47, %v5254_v47  ;;  %v5266_v6 = vpack.c.b16 %v409_v48, %v409_v48  ;;  %v877_v7 = vpack.c.b16 %v5254_v47, %v5252_v44 }
  0x44   :  { %1129 = vmatmul.bf16.gmra.mxu0 %v873_v5  ;;  %6749 = vst [vmem:[#allocation21_spill] sm:$0xff] %v5258_v51  ;;  %v488_v5 = vsel %vm5171_vm8, %v483_v58, %v487_v39  ;;  %v574_v13 = vshrl.u32 %v5258_v51, 16  ;;  %v577_v14 = vshll.u32 %v5258_v51, 16  ;;  %v583_v17 = vshll.u32 %v5260_v52, 16 }
  0x45   :  { %6750 = vst [vmem:[#allocation22_spill] sm:$0xff] %v5260_v52  ;;  %v497_v10 = vrot.slane %v496_v54, 4  ;;  %v5272_v12 = vunpack.c.l.b16 %v488_v5  ;;  %1149 = vmatmul.bf16.gmra.mxu2 %v877_v7  ;;  %v588_v22 = vshrl.u32 %v5264_v4, 16  ;;  %v591_v25 = vshll.u32 %v5264_v4, 16 }
  0x46   :  { %6751 = vst [vmem:[#allocation23_spill] sm:$0xff] %v5264_v4  ;;  %v597_v26 = vshll.u32 %v5266_v6, 16  ;;  %v576_v61 = vrot.slane %v574_v13, 4  ;;  %v579_v30 = vrot.slane %v577_v14, 5  ;;  %v101_v34 = vpack.c.bf16 %v84_v8, %v84_v8 }
  0x47   :  { %6752 = vst [vmem:[#allocation24_spill] sm:$0xff] %v5266_v6  ;;  %v502_v28 = vsel %vm5171_vm8, %v497_v10, %v501_v3  ;;  %v585_v15 = vrot.slane %v583_v17, 5  ;;  %v590_v31 = vrot.slane %v588_v22, 4  ;;  %v593_v38 = vrot.slane %v591_v25, 5  ;;  %v4748_v17 = vld [vmem:[#allocation5 + $0x158] sm:$0xff]  ;;  %v4717_v25 = vld [vmem:[#allocation5 + $0x60] sm:$0xff] }
  0x48   :  { %v5282_v39 = vunpack.c.l.b16 %v502_v28  ;;  %v580_v41 = vor.u32 %v579_v30, %v576_v61  ;;  %v599_v16 = vrot.slane %v597_v26, 5  ;;  %v132_v21 = vunpack.c.l.b16 %v100_v55  ;;  %v4708_v22 = vld [vmem:[#allocation5 + $0x18] sm:$0xff]  ;;  %1218 = vmatpush.bf16.msrb.mxu2 %v4748_v17  ;;  %1459 = vmatpush.bf16.msrb.mxu0 %v4717_v25 }
  0x49   :  { %v133_v43 = vunpack.c.l.b16 %v101_v34  ;;  %v594_v48 = vor.u32 %v593_v38, %v590_v31  ;;  %v108_v58 = vpack.c.bf16 %v91_v35, %v91_v35  ;;  %v109_v3 = vpack.c.bf16 %v92_v62, %v92_v62  ;;  %1411 = vmatpush.bf16.msrb.mxu3 %v4708_v22  ;;  %v4747_v38 = vld [vmem:[#allocation5 + $0x150] sm:$0xff] }
  0x4a   :  { %v891_v2 = vpack.c.b16 %v5282_v39, %v5272_v12  ;;  %v581_v54 = vrot.slane %v580_v41, 4  ;;  %v148_v7 = vpack.c.b16 %v132_v21, %v132_v21  ;;  %v102_v8 = vpack.c.bf16 %v85_v40, %v85_v40  ;;  %v4707_v40 = vld [vmem:[#allocation5 + $0x10] sm:$0xff]  ;;  %v4728_v41 = vld [vmem:[#allocation5 + $0xb8] sm:$0xff] }
  0x4b   :  { %v149_v5 = vpack.c.b16 %v133_v43, %v133_v43  ;;  %v595_v10 = vrot.slane %v594_v48, 4  ;;  %v140_v13 = vunpack.c.l.b16 %v108_v58  ;;  %v141_v14 = vunpack.c.l.b16 %v109_v3  ;;  %1505 = vmatpush.bf16.msrb.mxu1 %v4728_v41 }
  0x4c   :  { %1178 = vmatmul.bf16.gmra.mxu1 %v891_v2  ;;  %v103_v55 = vpack.c.bf16 %v86_v57, %v86_v57  ;;  %v586_v26 = vsel %vm5171_vm8, %v581_v54, %v585_v15  ;;  %v173_v28 = vshrl.u32 %v148_v7, 16  ;;  %v241_v30 = vshll.u32 %v148_v7, 16  ;;  %v4716_v2 = vld [vmem:[#allocation5 + $0x58] sm:$0xff]  ;;  %1219 = vmatpush.bf16.msrb.mxu2 %v4747_v38 }
  0x4d   :  { %v176_v61 = vshrl.u32 %v149_v5, 16  ;;  %v600_v34 = vsel %vm5171_vm8, %v595_v10, %v599_v16  ;;  %v5290_v35 = vunpack.c.l.b16 %v586_v26  ;;  %v245_v62 = vshll.u32 %v149_v5, 16  ;;  %1412 = vmatpush.bf16.msrb.mxu3 %v4707_v40  ;;  %1460 = vmatpush.bf16.msrb.mxu0 %v4716_v2 }
  0x4e   :  { %v156_v31 = vpack.c.b16 %v140_v13, %v140_v13  ;;  %v5292_v21 = vunpack.c.l.b16 %v600_v34  ;;  %v240_v43 = vrot.slane %v173_v28, 7  ;;  %v308_v15 = vrot.slane %v241_v30, 7 }
  0x4f   :  { %6753 = vst [vmem:[#allocation25_spill] sm:$0xff] %v5290_v35  ;;  %v244_v57 = vrot.slane %v176_v61, 7  ;;  %v309_v48 = vrot.slane %v245_v62, 7  ;;  %v157_v58 = vpack.c.b16 %v141_v14, %v141_v14  ;;  %v134_v10 = vunpack.c.l.b16 %v102_v8 }
  0x50   :  { %6754 = vst [vmem:[#allocation26_spill] sm:$0xff] %v5292_v21  ;;  %v197_v3 = vshrl.u32 %v156_v31, 16  ;;  %v273_v16 = vshll.u32 %v156_v31, 16  ;;  %v895_v54 = vpack.c.b16 %v5292_v21, %v5290_v35  ;;  %v243_v7 = vor.u32 %v241_v30, %v240_v43  ;;  %v4746_v35 = vld [vmem:[#allocation5 + $0x148] sm:$0xff] }
  0x51   :  { %v247_v5 = vor.u32 %v245_v62, %v244_v57  ;;  %v200_v13 = vshrl.u32 %v157_v58, 16  ;;  %v277_v22 = vshll.u32 %v157_v58, 16  ;;  %v135_v34 = vunpack.c.l.b16 %v103_v55  ;;  %1220 = vmatpush.bf16.msrb.mxu2 %v4746_v35 }
  0x52   :  { %v272_v17 = vrot.slane %v197_v3, 7  ;;  %v316_v26 = vrot.slane %v273_v16, 7  ;;  %1198 = vmatmul.bf16.gmra.mxu3 %v895_v54  ;;  %v343_v25 = vsel %vm5078_vm4, %v173_v28, %v243_v7  ;;  %v5300_v31 = vpack.c.b16 %v134_v10, %v134_v10 }
  0x53   :  { %v344_v14 = vsel %vm5078_vm4, %v176_v61, %v247_v5  ;;  %v362_v8 = vsel %vm5084_vm5, %v343_v25, %v308_v15  ;;  %v276_v38 = vrot.slane %v200_v13, 7  ;;  %v317_v61 = vrot.slane %v277_v22, 7 }
  0x54   :  { %v363_v30 = vsel %vm5084_vm5, %v344_v14, %v309_v48  ;;  %v275_v62 = vor.u32 %v273_v16, %v272_v17  ;;  %v5306_v40 = vunpack.c.l.b16 %v362_v8  ;;  %v397_v41 = vunpack.c.h.b16 %v362_v8 }
  0x55   :  { %v5308_v43 = vunpack.c.l.b16 %v363_v30  ;;  %v399_v28 = vunpack.c.h.b16 %v363_v30  ;;  %v279_v57 = vor.u32 %v277_v22, %v276_v38  ;;  %v5312_v2 = vpack.c.b16 %v135_v34, %v135_v34 }
  0x56   :  { %v351_v55 = vsel %vm5078_vm4, %v197_v3, %v275_v62  ;;  %v5316_v15 = vpack.c.b16 %v5306_v40, %v5306_v40  ;;  %v5318_v48 = vpack.c.b16 %v397_v41, %v397_v41  ;;  %v4098_v56 = vrot.slane %v5135_v23, 9  ;;  %v4721_v23 = vld [vmem:[#allocation5 + $0x80] sm:$0xff] }
  0x57   :  { %v5322_v58 = vpack.c.b16 %v5308_v43, %v5308_v43  ;;  %v5324_v16 = vpack.c.b16 %v399_v28, %v399_v28  ;;  %v874_v54 = vpack.c.b16 %v5308_v43, %v5306_v40  ;;  %v352_v3 = vsel %vm5078_vm4, %v200_v13, %v279_v57 }
  0x58   :  { %v370_v7 = vsel %vm5084_vm5, %v351_v55, %v316_v26  ;;  %v371_v10 = vsel %vm5084_vm5, %v352_v3, %v317_v61  ;;  %v504_v25 = vshrl.u32 %v5316_v15, 16  ;;  %v507_v8 = vshll.u32 %v5316_v15, 16 }
  0x59   :  { %v5335_v17 = vunpack.c.l.b16 %v370_v7  ;;  %v411_v22 = vunpack.c.h.b16 %v370_v7  ;;  %1134 = vmatmul.bf16.gmra.mxu0 %v874_v54  ;;  %v5338_v14 = vunpack.c.l.b16 %v371_v10  ;;  %v413_v34 = vunpack.c.h.b16 %v371_v10 }
  0x5a   :  { %v513_v13 = vshll.u32 %v5318_v48, 16  ;;  %v506_v62 = vrot.slane %v504_v25, 4  ;;  %v518_v38 = vshrl.u32 %v5322_v58, 16  ;;  %v509_v61 = vrot.slane %v507_v8, 5 }
  0x5b   :  { %6755 = vst [vmem:[#allocation27_spill] sm:$0xff] %v5335_v17  ;;  %v5344_v26 = vpack.c.b16 %v5335_v17, %v5335_v17  ;;  %v5346_v30 = vpack.c.b16 %v411_v22, %v411_v22  ;;  %v5351_v41 = vpack.c.b16 %v5338_v14, %v5338_v14  ;;  %v5353_v28 = vpack.c.b16 %v413_v34, %v413_v34 }
  0x5c   :  { %6756 = vst [vmem:[#allocation28_spill] sm:$0xff] %v5338_v14  ;;  %v878_v57 = vpack.c.b16 %v5338_v14, %v5335_v17  ;;  %v515_v55 = vrot.slane %v513_v13, 5  ;;  %v520_v54 = vrot.slane %v518_v38, 4  ;;  %v521_v3 = vshll.u32 %v5322_v58, 16 }
  0x5d   :  { %6757 = vst [vmem:[#allocation29_spill] sm:$0xff] %v5344_v26  ;;  %v527_v7 = vshll.u32 %v5324_v16, 16  ;;  %v510_v10 = vor.u32 %v509_v61, %v506_v62  ;;  %v602_v22 = vshrl.u32 %v5344_v26, 16  ;;  %v605_v25 = vshll.u32 %v5344_v26, 16 }
  0x5e   :  { %6758 = vst [vmem:[#allocation30_spill] sm:$0xff] %v5346_v30  ;;  %1154 = vmatmul.bf16.gmra.mxu2 %v878_v57  ;;  %v611_v5 = vshll.u32 %v5346_v30, 16  ;;  %v523_v34 = vrot.slane %v521_v3, 5  ;;  %v616_v44 = vshrl.u32 %v5351_v41, 16  ;;  %v619_v8 = vshll.u32 %v5351_v41, 16 }
  0x5f   :  { %6759 = vst [vmem:[#allocation31_spill] sm:$0xff] %v5351_v41  ;;  %v529_v47 = vrot.slane %v527_v7, 5  ;;  %v511_v13 = vrot.slane %v510_v10, 4  ;;  %v604_v38 = vrot.slane %v602_v22, 4  ;;  %v607_v14 = vrot.slane %v605_v25, 5  ;;  %v94_v41 = vld [vmem:[#allocation2 + $0x78] sm:$0xff] }
  0x60   :  { %6760 = vst [vmem:[#allocation32_spill] sm:$0xff] %v5353_v28  ;;  %v613_v17 = vrot.slane %v611_v5, 5  ;;  %v524_v21 = vor.u32 %v523_v34, %v520_v54  ;;  %v618_v27 = vrot.slane %v616_v44, 4  ;;  %v621_v57 = vrot.slane %v619_v8, 5 }
  0x61   :  { %v625_v62 = vshll.u32 %v5353_v28, 16  ;;  %v516_v61 = vsel %vm5171_vm8, %v511_v13, %v515_v55  ;;  %v608_v26 = vor.u32 %v607_v14, %v604_v38  ;;  %v182_v3 = vshrl.u32 %v5312_v2, 16 }
  0x62   :  { %v6761_v7 = vshrl.u32 %v5300_v31, 16  ;;  %v525_v10 = vrot.slane %v524_v21, 4  ;;  %v5370_v22 = vunpack.c.l.b16 %v516_v61  ;;  %v622_v5 = vor.u32 %v621_v57, %v618_v27  ;;  %v4727_v57 = vld [vmem:[#allocation5 + $0xb0] sm:$0xff] }
  0x63   :  { %v627_v54 = vrot.slane %v625_v62, 5  ;;  %v609_v44 = vrot.slane %v608_v26, 4  ;;  %v249_v25 = vshll.u32 %v5300_v31, 16  ;;  %v252_v34 = vrot.slane %v182_v3, 7  ;;  %1506 = vmatpush.bf16.msrb.mxu1 %v4727_v57 }
  0x64   :  { %v248_v30 = vrot.slane %v6761_v7, 7  ;;  %v253_v8 = vshll.u32 %v5312_v2, 16  ;;  %v530_v14 = vsel %vm5171_vm8, %v525_v10, %v529_v47  ;;  %v623_v55 = vrot.slane %v622_v5, 4  ;;  %v4706_v47 = vld [vmem:[#allocation5 + $0x8] sm:$0xff]  ;;  %v4715_v10 = vld [vmem:[#allocation5 + $0x50] sm:$0xff] }
  0x65   :  { %v110_v13 = vpack.c.bf16 %v93_v20, %v93_v20  ;;  %v111_v38 = vpack.c.bf16 %v94_v41, %v94_v41  ;;  %v5376_v7 = vunpack.c.l.b16 %v530_v14  ;;  %v614_v21 = vsel %vm5171_vm8, %v609_v44, %v613_v17  ;;  %1413 = vmatpush.bf16.msrb.mxu3 %v4706_v47  ;;  %v4745_v14 = vld [vmem:[#allocation5 + $0x140] sm:$0xff]  ;;  %1461 = vmatpush.bf16.msrb.mxu0 %v4715_v10 }
  0x66   :  { %v251_v61 = vor.u32 %v249_v25, %v248_v30  ;;  %v255_v27 = vor.u32 %v253_v8, %v252_v34  ;;  %v628_v26 = vsel %vm5171_vm8, %v623_v55, %v627_v54  ;;  %v5382_v62 = vunpack.c.l.b16 %v614_v21  ;;  %1221 = vmatpush.bf16.msrb.mxu2 %v4745_v14 }
  0x67   :  { %v310_v2 = vrot.slane %v249_v25, 7  ;;  %v311_v28 = vrot.slane %v253_v8, 7  ;;  %v892_v20 = vpack.c.b16 %v5376_v7, %v5370_v22  ;;  %v5386_v41 = vunpack.c.l.b16 %v628_v26  ;;  %v4726_v8 = vld [vmem:[#allocation5 + $0xa8] sm:$0xff] }
  0x68   :  { %6762 = vst [vmem:[#allocation33_spill] sm:$0xff] %v5382_v62  ;;  %v6764_v17 = vshrl.u32 %v5300_v31, 16  ;;  %v346_v5 = vsel %vm5078_vm4, %v182_v3, %v255_v27  ;;  %v142_v25 = vunpack.c.l.b16 %v110_v13  ;;  %v143_v34 = vunpack.c.l.b16 %v111_v38  ;;  %v4714_v13 = vld [vmem:[#allocation5 + $0x48] sm:$0xff]  ;;  %1507 = vmatpush.bf16.msrb.mxu1 %v4726_v8 }
  0x69   :  { %6763 = vst [vmem:[#allocation34_spill] sm:$0xff] %v5386_v41  ;;  %v365_v44 = vsel %vm5084_vm5, %v346_v5, %v311_v28  ;;  %1183 = vmatmul.bf16.gmra.mxu1 %v892_v20  ;;  %v896_v31 = vpack.c.b16 %v5386_v41, %v5382_v62  ;;  %1462 = vmatpush.bf16.msrb.mxu0 %v4714_v13  ;;  %v4724_v62 = vld [vmem:[#allocation5 + $0x98] sm:$0xff] }
  0x6a   :  { %v345_v30 = vsel %vm5078_vm4, %v6764_v17, %v251_v61  ;;  %v5402_v21 = vunpack.c.l.b16 %v365_v44  ;;  %v4705_v61 = vld [vmem:[#allocation5] sm:$0xff]  ;;  %v829_v27 = vunpack.c.h.b16 %v365_v44  ;;  %v158_v57 = vpack.c.b16 %v142_v25, %v142_v25 }
  0x6b   :  { %v364_v54 = vsel %vm5084_vm5, %v345_v30, %v310_v2  ;;  %v159_v28 = vpack.c.b16 %v143_v34, %v143_v34  ;;  %1203 = vmatmul.bf16.gmra.mxu3 %v896_v31  ;;  %v4725_v30 = vld [vmem:[#allocation5 + $0xa0] sm:$0xff] }
  0x6c   :  { %v5400_v55 = vunpack.c.l.b16 %v364_v54  ;;  %v401_v3 = vunpack.c.h.b16 %v364_v54  ;;  %6765 = vst [vmem:[#allocation35_spill] sm:$0xff] %v5402_v21  ;;  %v5412_v26 = vpack.c.b16 %v5402_v21, %v5402_v21  ;;  %v5416_v47 = vpack.c.b16 %v829_v27, %v829_v27  ;;  %1414 = vmatpush.bf16.msrb.mxu3 %v4705_v61  ;;  %v4713_v27 = vld [vmem:[#allocation5 + $0x40] sm:$0xff]  ;;  %1508 = vmatpush.bf16.msrb.mxu1 %v4725_v30 }
  0x6d   :  { %v203_v10 = vshrl.u32 %v158_v57, 16  ;;  %v206_v20 = vshrl.u32 %v159_v28, 16  ;;  %v281_v17 = vshll.u32 %v158_v57, 16  ;;  %v285_v5 = vshll.u32 %v159_v28, 16  ;;  %1463 = vmatpush.bf16.msrb.mxu0 %v4713_v27  ;;  %v4723_v27 = vld [vmem:[#allocation5 + $0x90] sm:$0xff] }
  0x6e   :  { %v5406_v35 = vpack.c.b16 %v5400_v55, %v5400_v55  ;;  %v5408_v38 = vpack.c.b16 %v401_v3, %v401_v3  ;;  %v875_v2 = vpack.c.b16 %v5402_v21, %v5400_v55  ;;  %v837_v3 = vshrl.u32 %v5412_v26, 16 }
  0x6f   :  { %v280_v34 = vrot.slane %v203_v10, 7  ;;  %v284_v31 = vrot.slane %v206_v20, 7  ;;  %v318_v21 = vrot.slane %v281_v17, 7  ;;  %v319_v57 = vrot.slane %v285_v5, 7 }
  0x70   :  { %1139 = vmatmul.bf16.gmra.mxu0 %v875_v2  ;;  %v532_v54 = vshrl.u32 %v5406_v35, 16  ;;  %v535_v44 = vshll.u32 %v5406_v35, 16  ;;  %v541_v25 = vshll.u32 %v5408_v38, 16  ;;  %v840_v28 = vshll.u32 %v5412_v26, 16  ;;  %1509 = vmatpush.bf16.msrb.mxu1 %v4724_v62  ;;  %v4760_v62 = vld [vmem:[#allocation5 + $0x1b8] sm:$0xff] }
  0x71   :  { %v283_v41 = vor.u32 %v281_v17, %v280_v34  ;;  %v287_v2 = vor.u32 %v285_v5, %v284_v31  ;;  %v839_v52 = vrot.slane %v837_v3, 4  ;;  %v846_v61 = vshll.u32 %v5416_v47, 16  ;;  %1758 = vmatpush.bf16.msra.mxu2 %v4760_v62 }
  0x72   :  { %v534_v8 = vrot.slane %v532_v54, 4  ;;  %v537_v14 = vrot.slane %v535_v44, 5  ;;  %v543_v4 = vrot.slane %v541_v25, 5  ;;  %v842_v44 = vrot.slane %v840_v28, 5 }
  0x73   :  { %v353_v13 = vsel %vm5078_vm4, %v203_v10, %v283_v41  ;;  %v354_v54 = vsel %vm5078_vm4, %v206_v20, %v287_v2  ;;  %v848_v20 = vrot.slane %v846_v61, 5  ;;  %v4097_v28 = vrot.slane %v5123_v18, 9  ;;  %v4776_v61 = vld [vmem:[#allocation5 + $0x238] sm:$0xff] }
  0x74   :  { %v538_v6 = vor.u32 %v537_v14, %v534_v8  ;;  %v372_v17 = vsel %vm5084_vm5, %v353_v13, %v318_v21  ;;  %v373_v30 = vsel %vm5084_vm5, %v354_v54, %v319_v57  ;;  %v843_v10 = vor.u32 %v842_v44, %v839_v52  ;;  %v4768_v14 = vld [vmem:[#allocation5 + $0x1f8] sm:$0xff]  ;;  %1510 = vmatpush.bf16.msrb.mxu1 %v4723_v27 }
  0x75   :  { %v5433_v25 = vunpack.c.l.b16 %v372_v17  ;;  %v415_v34 = vunpack.c.h.b16 %v372_v17  ;;  %v5435_v31 = vunpack.c.l.b16 %v373_v30  ;;  %v831_v3 = vunpack.c.h.b16 %v373_v30  ;;  %1807 = vmatpush.bf16.msra.mxu3 %v4768_v14  ;;  %1856 = vmatpush.bf16.msra.mxu0 %v4776_v61 }
  0x76   :  { %v539_v5 = vrot.slane %v538_v6, 4  ;;  %v844_v2 = vrot.slane %v843_v10, 4  ;;  %v648_v18 = vrot.slane %v5125_v19, 5 }
  0x77   :  { %v5441_v21 = vpack.c.b16 %v5433_v25, %v5433_v25  ;;  %v5443_v6 = vpack.c.b16 %v415_v34, %v415_v34  ;;  %v5447_v57 = vpack.c.b16 %v5435_v31, %v5435_v31  ;;  %v5449_v8 = vpack.c.b16 %v831_v3, %v831_v3  ;;  %v4722_v3 = vld [vmem:[#allocation5 + $0x88] sm:$0xff] }
  0x78   :  { %v544_v41 = vsel %vm5171_vm8, %v539_v5, %v543_v4  ;;  %v879_v52 = vpack.c.b16 %v5435_v31, %v5433_v25  ;;  %v849_v30 = vsel %vm5171_vm8, %v844_v2, %v848_v20  ;;  %v732_v2 = vpack.c.b16 %v5194_v42, %v5185_v33  ;;  %1511 = vmatpush.bf16.msrb.mxu1 %v4722_v3 }
  0x79   :  { %v5453_v4 = vunpack.c.l.b16 %v544_v41  ;;  %v630_v13 = vshrl.u32 %v5441_v21, 16  ;;  %v633_v54 = vshll.u32 %v5441_v21, 16  ;;  %v639_v44 = vshll.u32 %v5443_v6, 16 }
  0x7a   :  { %v851_v17 = vshrl.u32 %v5447_v57, 16  ;;  %1159 = vmatmul.bf16.gmra.mxu2 %v879_v52  ;;  %v854_v5 = vshll.u32 %v5447_v57, 16  ;;  %v860_v34 = vshll.u32 %v5449_v8, 16  ;;  %v5465_v41 = vunpack.c.l.b16 %v849_v30 }
  0x7b   :  { %v632_v10 = vrot.slane %v630_v13, 4  ;;  %v635_v51 = vrot.slane %v633_v54, 5  ;;  %v641_v52 = vrot.slane %v639_v44, 5  ;;  %v6768_v30 = vrot.slane %v5137_v24, 5 }
  0x7c   :  { %v853_v62 = vrot.slane %v851_v17, 4  ;;  %v856_v14 = vrot.slane %v854_v5, 5  ;;  %v893_v19 = vpack.c.b16 %v5465_v41, %v5453_v4  ;;  %v862_v54 = vrot.slane %v860_v34, 5  ;;  %1512 = vmatpush.bf16.msrb.mxu1 %v4721_v23 }
  0x7d   :  { %v636_v27 = vor.u32 %v635_v51, %v632_v10  ;;  %v649_v17 = vsel %vm5470_vm11, %v4097_v28, %v648_v18  ;;  %v653_v5 = vsel %vm5470_vm11, %v4098_v56, %v6768_v30  ;;  %v4759_v56 = vld [vmem:[#allocation5 + $0x1b0] sm:$0xff]  ;;  %v4099_v23 = vrot.slane %v5218_v53, 9 }
  0x7e   :  { %v857_v13 = vor.u32 %v856_v14, %v853_v62  ;;  %1188 = vmatmul.bf16.gmra.mxu1 %v893_v19  ;;  %v748_v3 = vunpack.c.l.b16 %v649_v17  ;;  %v749_v10 = vunpack.c.l.b16 %v653_v5  ;;  %v4767_v18 = vld [vmem:[#allocation5 + $0x1f0] sm:$0xff]  ;;  %v4101_v19 = vrot.slane %v5316_v15, 9  ;;  %1759 = vmatpush.bf16.msra.mxu2 %v4759_v56  ;;  %v4757_v56 = vld [vmem:[#allocation5 + $0x1a0] sm:$0xff] }
  0x7f   :  { %v637_v61 = vrot.slane %v636_v27, 4  ;;  %v4775_v14 = vld [vmem:[#allocation5 + $0x230] sm:$0xff]  ;;  %v664_v27 = vrot.slane %v5318_v48, 5  ;;  %1808 = vmatpush.bf16.msra.mxu3 %v4767_v18  ;;  %v5508_v17 = vpack.c.b16 %v5272_v12, %v5185_v33  ;;  %v4758_v33 = vld [vmem:[#allocation5 + $0x1a8] sm:$0xff]  ;;  %v4765_v18 = vld [vmem:[#allocation5 + $0x1e0] sm:$0xff] }
  0x80   :  { %1464 = vmatmul.bf16.vlgmr.msrb.gmra.mxu0 %v732_v2  ;;  %v858_v51 = vrot.slane %v857_v13, 4  ;;  %v908_v28 = vpack.c.b16 %v748_v3, %v749_v10  ;;  %v668_v2 = vrot.slane %v5324_v16, 5  ;;  %v762_v13 = vpack.c.b16 %v749_v10, %v748_v3  ;;  %v4766_v12 = vld [vmem:[#allocation5 + $0x1e8] sm:$0xff] }
  0x81   :  { %v642_v44 = vsel %vm5171_vm8, %v637_v61, %v641_v52  ;;  %v4102_v52 = vrot.slane %v5322_v58, 9  ;;  %v656_v61 = vrot.slane %v5224_v63, 5  ;;  %1857 = vmatpush.bf16.msra.mxu0 %v4775_v14  ;;  %v4100_v58 = vrot.slane %v5228_v0, 9  ;;  %v4773_v14 = vld [vmem:[#allocation5 + $0x220] sm:$0xff] }
  0x82   :  { %v5486_v42 = vunpack.c.l.b16 %v642_v44  ;;  %v863_v34 = vsel %vm5171_vm8, %v858_v51, %v862_v54  ;;  %v665_v54 = vsel %vm5470_vm11, %v4101_v19, %v664_v27  ;;  %v660_v16 = vrot.slane %v5230_v1, 5  ;;  %1760 = vmatpush.bf16.msra.mxu2 %v4758_v33  ;;  %v4771_v33 = vld [vmem:[#allocation5 + $0x210] sm:$0xff] }
  0x83   :  { %v5490_v62 = vunpack.c.l.b16 %v863_v34  ;;  %v669_v15 = vsel %vm5470_vm11, %v4102_v52, %v668_v2  ;;  %v752_v48 = vunpack.c.l.b16 %v665_v54  ;;  %v657_v53 = vsel %vm5470_vm11, %v4099_v23, %v656_v61  ;;  %v4774_v34 = vld [vmem:[#allocation5 + $0x228] sm:$0xff]  ;;  %1809 = vmatpush.bf16.msra.mxu3 %v4766_v12  ;;  %v4756_v2 = vld [vmem:[#allocation5 + $0x198] sm:$0xff] }
  0x84   :  { %v753_v30 = vunpack.c.l.b16 %v669_v15  ;;  %v661_v63 = vsel %vm5470_vm11, %v4100_v58, %v660_v16  ;;  %v750_v51 = vunpack.c.l.b16 %v657_v53  ;;  %v702_v0 = vpack.c.b16 %v5110_v11, %v5108_v9  ;;  %v4772_v54 = vld [vmem:[#allocation5 + $0x218] sm:$0xff] }
  0x85   :  { %v897_v24 = vpack.c.b16 %v5490_v62, %v5486_v42  ;;  %v751_v44 = vunpack.c.l.b16 %v661_v63  ;;  %1858 = vmatpush.bf16.msra.mxu0 %v4774_v34  ;;  %v5529_v11 = vpack.c.b16 %v5208_v46, %v5108_v9  ;;  %v866_v19 = vrot.slane %v5416_v47, 5 }
  0x86   :  { %v910_v5 = vpack.c.b16 %v753_v30, %v752_v48  ;;  %1761 = vmatpush.bf16.msra.mxu2 %v4757_v56  ;;  %v5538_v9 = vpack.c.b16 %v5453_v4, %v5376_v7  ;;  %v5553_v7 = vpack.c.b16 %v5306_v40, %v5212_v49  ;;  %v4104_v40 = vrot.slane %v5145_v29, 9 }
  0x87   :  { %1208 = vmatmul.bf16.gmra.mxu3 %v897_v24  ;;  %v909_v1 = vpack.c.b16 %v751_v44, %v750_v51  ;;  %v5517_v10 = vpack.c.b16 %v752_v48, %v751_v44  ;;  %v5519_v24 = vpack.c.b16 %v750_v51, %v748_v3  ;;  %v4103_v3 = vrot.slane %v5406_v35, 9 }
  0x88   :  { %1810 = vmatpush.bf16.msra.mxu3 %v4765_v18  ;;  %v676_v15 = vrot.slane %v5150_v32, 5  ;;  %v4105_v48 = vrot.slane %v5156_v36, 9  ;;  %v680_v58 = vrot.slane %v5158_v37, 5  ;;  %v736_v16 = vpack.c.b16 %v5222_v60, %v5204_v45 }
  0x89   :  { %1859 = vmatpush.bf16.msra.mxu0 %v4773_v14  ;;  %v5583_v37 = vpack.c.b16 %v5400_v55, %v5308_v43  ;;  %v6769_v14 = vld [vmem:[#allocation21_spill] sm:$0xff]  ;;  %v6770_v43 = vld [vmem:[#allocation22_spill] sm:$0xff] }
  0x8a   :  { %1222 = vmatmul.bf16.vlgmr.msrb.gmra.mxu2 %v908_v28  ;;  %v5523_v28 = vpack.c.b16 %v5370_v22, %v5282_v39  ;;  %v672_v39 = vrot.slane %v5408_v38, 5  ;;  %v4111_v22 = vrot.slane %v5412_v26, 9 }
  0x8b   :  { %1762 = vmatpush.bf16.msra.mxu2 %v4756_v2 }
  0x8c   :  { %v673_v46 = vsel %vm5470_vm11, %v4103_v3, %v672_v39  ;;  %v5545_v27 = vsel %vm5470_vm11, %v4111_v22, %v866_v19  ;;  %v4106_v3 = vrot.slane %v6769_v14, 9  ;;  %v684_v39 = vrot.slane %v6770_v43, 5  ;;  %v6771_v22 = vld [vmem:[#allocation23_spill] sm:$0xff] }
  0x8d   :  { %v5548_v38 = vunpack.c.l.b16 %v673_v46  ;;  %v6726_v26 = vunpack.c.l.b16 %v5545_v27  ;;  %1860 = vmatpush.bf16.msra.mxu0 %v4772_v54  ;;  %v4107_v19 = vrot.slane %v6771_v22, 9  ;;  %v6772_v46 = vld [vmem:[#allocation24_spill] sm:$0xff] }
  0x8e   :  { %1513 = vmatmul.bf16.vlgmr.msrb.gmra.mxu1 %v762_v13  ;;  %v4764_v13 = vld [vmem:[#allocation5 + $0x1d8] sm:$0xff]  ;;  %v685_v54 = vsel %vm5470_vm11, %v4106_v3, %v684_v39  ;;  %v6778_v3 = vld [vmem:[#allocation31_spill] sm:$0xff]  ;;  %v6779_v39 = vld [vmem:[#allocation32_spill] sm:$0xff] }
  0x8f   :  { %v911_v47 = vpack.c.b16 %v6726_v26, %v5548_v38  ;;  %1811 = vmatpush.bf16.msra.mxu3 %v4764_v13  ;;  %v5564_v49 = vpack.c.b16 %v5548_v38, %v753_v30  ;;  %v681_v30 = vsel %vm5470_vm11, %v4105_v48, %v680_v58  ;;  %v6774_v58 = vld [vmem:[#allocation16_spill] sm:$0xff]  ;;  %v4109_v43 = vrot.slane %v6778_v3, 9 }
  0x90   :  { %1469 = vmatmul.bf16.gmra.mxu0 %v5508_v17  ;;  %v756_v36 = vunpack.c.l.b16 %v681_v30  ;;  %v696_v22 = vrot.slane %v6779_v39, 5  ;;  %v4110_v3 = vrot.slane %v5441_v21, 9  ;;  %v4112_v39 = vrot.slane %v5447_v57, 9 }
  0x91   :  { %1861 = vmatpush.bf16.msra.mxu0 %v4771_v33  ;;  %v6776_v33 = vld [vmem:[#allocation29_spill] sm:$0xff] }
  0x97   :  { %1415 = vmatmul.bf16.vlgmr.msrb.gmra.mxu3 %v702_v0  ;;  %v4755_v0 = vld [vmem:[#allocation5 + $0x190] sm:$0xff] }
  0x98   :  { %1763 = vmatpush.bf16.msra.mxu2 %v4755_v0  ;;  %v4770_v0 = vld [vmem:[#allocation5 + $0x208] sm:$0xff] }
  0x99   :  { %1862 = vmatpush.bf16.msra.mxu0 %v4770_v0  ;;  %v4753_v0 = vld [vmem:[#allocation5 + $0x180] sm:$0xff] }
  0x9a   :  { %1227 = vmatmul.bf16.gmra.mxu2 %v909_v1  ;;  %v4763_v1 = vld [vmem:[#allocation5 + $0x1d0] sm:$0xff] }
  0x9b   :  { %1812 = vmatpush.bf16.msra.mxu3 %v4763_v1 }
  0x9e   :  { %1518 = vmatmul.bf16.gmra.mxu1 %v5519_v24 }
  0xa0   :  { %1474 = vmatmul.bf16.gmra.mxu0 %v5523_v28 }
  0xa7   :  { %1420 = vmatmul.bf16.gmra.mxu3 %v5529_v11 }
  0xaa   :  { %1232 = vmatmul.bf16.gmra.mxu2 %v910_v5  ;;  %v677_v5 = vsel %vm5470_vm11, %v4104_v40, %v676_v15  ;;  %v757_v15 = vunpack.c.l.b16 %v685_v54 }
  0xab   :  { %v755_v63 = vunpack.c.l.b16 %v677_v5 }
  0xad   :  { %v912_v44 = vpack.c.b16 %v755_v63, %v756_v36  ;;  %v766_v56 = vpack.c.b16 %v756_v36, %v755_v63  ;;  %v5611_v1 = vpack.c.b16 %v757_v15, %v755_v63 }
  0xae   :  { %1523 = vmatmul.bf16.gmra.mxu1 %v5517_v10 }
  0xb0   :  { %1479 = vmatmul.bf16.gmra.mxu0 %v5538_v9 }
  0xb1   :  { %v1125_v35 = vpop.f32.mrf.mxu0 }
  0xb7   :  { %1425 = vmatmul.bf16.gmra.mxu3 %v5553_v7  ;;  %v1174_v52 = vpop.f32.mrf.mxu1  ;;  %v1145_v29 = vpop.f32.mrf.mxu2 }
  0xb8   :  { %v5559_v23 = vadd.f32 %v1174_v52, %v1125_v35  ;;  %v688_v35 = vrot.slane %v6772_v46, 5  ;;  %v6781_v46 = vld [vmem:[#allocation33_spill] sm:$0xff] }
  0xb9   :  { %v5561_v61 = vpop.f32.mrf.mxu0 }
  0xba   :  { %1237 = vmatmul.bf16.gmra.mxu2 %v911_v47  ;;  %v6773_v47 = vld [vmem:[#allocation25_spill] sm:$0xff]  ;;  %v689_v40 = vsel %vm5470_vm11, %v4107_v19, %v688_v35  ;;  %v6780_v19 = vld [vmem:[#allocation26_spill] sm:$0xff] }
  0xbb   :  { %v5596_v52 = vpack.c.b16 %v6773_v47, %v5204_v45  ;;  %v758_v48 = vunpack.c.l.b16 %v689_v40  ;;  %v5619_v35 = vpack.c.b16 %v6781_v46, %v6780_v19  ;;  %v697_v40 = vsel %vm5470_vm11, %v4109_v43, %v696_v22  ;;  %v6783_v19 = vld [vmem:[#allocation34_spill] sm:$0xff] }
  0xbc   :  { %v700_v43 = vrot.slane %v5443_v6, 5  ;;  %v870_v22 = vrot.slane %v5449_v8, 5  ;;  %v4769_v46 = vld [vmem:[#allocation5 + $0x200] sm:$0xff] }
  0xbd   :  { %v913_v30 = vpack.c.b16 %v758_v48, %v757_v15  ;;  %1863 = vmatpush.bf16.msra.mxu0 %v4769_v46 }
  0xbe   :  { %1528 = vmatmul.bf16.gmra.mxu1 %v5564_v49  ;;  %v701_v21 = vsel %vm5470_vm11, %v4110_v3, %v700_v43 }
  0xbf   :  { %v5577_v53 = vpop.f32.mrf.mxu1  ;;  %v5586_v34 = vpop.f32.mrf.mxu2  ;;  %v5664_v57 = vunpack.c.l.b16 %v701_v21 }
  0xc0   :  { %1484 = vmatmul.bf16.gmra.mxu0 %v736_v16  ;;  %v6775_v16 = vld [vmem:[#allocation17_spill] sm:$0xff] }
  0xc1   :  { %v1130_v60 = vpop.f32.mrf.mxu0  ;;  %v706_v5 = vpack.c.b16 %v6775_v16, %v6774_v58 }
  0xc2   :  { %v1194_v32 = vpop.f32.mrf.mxu3 }
  0xc3   :  { %v5579_v51 = vadd.f32 %v1194_v32, %v1145_v29 }
  0xc7   :  { %1430 = vmatmul.bf16.gmra.mxu3 %v5583_v37 }
  0xc8   :  { %v1150_v45 = vpop.f32.mrf.mxu2 }
  0xc9   :  { %v1179_v12 = vpop.f32.mrf.mxu1  ;;  %v5600_v13 = vpop.f32.mrf.mxu0 }
  0xca   :  { %1242 = vmatmul.bf16.gmra.mxu2 %v912_v44  ;;  %v5588_v18 = vadd.f32 %v1179_v12, %v1130_v60  ;;  %v5598_v2 = vpop.f32.mrf.mxu3  ;;  %v4754_v60 = vld [vmem:[#allocation5 + $0x188] sm:$0xff]  ;;  %v4108_v12 = vrot.slane %v6776_v33, 9  ;;  %v4761_v33 = vld [vmem:[#allocation5 + $0x1c0] sm:$0xff] }
  0xcb   :  { %v4762_v44 = vld [vmem:[#allocation5 + $0x1c8] sm:$0xff]  ;;  %1764 = vmatpush.bf16.msra.mxu2 %v4754_v60 }
  0xcc   :  { %1813 = vmatpush.bf16.msra.mxu3 %v4762_v44 }
  0xce   :  { %1533 = vmatmul.bf16.gmra.mxu1 %v766_v56  ;;  %v6777_v56 = vld [vmem:[#allocation30_spill] sm:$0xff] }
  0xcf   :  { %v692_v14 = vrot.slane %v6777_v56, 5  ;;  %1765 = vmatpush.bf16.msra.mxu2 %v4753_v0 }
  0xd0   :  { %1489 = vmatmul.bf16.gmra.mxu0 %v5596_v52  ;;  %v5623_v54 = vpop.f32.mrf.mxu2  ;;  %1814 = vmatpush.bf16.msra.mxu3 %v4761_v33 }
  0xd1   :  { %v5621_v47 = vpop.f32.mrf.mxu1  ;;  %v693_v63 = vsel %vm5470_vm11, %v4108_v12, %v692_v14 }
  0xd2   :  { %v759_v16 = vunpack.c.l.b16 %v693_v63 }
  0xd4   :  { %v5642_v14 = vpack.c.b16 %v759_v16, %v758_v48  ;;  %v5659_v48 = vsel %vm5470_vm11, %v4112_v39, %v870_v22  ;;  %v6786_v22 = vld [vmem:[#allocation28_spill] sm:$0xff] }
  0xd5   :  { %v1199_v29 = vpop.f32.mrf.mxu3  ;;  %v6725_v8 = vunpack.c.l.b16 %v5659_v48 }
  0xd6   :  { %v5609_v32 = vadd.f32 %v1199_v29, %v1150_v45  ;;  %v1135_v36 = vpop.f32.mrf.mxu0  ;;  %v6782_v45 = vld [vmem:[#allocation19_spill] sm:$0xff] }
  0xd7   :  { %1435 = vmatmul.bf16.gmra.mxu3 %v706_v5  ;;  %v760_v5 = vunpack.c.l.b16 %v697_v40  ;;  %v6784_v40 = vld [vmem:[#allocation20_spill] sm:$0xff]  ;;  %v915_v0 = vpack.c.b16 %v6725_v8, %v5664_v57 }
  0xd9   :  { %v914_v60 = vpack.c.b16 %v760_v5, %v759_v16  ;;  %v6785_v16 = vld [vmem:[#allocation27_spill] sm:$0xff]  ;;  %v5680_v3 = vpack.c.b16 %v5664_v57, %v760_v5 }
  0xda   :  { %1247 = vmatmul.bf16.gmra.mxu2 %v913_v30  ;;  %v5635_v30 = vpack.c.b16 %v6782_v45, %v6774_v58  ;;  %v5669_v45 = vpack.c.b16 %v6785_v16, %v6784_v40 }
  0xdd   :  { %v5637_v29 = vpop.f32.mrf.mxu3 }
  0xde   :  { %1538 = vmatmul.bf16.gmra.mxu1 %v5611_v1  ;;  %v5631_v15 = vpop.f32.mrf.mxu0 }
  0xe0   :  { %1494 = vmatmul.bf16.gmra.mxu0 %v5619_v35 }
  0xe1   :  { %v1155_v56 = vpop.f32.mrf.mxu2 }
  0xe6   :  { %v1184_v44 = vpop.f32.mrf.mxu1 }
  0xe7   :  { %1440 = vmatmul.bf16.gmra.mxu3 %v5635_v30  ;;  %v5640_v12 = vadd.f32 %v1184_v44, %v1135_v36  ;;  %v5652_v36 = vpack.c.b16 %v5486_v42, %v6783_v19  ;;  %v5686_v19 = vpack.c.b16 %v5433_v25, %v6786_v22 }
  0xea   :  { %1252 = vmatmul.bf16.gmra.mxu2 %v914_v60  ;;  %v1157_v60 = vpop.f32.mrf.mxu2 }
  0xed   :  { %v5645_v58 = vpop.f32.mrf.mxu0 }
  0xee   :  { %v1204_v63 = vpop.f32.mrf.mxu3  ;;  %1543 = vmatmul.bf16.gmra.mxu1 %v5642_v14 }
  0xef   :  { %v5662_v6 = vadd.f32 %v1204_v63, %v1155_v56 }
  0xf0   :  { %1499 = vmatmul.bf16.gmra.mxu0 %v5652_v36 }
  0xf5   :  { %v5671_v44 = vpop.f32.mrf.mxu0 }
  0xf6   :  { %v1206_v33 = vpop.f32.mrf.mxu3 }
  0xf7   :  { %1445 = vmatmul.bf16.gmra.mxu3 %v5669_v45  ;;  %v5677_v56 = vadd.f32 %v1206_v33, %v1157_v60  ;;  %v1177_v33 = vadd.f32 %v5577_v53, %v5561_v61  ;;  %v1182_v61 = vadd.f32 %v5621_v47, %v5600_v13 }
  0xfa   :  { %1257 = vmatmul.bf16.gmra.mxu2 %v915_v0 }
  0xfd   :  { %v1465_v43 = vpop.f32.mrf.mxu0  ;;  %v1160_v39 = vpop.f32.mrf.mxu2 }
  0xfe   :  { %1548 = vmatmul.bf16.gmra.mxu1 %v5680_v3 }
 0x100   :  { %1864 = vmatmul.bf16.vlgmr.msra.gmra.mxu0 %v5519_v24 }
 0x105   :  { %v1467_v46 = vpop.f32.mrf.mxu0  ;;  %v1162_v63 = vpop.f32.mrf.mxu2 }
 0x107   :  { %1450 = vmatmul.bf16.gmra.mxu3 %v5686_v19 }
 0x10a   :  { %v1209_v21 = vpop.f32.mrf.mxu3  ;;  %1766 = vmatmul.bf16.vlgmr.msra.gmra.mxu2 %v5529_v11 }
 0x10b   :  { %v5690_v40 = vadd.f32 %v1209_v21, %v1160_v39 }
 0x10d   :  { %v1470_v5 = vpop.f32.mrf.mxu0  ;;  %v1223_v16 = vpop.f32.mrf.mxu2 }
 0x10e   :  { %v1224_v60 = vadd.f32 %v1223_v16, %v5559_v23 }
 0x110   :  { %1869 = vmatmul.bf16.gmra.mxu0 %v5517_v10 }
 0x112   :  { %v1211_v24 = vpop.f32.mrf.mxu3 }
 0x113   :  { %v5694_v0 = vadd.f32 %v1211_v24, %v1162_v63 }
 0x115   :  { %v1472_v22 = vpop.f32.mrf.mxu0  ;;  %v1225_v8 = vpop.f32.mrf.mxu2 }
 0x116   :  { %v1226_v26 = vadd.f32 %v1225_v8, %v1177_v33 }
 0x117   :  { %1815 = vmatmul.bf16.vlgmr.msra.gmra.mxu3 %v5508_v17 }
 0x11a   :  { %v1416_v11 = vpop.f32.mrf.mxu3  ;;  %1771 = vmatmul.bf16.gmra.mxu2 %v5553_v7 }
 0x11b   :  { %v1417_v39 = vadd.f32 %v1416_v11, %v1224_v60 }
 0x11d   :  { %v1475_v21 = vpop.f32.mrf.mxu0  ;;  %v5700_v59 = vadd.f32 %v1465_v43, %v1417_v39  ;;  %v1228_v23 = vpop.f32.mrf.mxu2 }
 0x11e   :  { %v1229_v10 = vadd.f32 %v1228_v23, %v5588_v18  ;;  %v6787_v18 = vunpack.c.l.b16 %v5545_v27  ;;  %v6788_v27 = vld [vmem:[#allocation35_spill] sm:$0xff] }
 0x120   :  { %1874 = vmatmul.bf16.gmra.mxu0 %v5564_v49  ;;  %v1562_v49 = vpack.c.b16 %v5548_v38, %v6787_v18  ;;  %v1554_v38 = vpack.c.b16 %v5400_v55, %v6788_v27  ;;  %v1558_v55 = vpack.c.b16 %v5453_v4, %v5465_v41 }
 0x122   :  { %v1418_v63 = vpop.f32.mrf.mxu3 }
 0x123   :  { %v1419_v16 = vadd.f32 %v1418_v63, %v1226_v26  ;;  %v1186_v26 = vpop.f32.mrf.mxu1 }
 0x125   :  { %v1477_v53 = vpop.f32.mrf.mxu0  ;;  %v5706_v8 = vadd.f32 %v1467_v46, %v1419_v16  ;;  %v1230_v17 = vpop.f32.mrf.mxu2 }
 0x126   :  { %v1231_v24 = vadd.f32 %v1230_v17, %v1182_v61 }
 0x127   :  { %1820 = vmatmul.bf16.gmra.mxu3 %v5523_v28  ;;  %v1187_v28 = vadd.f32 %v1186_v26, %v5631_v15 }
 0x12a   :  { %v1421_v7 = vpop.f32.mrf.mxu3  ;;  %1776 = vmatmul.bf16.gmra.mxu2 %v5583_v37 }
 0x12b   :  { %v1422_v43 = vadd.f32 %v1421_v7, %v1229_v10  ;;  %v1189_v63 = vpop.f32.mrf.mxu1 }
 0x12d   :  { %v1480_v60 = vpop.f32.mrf.mxu0  ;;  %v5713_v33 = vadd.f32 %v1470_v5, %v1422_v43  ;;  %v1233_v13 = vpop.f32.mrf.mxu2 }
 0x12e   :  { %v1234_v47 = vadd.f32 %v1233_v13, %v5640_v12  ;;  %v1190_v12 = vadd.f32 %v1189_v63, %v5645_v58  ;;  %v6789_v63 = vunpack.c.l.b16 %v5659_v48 }
 0x130   :  { %1879 = vmatmul.bf16.gmra.mxu0 %v1562_v49 }
 0x132   :  { %v1423_v46 = vpop.f32.mrf.mxu3 }
 0x133   :  { %v1424_v11 = vadd.f32 %v1423_v46, %v1231_v24 }
 0x135   :  { %v1482_v39 = vpop.f32.mrf.mxu0  ;;  %v5717_v23 = vadd.f32 %v1472_v22, %v1424_v11  ;;  %v1235_v37 = vpop.f32.mrf.mxu2 }
 0x136   :  { %v1236_v10 = vadd.f32 %v1235_v37, %v1187_v28  ;;  %v1191_v22 = vpop.f32.mrf.mxu1 }
 0x137   :  { %1825 = vmatmul.bf16.gmra.mxu3 %v5538_v9  ;;  %v1192_v9 = vadd.f32 %v1191_v22, %v5671_v44 }
 0x13a   :  { %v1426_v5 = vpop.f32.mrf.mxu3  ;;  %1781 = vmatmul.bf16.gmra.mxu2 %v1554_v38 }
 0x13b   :  { %v1427_v16 = vadd.f32 %v1426_v5, %v1234_v47  ;;  %v1563_v5 = vpack.c.b16 %v5664_v57, %v6789_v63 }
 0x13d   :  { %v1485_v61 = vpop.f32.mrf.mxu0  ;;  %v5723_v17 = vadd.f32 %v1475_v21, %v1427_v16  ;;  %v1238_v15 = vpop.f32.mrf.mxu2 }
 0x13e   :  { %v1239_v24 = vadd.f32 %v1238_v15, %v1190_v12 }
 0x140   :  { %1884 = vmatmul.bf16.gmra.mxu0 %v5611_v1 }
 0x142   :  { %v1428_v7 = vpop.f32.mrf.mxu3 }
 0x143   :  { %v1429_v43 = vadd.f32 %v1428_v7, %v1236_v10 }
 0x145   :  { %v5729_v18 = vpop.f32.mrf.mxu0  ;;  %v5731_v49 = vadd.f32 %v1477_v53, %v1429_v43  ;;  %v1240_v58 = vpop.f32.mrf.mxu2 }
 0x146   :  { %v1241_v26 = vadd.f32 %v1240_v58, %v1192_v9  ;;  %v1559_v9 = vpack.c.b16 %v5486_v42, %v5490_v62 }
 0x147   :  { %1830 = vmatmul.bf16.gmra.mxu3 %v1558_v55 }
 0x14a   :  { %v1431_v21 = vpop.f32.mrf.mxu3  ;;  %1786 = vmatmul.bf16.gmra.mxu2 %v5635_v30 }
 0x14b   :  { %v1432_v13 = vadd.f32 %v1431_v21, %v1239_v24  ;;  %v1514_v24 = vpop.f32.mrf.mxu1 }
 0x14d   :  { %v1490_v1 = vpop.f32.mrf.mxu0  ;;  %v5734_v47 = vadd.f32 %v1480_v60, %v1432_v13  ;;  %v1243_v46 = vpop.f32.mrf.mxu2 }
 0x14e   :  { %v1244_v11 = vadd.f32 %v1243_v46, %v5579_v51 }
 0x150   :  { %1889 = vmatmul.bf16.gmra.mxu0 %v5642_v14 }
 0x152   :  { %v1433_v4 = vpop.f32.mrf.mxu3 }
 0x153   :  { %v1434_v41 = vadd.f32 %v1433_v4, %v1241_v26  ;;  %v4808_v4 = vld [vmem:[#allocation7 + $0xf8] sm:$0xff] }
 0x154   :  { %3092 = vmatpush.bf16.msra.mxu1 %v4808_v4 }
 0x155   :  { %v5738_v44 = vpop.f32.mrf.mxu0  ;;  %v5740_v53 = vadd.f32 %v1482_v39, %v1434_v41  ;;  %v5742_v28 = vpop.f32.mrf.mxu2 }
 0x157   :  { %1835 = vmatmul.bf16.gmra.mxu3 %v5596_v52 }
 0x15a   :  { %v1436_v30 = vpop.f32.mrf.mxu3  ;;  %1791 = vmatmul.bf16.gmra.mxu2 %v5669_v45 }
 0x15b   :  { %v1437_v60 = vadd.f32 %v1436_v30, %v1244_v11 }
 0x15d   :  { %v1495_v37 = vpop.f32.mrf.mxu0  ;;  %v5746_v10 = vadd.f32 %v1485_v61, %v1437_v60  ;;  %v1248_v51 = vpop.f32.mrf.mxu2 }
 0x15e   :  { %v1249_v14 = vadd.f32 %v1248_v51, %v5609_v32 }
 0x160   :  { %1894 = vmatmul.bf16.gmra.mxu0 %v5680_v3 }
 0x162   :  { %v5750_v27 = vpop.f32.mrf.mxu3 }
 0x165   :  { %v5752_v39 = vpop.f32.mrf.mxu0  ;;  %v5754_v38 = vpop.f32.mrf.mxu2 }
 0x167   :  { %1840 = vmatmul.bf16.gmra.mxu3 %v5619_v35 }
 0x16a   :  { %v1441_v52 = vpop.f32.mrf.mxu3  ;;  %1796 = vmatmul.bf16.gmra.mxu2 %v5686_v19  ;;  %v1555_v19 = vpack.c.b16 %v5433_v25, %v5435_v31  ;;  %v1516_v25 = vpop.f32.mrf.mxu1 }
 0x16b   :  { %v1442_v45 = vadd.f32 %v1441_v52, %v1249_v14  ;;  %v1517_v63 = vadd.f32 %v1516_v25, %v5706_v8 }
 0x16d   :  { %v1500_v16 = vpop.f32.mrf.mxu0  ;;  %v5761_v32 = vadd.f32 %v1490_v1, %v1442_v45  ;;  %v1253_v3 = vpop.f32.mrf.mxu2  ;;  %v1515_v45 = vadd.f32 %v1514_v24, %v5700_v59 }
 0x16e   :  { %v1254_v12 = vadd.f32 %v1253_v3, %v5662_v6 }
 0x170   :  { %1899 = vmatmul.bf16.gmra.mxu0 %v1563_v5 }
 0x172   :  { %v5764_v61 = vpop.f32.mrf.mxu3  ;;  %v1519_v1 = vpop.f32.mrf.mxu1 }
 0x175   :  { %v5766_v15 = vpop.f32.mrf.mxu0  ;;  %v5768_v35 = vpop.f32.mrf.mxu2 }
 0x177   :  { %1845 = vmatmul.bf16.gmra.mxu3 %v5652_v36 }
 0x17a   :  { %v1446_v48 = vpop.f32.mrf.mxu3  ;;  %1801 = vmatmul.bf16.gmra.mxu2 %v1555_v19  ;;  %v1521_v41 = vpop.f32.mrf.mxu1 }
 0x17b   :  { %v1447_v57 = vadd.f32 %v1446_v48, %v1254_v12 }
 0x17d   :  { %v5773_v22 = vadd.f32 %v1495_v37, %v1447_v57  ;;  %v1258_v7 = vpop.f32.mrf.mxu2  ;;  %v1865_v43 = vpop.f32.mrf.mxu0  ;;  %v4807_v57 = vld [vmem:[#allocation7 + $0xf0] sm:$0xff] }
 0x17e   :  { %v1259_v6 = vadd.f32 %v1258_v7, %v5690_v40  ;;  %3093 = vmatpush.bf16.msra.mxu1 %v4807_v57 }
 0x182   :  { %v5776_v55 = vpop.f32.mrf.mxu3  ;;  %v1524_v52 = vpop.f32.mrf.mxu1 }
 0x185   :  { %v5780_v58 = vpop.f32.mrf.mxu2  ;;  %v1867_v31 = vpop.f32.mrf.mxu0 }
 0x187   :  { %1850 = vmatmul.bf16.gmra.mxu3 %v1559_v9 }
 0x18a   :  { %v1451_v36 = vpop.f32.mrf.mxu3  ;;  %v1526_v24 = vpop.f32.mrf.mxu1 }
 0x18b   :  { %v1452_v26 = vadd.f32 %v1451_v36, %v1259_v6 }
 0x18d   :  { %v5782_v21 = vadd.f32 %v1500_v16, %v1452_v26  ;;  %v1767_v13 = vpop.f32.mrf.mxu2  ;;  %v1870_v40 = vpop.f32.mrf.mxu0 }
 0x192   :  { %v5784_v46 = vpop.f32.mrf.mxu3 }
 0x195   :  { %v1769_v11 = vpop.f32.mrf.mxu2  ;;  %v1872_v42 = vpop.f32.mrf.mxu0 }
 0x19a   :  { %v1816_v30 = vpop.f32.mrf.mxu3 }
 0x19b   :  { %v1817_v60 = vadd.f32 %v1816_v30, %v1767_v13  ;;  %v1522_v13 = vadd.f32 %v1521_v41, %v5717_v23  ;;  %v1527_v41 = vadd.f32 %v1526_v24, %v5731_v49 }
 0x19d   :  { %v1772_v62 = vpop.f32.mrf.mxu2  ;;  %v1866_v51 = vadd.f32 %v1865_v43, %v1817_v60  ;;  %v1875_v3 = vpop.f32.mrf.mxu0  ;;  %v1520_v43 = vadd.f32 %v1519_v1, %v5713_v33 }
 0x19f   :  { %v5788_v12 = vadd.f32 %v1866_v51, %v1515_v45 }
 0x1a2   :  { %v1818_v37 = vpop.f32.mrf.mxu3 }
 0x1a3   :  { %v1819_v14 = vadd.f32 %v1818_v37, %v1769_v11  ;;  %v1525_v37 = vadd.f32 %v1524_v52, %v5723_v17 }
 0x1a5   :  { %v1868_v5 = vadd.f32 %v1867_v31, %v1819_v14  ;;  %v1774_v16 = vpop.f32.mrf.mxu2  ;;  %v1877_v25 = vpop.f32.mrf.mxu0 }
 0x1a7   :  { %v5790_v19 = vadd.f32 %v1868_v5, %v1517_v63 }
 0x1a9   :  { %v1921_v48 = vadd.f32 %v5790_v19, %v5788_v12 }
 0x1aa   :  { %v1821_v7 = vpop.f32.mrf.mxu3 }
 0x1ab   :  { %v1822_v6 = vadd.f32 %v1821_v7, %v1772_v62  ;;  %v1529_v62 = vpop.f32.mrf.mxu1 }
 0x1ad   :  { %v1871_v9 = vadd.f32 %v1870_v40, %v1822_v6  ;;  %v1777_v59 = vpop.f32.mrf.mxu2  ;;  %v1880_v1 = vpop.f32.mrf.mxu0 }
 0x1af   :  { %v5795_v8 = vadd.f32 %v1871_v9, %v1520_v43 }
 0x1b1   :  { %v1922_v31 = vadd.f32 %v1921_v48, %v5795_v8 }
 0x1b2   :  { %v1823_v36 = vpop.f32.mrf.mxu3 }
 0x1b3   :  { %v1824_v26 = vadd.f32 %v1823_v36, %v1774_v16  ;;  %v1531_v5 = vpop.f32.mrf.mxu1 }
 0x1b5   :  { %v1873_v11 = vadd.f32 %v1872_v42, %v1824_v26  ;;  %v1779_v4 = vpop.f32.mrf.mxu2  ;;  %v1882_v23 = vpop.f32.mrf.mxu0 }
 0x1b7   :  { %v5799_v30 = vadd.f32 %v1873_v11, %v1522_v13 }
 0x1b9   :  { %v1923_v60 = vadd.f32 %v1922_v31, %v5799_v30 }
 0x1ba   :  { %v1826_v33 = vpop.f32.mrf.mxu3 }
 0x1bb   :  { %v1827_v40 = vadd.f32 %v1826_v33, %v1777_v59  ;;  %v1534_v31 = vpop.f32.mrf.mxu1  ;;  %v1530_v59 = vadd.f32 %v1529_v62, %v5734_v47  ;;  %v1197_v33 = vadd.f32 %v5598_v2, %v5586_v34 }
 0x1bd   :  { %v1876_v51 = vadd.f32 %v1875_v3, %v1827_v40  ;;  %v1782_v14 = vpop.f32.mrf.mxu2  ;;  %v1885_v3 = vpop.f32.mrf.mxu0  ;;  %v1246_v47 = vadd.f32 %v5742_v28, %v1197_v33  ;;  %v1202_v28 = vadd.f32 %v5637_v29, %v5623_v54 }
 0x1bf   :  { %v1909_v45 = vadd.f32 %v1876_v51, %v1525_v37 }
 0x1c1   :  { %v1924_v63 = vadd.f32 %v1923_v60, %v1909_v45 }
 0x1c2   :  { %v1828_v16 = vpop.f32.mrf.mxu3 }
 0x1c3   :  { %v1829_v48 = vadd.f32 %v1828_v16, %v1779_v4  ;;  %v1532_v4 = vadd.f32 %v1531_v5, %v5740_v53  ;;  %v1536_v24 = vpop.f32.mrf.mxu1 }
 0x1c5   :  { %v1878_v42 = vadd.f32 %v1877_v25, %v1829_v48  ;;  %v1784_v57 = vpop.f32.mrf.mxu2  ;;  %v1887_v40 = vpop.f32.mrf.mxu0 }
 0x1c7   :  { %v1910_v7 = vadd.f32 %v1878_v42, %v1527_v41 }
 0x1c9   :  { %v1925_v6 = vadd.f32 %v1924_v63, %v1910_v7 }
 0x1ca   :  { %v1831_v43 = vpop.f32.mrf.mxu3 }
 0x1cb   :  { %v1832_v9 = vadd.f32 %v1831_v43, %v1782_v14  ;;  %v1439_v14 = vadd.f32 %v5750_v27, %v1246_v47  ;;  %v1539_v48 = vpop.f32.mrf.mxu1  ;;  %v1535_v27 = vadd.f32 %v1534_v31, %v5746_v10 }
 0x1cd   :  { %v1881_v17 = vadd.f32 %v1880_v1, %v1832_v9  ;;  %v1787_v52 = vpop.f32.mrf.mxu2  ;;  %v1488_v5 = vadd.f32 %v5729_v18, %v1439_v14  ;;  %v1890_v41 = vpop.f32.mrf.mxu0 }
 0x1cf   :  { %v1911_v36 = vadd.f32 %v1881_v17, %v1530_v59  ;;  %v1537_v43 = vadd.f32 %v1536_v24, %v1488_v5  ;;  %v1251_v17 = vadd.f32 %v5754_v38, %v1202_v28  ;;  %v1540_v24 = vadd.f32 %v1539_v48, %v5761_v32 }
 0x1d1   :  { %v1926_v26 = vadd.f32 %v1925_v6, %v1911_v36 }
 0x1d2   :  { %v1833_v13 = vpop.f32.mrf.mxu3 }
 0x1d3   :  { %v1834_v11 = vadd.f32 %v1833_v13, %v1784_v57  ;;  %v1541_v29 = vpop.f32.mrf.mxu1 }
 0x1d5   :  { %v1883_v60 = vadd.f32 %v1882_v23, %v1834_v11  ;;  %v1789_v49 = vpop.f32.mrf.mxu2 }
 0x1d7   :  { %v1912_v25 = vadd.f32 %v1883_v60, %v1532_v4  ;;  %v1892_v60 = vpop.f32.mrf.mxu0 }
 0x1d9   :  { %v1927_v37 = vadd.f32 %v1926_v26, %v1912_v25 }
 0x1da   :  { %v1836_v62 = vpop.f32.mrf.mxu3 }
 0x1db   :  { %v1928_v1 = vrot.slane %v1927_v37, 4  ;;  %v1837_v57 = vadd.f32 %v1836_v62, %v1787_v52  ;;  %v1544_v48 = vpop.f32.mrf.mxu1 }
 0x1dd   :  { %v1929_v51 = vadd.f32 %v1928_v1, %v1927_v37  ;;  %v1792_v63 = vpop.f32.mrf.mxu2  ;;  %v1886_v59 = vadd.f32 %v1885_v3, %v1837_v57 }
 0x1df   :  { %v1930_v16 = vrot.slane %v1929_v51, 2  ;;  %v5841_v4 = vadd.f32 %v1886_v59, %v1535_v27 }
 0x1e1   :  { %v1931_v53 = vadd.f32 %v1930_v16, %v1929_v51 }
 0x1e2   :  { %v1838_v23 = vpop.f32.mrf.mxu3 }
 0x1e3   :  { %v1932_v42 = vrot.slane %v1931_v53, 1  ;;  %v1839_v34 = vadd.f32 %v1838_v23, %v1789_v49 }
 0x1e5   :  { %v1933_v2 = vadd.f32 %v1932_v42, %v1931_v53  ;;  %v1888_v6 = vadd.f32 %v1887_v40, %v1839_v34  ;;  %v1794_v18 = vpop.f32.mrf.mxu2 }
 0x1e7   :  { %v1947_v9 = vmul.f32 0.015625, %v1933_v2  ;;  %v5815_v26 = vadd.f32 %v1888_v6, %v1537_v43  ;;  %v1256_v2 = vadd.f32 %v5768_v35, %v5677_v56  ;;  %v4783_v35 = vld [vmem:[#allocation7 + $0x30] sm:$0xff] }
 0x1e9   :  { %v5818_v13 = vsub.f32 %v5788_v12, %v1947_v9  ;;  %v5821_v52 = vsub.f32 %v5790_v19, %v1947_v9  ;;  %v5824_v11 = vsub.f32 %v5795_v8, %v1947_v9  ;;  %v5827_v54 = vsub.f32 %v5799_v30, %v1947_v9 }
 0x1ea   :  { %v5829_v3 = vsub.f32 %v1909_v45, %v1947_v9  ;;  %v5831_v10 = vsub.f32 %v1910_v7, %v1947_v9  ;;  %v5833_v38 = vsub.f32 %v1911_v36, %v1947_v9  ;;  %v5835_v31 = vsub.f32 %v1912_v25, %v1947_v9  ;;  %v1841_v12 = vpop.f32.mrf.mxu3 }
 0x1eb   :  { %v1965_v19 = vmul.f32 %v5818_v13, %v5818_v13  ;;  %v1966_v8 = vmul.f32 %v5821_v52, %v5821_v52  ;;  %v1444_v30 = vadd.f32 %v5764_v61, %v1251_v17  ;;  %v1967_v45 = vmul.f32 %v5824_v11, %v5824_v11  ;;  %v4784_v17 = vld [vmem:[#allocation7 + $0x38] sm:$0xff] }
 0x1ec   :  { %v1934_v36 = vadd.f32 %v5815_v26, %v5841_v4  ;;  %v1842_v49 = vadd.f32 %v1841_v12, %v1792_v63  ;;  %v1968_v25 = vmul.f32 %v5827_v54, %v5827_v54  ;;  %v1969_v61 = vmul.f32 %v5829_v3, %v5829_v3  ;;  %3383 = vmatpush.bf16.msrb.mxu0 %v4784_v17  ;;  %v4779_v17 = vld [vmem:[#allocation7 + $0x10] sm:$0xff] }
 0x1ed   :  { %v1981_v7 = vadd.f32 %v1966_v8, %v1965_v19  ;;  %v1493_v37 = vadd.f32 %v5738_v44, %v1444_v30  ;;  %v1797_v51 = vpop.f32.mrf.mxu2  ;;  %v1970_v14 = vmul.f32 %v5831_v10, %v5831_v10  ;;  %v1971_v44 = vmul.f32 %v5833_v38, %v5833_v38  ;;  %v1546_v8 = vpop.f32.mrf.mxu1 }
 0x1ee   :  { %v1891_v40 = vadd.f32 %v1890_v41, %v1842_v49  ;;  %v1895_v41 = vpop.f32.mrf.mxu0  ;;  %v1972_v42 = vmul.f32 %v5835_v31, %v5835_v31 }
 0x1ef   :  { %v1982_v33 = vadd.f32 %v1981_v7, %v1967_v45  ;;  %v1542_v53 = vadd.f32 %v1541_v29, %v1493_v37  ;;  %v1449_v29 = vadd.f32 %v5776_v55, %v1256_v2  ;;  %v4780_v2 = vld [vmem:[#allocation7 + $0x18] sm:$0xff] }
 0x1f0   :  { %v5854_v62 = vadd.f32 %v1891_v40, %v1540_v24  ;;  %3384 = vmatpush.bf16.msrb.mxu0 %v4783_v35 }
 0x1f1   :  { %v1983_v47 = vadd.f32 %v1982_v33, %v1968_v25  ;;  %v1498_v45 = vadd.f32 %v5752_v39, %v1449_v29  ;;  %v4824_v25 = vld [vmem:[#allocation7 + $0x178] sm:$0xff]  ;;  %v4782_v33 = vld [vmem:[#allocation7 + $0x28] sm:$0xff]  ;;  %v4823_v39 = vld [vmem:[#allocation7 + $0x170] sm:$0xff] }
 0x1f2   :  { %v1843_v1 = vpop.f32.mrf.mxu3  ;;  %v1935_v32 = vadd.f32 %v1934_v36, %v5854_v62  ;;  %v4806_v36 = vld [vmem:[#allocation7 + $0xe8] sm:$0xff]  ;;  %3190 = vmatpush.bf16.msrb.mxu3 %v4824_v25  ;;  %v4819_v25 = vld [vmem:[#allocation7 + $0x150] sm:$0xff] }
 0x1f3   :  { %v1984_v63 = vadd.f32 %v1983_v47, %v1969_v61  ;;  %v1844_v16 = vadd.f32 %v1843_v1, %v1794_v18  ;;  %v1545_v18 = vadd.f32 %v1544_v48, %v5773_v22  ;;  %3094 = vmatpush.bf16.msra.mxu1 %v4806_v36  ;;  %v1547_v40 = vadd.f32 %v1546_v8, %v1498_v45  ;;  %v4778_v36 = vld [vmem:[#allocation7 + $0x8] sm:$0xff] }
 0x1f4   :  { %3385 = vmatpush.bf16.msrb.mxu0 %v4782_v33 }
 0x1f5   :  { %v1985_v5 = vadd.f32 %v1984_v63, %v1970_v14  ;;  %v1893_v23 = vadd.f32 %v1892_v60, %v1844_v16  ;;  %v1799_v27 = vpop.f32.mrf.mxu2  ;;  %v1549_v14 = vpop.f32.mrf.mxu1  ;;  %v4805_v63 = vld [vmem:[#allocation7 + $0xe0] sm:$0xff]  ;;  %v1261_v16 = vadd.f32 %v5780_v58, %v5694_v0 }
 0x1f6   :  { %v1897_v56 = vpop.f32.mrf.mxu0  ;;  %3191 = vmatpush.bf16.msrb.mxu3 %v4823_v39 }
 0x1f7   :  { %v1986_v57 = vadd.f32 %v1985_v5, %v1971_v44  ;;  %v5863_v34 = vadd.f32 %v1893_v23, %v1542_v53  ;;  %v4816_v44 = vld [vmem:[#allocation7 + $0x138] sm:$0xff]  ;;  %3095 = vmatpush.bf16.msra.mxu1 %v4805_v63  ;;  %v1454_v0 = vadd.f32 %v5784_v46, %v1261_v16 }
 0x1f8   :  { %3141 = vmatpush.bf16.msrb.mxu2 %v4816_v44  ;;  %v4811_v44 = vld [vmem:[#allocation7 + $0x110] sm:$0xff] }
 0x1f9   :  { %v1987_v6 = vadd.f32 %v1986_v57, %v1972_v42  ;;  %v1936_v28 = vadd.f32 %v1935_v32, %v5863_v34  ;;  %v4781_v32 = vld [vmem:[#allocation7 + $0x20] sm:$0xff]  ;;  %v4822_v42 = vld [vmem:[#allocation7 + $0x168] sm:$0xff]  ;;  %v4804_v57 = vld [vmem:[#allocation7 + $0xd8] sm:$0xff]  ;;  %v1503_v29 = vadd.f32 %v5766_v15, %v1454_v0 }
 0x1fa   :  { %v1846_v43 = vpop.f32.mrf.mxu3  ;;  %3386 = vmatpush.bf16.msrb.mxu0 %v4781_v32  ;;  %3192 = vmatpush.bf16.msrb.mxu3 %v4822_v42  ;;  %v4813_v15 = vld [vmem:[#allocation7 + $0x120] sm:$0xff]  ;;  %v4818_v32 = vld [vmem:[#allocation7 + $0x148] sm:$0xff] }
 0x1fb   :  { %v1988_v9 = vrot.slane %v1987_v6, 4  ;;  %v1847_v59 = vadd.f32 %v1846_v43, %v1797_v51  ;;  %3096 = vmatpush.bf16.msra.mxu1 %v4804_v57  ;;  %v4817_v42 = vld [vmem:[#allocation7 + $0x140] sm:$0xff] }
 0x1fd   :  { %v1989_v12 = vadd.f32 %v1988_v9, %v1987_v6  ;;  %v1896_v19 = vadd.f32 %v1895_v41, %v1847_v59  ;;  %v1802_v47 = vpop.f32.mrf.mxu2  ;;  %v1550_v6 = vadd.f32 %v1549_v14, %v5782_v21  ;;  %v4821_v9 = vld [vmem:[#allocation7 + $0x160] sm:$0xff]  ;;  %v4803_v59 = vld [vmem:[#allocation7 + $0xd0] sm:$0xff]  ;;  %v4814_v21 = vld [vmem:[#allocation7 + $0x128] sm:$0xff]  ;;  %v1551_v46 = vpop.f32.mrf.mxu1 }
 0x1fe   :  { %v1900_v5 = vpop.f32.mrf.mxu0  ;;  %3387 = vmatpush.bf16.msrb.mxu0 %v4780_v2  ;;  %3193 = vmatpush.bf16.msrb.mxu3 %v4821_v9 }
 0x1ff   :  { %v1990_v30 = vrot.slane %v1989_v12, 2  ;;  %v5870_v60 = vadd.f32 %v1896_v19, %v1545_v18  ;;  %3097 = vmatpush.bf16.msra.mxu1 %v4803_v59 }
 0x201   :  { %v1991_v7 = vadd.f32 %v1990_v30, %v1989_v12  ;;  %v1937_v49 = vadd.f32 %v1936_v28, %v5870_v60  ;;  %v4815_v28 = vld [vmem:[#allocation7 + $0x130] sm:$0xff] }
 0x202   :  { %v1848_v24 = vpop.f32.mrf.mxu3  ;;  %3142 = vmatpush.bf16.msrb.mxu2 %v4815_v28  ;;  %3388 = vmatpush.bf16.msrb.mxu0 %v4779_v17  ;;  %v4810_v28 = vld [vmem:[#allocation7 + $0x108] sm:$0xff] }
 0x203   :  { %v1992_v22 = vrot.slane %v1991_v7, 1  ;;  %v1849_v55 = vadd.f32 %v1848_v24, %v1799_v27 }
 0x205   :  { %v1993_v37 = vadd.f32 %v1992_v22, %v1991_v7  ;;  %v1898_v61 = vadd.f32 %v1897_v56, %v1849_v55  ;;  %v1804_v27 = vpop.f32.mrf.mxu2  ;;  %v4820_v56 = vld [vmem:[#allocation7 + $0x158] sm:$0xff]  ;;  %v4802_v7 = vld [vmem:[#allocation7 + $0xc8] sm:$0xff] }
 0x206   :  { %3143 = vmatpush.bf16.msrb.mxu2 %v4814_v21  ;;  %v1902_v45 = vpop.f32.mrf.mxu0  ;;  %3194 = vmatpush.bf16.msrb.mxu3 %v4820_v56 }
 0x207   :  { %v2007_v1 = vmul.f32 0.015625, %v1993_v37  ;;  %v5874_v51 = vadd.f32 %v1898_v61, %v1547_v40  ;;  %3098 = vmatpush.bf16.msra.mxu1 %v4802_v7  ;;  %3389 = vmatpush.bf16.msrb.mxu0 %v4778_v36  ;;  %v4801_v40 = vld [vmem:[#allocation7 + $0xc0] sm:$0xff] }
 0x208   :  { %v4777_v37 = vld [vmem:[#allocation7] sm:$0xff] }
 0x209   :  { %v5878_v48 = vadd.f32 1e-05, %v2007_v1  ;;  %v1938_v53 = vadd.f32 %v1937_v49, %v5874_v51  ;;  %v1552_v49 = vadd.f32 %v1551_v46, %v1503_v29  ;;  %v5892_v1 = vld [vmem:[#allocation8] sm:$0xf] }
 0x20a   :  { %v1851_v23 = vpop.f32.mrf.mxu3  ;;  %3144 = vmatpush.bf16.msrb.mxu2 %v4813_v15  ;;  %3195 = vmatpush.bf16.msrb.mxu3 %v4819_v25  ;;  %v4809_v46 = vld [vmem:[#allocation7 + $0x100] sm:$0xff] }
 0x20b   :  { %4874 = vrsqrt.f32 %v5878_v48  ;;  %v1852_v41 = vadd.f32 %v1851_v23, %v1802_v47  ;;  %v4812_v47 = vld [vmem:[#allocation7 + $0x118] sm:$0xff]  ;;  %vm2017_vm13 = vweird.f32 %v5878_v48  ;;  %3099 = vmatpush.bf16.msra.mxu1 %v4801_v40  ;;  %3390 = vmatpush.bf16.msrb.mxu0 %v4777_v37  ;;  %v5897_v23 = vperm.slane %v5892_v1, 1 }
 0x20d   :  { %v1901_v58 = vadd.f32 %v1900_v5, %v1852_v41 }
 0x20e   :  { %3145 = vmatpush.bf16.msrb.mxu2 %v4812_v47  ;;  %3196 = vmatpush.bf16.msrb.mxu3 %v4818_v32 }
 0x20f   :  { %v5884_v43 = vadd.f32 %v1901_v58, %v1550_v6 }
 0x211   :  { %v4875_v18 = vpop.eup %4874  ;;  %v1939_v12 = vadd.f32 %v1938_v53, %v5884_v43 }
 0x212   :  { %v2012_v19 = vmul.f32 %v4875_v18, %v5878_v48  ;;  %v1853_v8 = vpop.f32.mrf.mxu3  ;;  %vm2018_vm12 = vweird.f32 %v4875_v18  ;;  %3146 = vmatpush.bf16.msrb.mxu2 %v4811_v44  ;;  %3197 = vmatpush.bf16.msrb.mxu3 %v4817_v42 }
 0x213   :  { %v1854_v30 = vadd.f32 %v1853_v8, %v1804_v27  ;;  %vm2019_vm14 = vmor %vm2017_vm13, %vm2018_vm12 }
 0x214   :  { %v2013_v35 = vmul.f32 %v4875_v18, %v2012_v19 }
 0x215   :  { %v1903_v24 = vadd.f32 %v1902_v45, %v1854_v30 }
 0x216   :  { %v2014_v22 = vmul.f32 0.5, %v2013_v35  ;;  %3147 = vmatpush.bf16.msrb.mxu2 %v4810_v28 }
 0x217   :  { %v5889_v55 = vadd.f32 %v1903_v24, %v1552_v49 }
 0x218   :  { %v2015_v33 = vsub.f32 1.5, %v2014_v22 }
 0x219   :  { %v1940_v61 = vadd.f32 %v1939_v12, %v5889_v55 }
 0x21a   :  { %v2016_v39 = vmul.f32 %v4875_v18, %v2015_v33  ;;  %3148 = vmatpush.bf16.msrb.mxu2 %v4809_v46 }
 0x21b   :  { %v1941_v14 = vrot.slane %v1940_v61, 4 }
 0x21c   :  { %v2020_v63 = vsel %vm2019_vm14, %v4875_v18, %v2016_v39 }
 0x21d   :  { %v2031_v16 = vmul.f32 %v2020_v63, %v5892_v1  ;;  %v1942_v53 = vadd.f32 %v1941_v14, %v1940_v61 }
 0x21f   :  { %v2033_v5 = vperm.slane %v2031_v16, 0  ;;  %v1943_v41 = vrot.slane %v1942_v53, 2 }
 0x221   :  { %v2035_v48 = vmul.f32 %v2033_v5, %v5818_v13  ;;  %v2036_v57 = vmul.f32 %v2033_v5, %v5821_v52  ;;  %v2040_v2 = vmul.f32 %v2033_v5, %v5831_v10  ;;  %v2041_v6 = vmul.f32 %v2033_v5, %v5833_v38 }
 0x222   :  { %v2042_v0 = vmul.f32 %v2033_v5, %v5835_v31  ;;  %v1944_v58 = vadd.f32 %v1943_v41, %v1942_v53  ;;  %v2037_v9 = vmul.f32 %v2033_v5, %v5824_v11  ;;  %v2038_v59 = vmul.f32 %v2033_v5, %v5827_v54 }
 0x223   :  { %v2052_v27 = vadd.f32 %v5897_v23, %v2035_v48  ;;  %v2053_v17 = vadd.f32 %v5897_v23, %v2036_v57  ;;  %v2039_v13 = vmul.f32 %v2033_v5, %v5829_v3  ;;  %v5913_v18 = vadd.f32 %v5897_v23, %v2041_v6 }
 0x224   :  { %v2059_v52 = vadd.f32 %v5897_v23, %v2042_v0  ;;  %v1945_v10 = vrot.slane %v1944_v58, 1  ;;  %v2054_v38 = vadd.f32 %v5897_v23, %v2037_v9  ;;  %v2055_v31 = vadd.f32 %v5897_v23, %v2038_v59 }
 0x225   :  { %v2068_v11 = vmax.f32 %v2052_v27, 0.0  ;;  %v2069_v29 = vmax.f32 %v2053_v17, 0.0  ;;  %v2056_v54 = vadd.f32 %v5897_v23, %v2039_v13  ;;  %v2057_v56 = vadd.f32 %v5897_v23, %v2040_v2 }
 0x226   :  { %v2075_v12 = vmax.f32 %v2059_v52, 0.0  ;;  %v1946_v21 = vadd.f32 %v1945_v10, %v1944_v58  ;;  %v2070_v19 = vmax.f32 %v2054_v38, 0.0  ;;  %v2071_v3 = vmax.f32 %v2055_v31, 0.0 }
 0x227   :  { %v2084_v8 = vpack.c.bf16 %v2068_v11, %v2068_v11  ;;  %v2085_v30 = vpack.c.bf16 %v2069_v29, %v2069_v29  ;;  %v2072_v35 = vmax.f32 %v2056_v54, 0.0  ;;  %v2073_v22 = vmax.f32 %v2057_v56, 0.0 }
 0x228   :  { %v2091_v45 = vpack.c.bf16 %v2075_v12, %v2075_v12  ;;  %v1948_v7 = vmul.f32 0.015625, %v1946_v21  ;;  %v2086_v36 = vpack.c.bf16 %v2070_v19, %v2070_v19  ;;  %v2087_v49 = vpack.c.bf16 %v2071_v3, %v2071_v3 }
 0x229   :  { %v2116_v24 = vunpack.c.l.b16 %v2085_v30  ;;  %v2117_v15 = vunpack.c.l.b16 %v2084_v8  ;;  %v2088_v25 = vpack.c.bf16 %v2072_v35, %v2072_v35  ;;  %v2089_v6 = vpack.c.bf16 %v2073_v22, %v2073_v22 }
 0x22a   :  { %v2123_v33 = vunpack.c.l.b16 %v2091_v45  ;;  %v5918_v40 = vsub.f32 %v5841_v4, %v1948_v7  ;;  %v5921_v37 = vsub.f32 %v5815_v26, %v1948_v7  ;;  %v5924_v61 = vsub.f32 %v5854_v62, %v1948_v7 }
 0x22b   :  { %v5927_v47 = vsub.f32 %v5863_v34, %v1948_v7  ;;  %v5930_v39 = vsub.f32 %v5870_v60, %v1948_v7  ;;  %v5933_v14 = vsub.f32 %v5874_v51, %v1948_v7  ;;  %v5936_v63 = vsub.f32 %v5884_v43, %v1948_v7 }
 0x22c   :  { %v5938_v4 = vpack.c.b16 %v2123_v33, %v2123_v33  ;;  %v5941_v26 = vsub.f32 %v5889_v55, %v1948_v7  ;;  %v1973_v62 = vmul.f32 %v5918_v40, %v5918_v40  ;;  %v1974_v34 = vmul.f32 %v5921_v37, %v5921_v37 }
 0x22d   :  { %v2074_v60 = vmax.f32 %v5913_v18, 0.0  ;;  %v1975_v51 = vmul.f32 %v5924_v61, %v5924_v61  ;;  %v1976_v43 = vmul.f32 %v5927_v47, %v5927_v47  ;;  %v1977_v32 = vmul.f32 %v5930_v39, %v5930_v39 }
 0x22e   :  { %v2170_v55 = vshrl.u32 %v5938_v4, 16  ;;  %v2241_v16 = vshll.u32 %v5938_v4, 16  ;;  %v1978_v53 = vmul.f32 %v5933_v14, %v5933_v14  ;;  %v1979_v44 = vmul.f32 %v5936_v63, %v5936_v63 }
 0x22f   :  { %v1994_v5 = vadd.f32 %v1974_v34, %v1973_v62  ;;  %v2132_v41 = vpack.c.b16 %v2116_v24, %v2116_v24  ;;  %v2133_v42 = vpack.c.b16 %v2117_v15, %v2117_v15  ;;  %v2118_v48 = vunpack.c.l.b16 %v2086_v36 }
 0x230   :  { %v1980_v57 = vmul.f32 %v5941_v26, %v5941_v26  ;;  %v2119_v2 = vunpack.c.l.b16 %v2087_v49  ;;  %v2120_v0 = vunpack.c.l.b16 %v2088_v25  ;;  %v2121_v52 = vunpack.c.l.b16 %v2089_v6 }
 0x231   :  { %v1995_v58 = vadd.f32 %v1994_v5, %v1975_v51  ;;  %v2149_v28 = vshrl.u32 %v2132_v41, 16  ;;  %v2152_v9 = vshrl.u32 %v2133_v42, 16  ;;  %v2213_v59 = vshll.u32 %v2132_v41, 16 }
 0x232   :  { %v2217_v27 = vshll.u32 %v2133_v42, 16  ;;  %v2134_v17 = vpack.c.b16 %v2118_v48, %v2118_v48  ;;  %v2135_v13 = vpack.c.b16 %v2119_v2, %v2119_v2  ;;  %v5962_v45 = vpack.c.b16 %v2120_v0, %v2120_v0 }
 0x233   :  { %v1996_v10 = vadd.f32 %v1995_v58, %v1976_v43  ;;  %v2212_v38 = vrot.slane %v2149_v28, 7  ;;  %v2216_v31 = vrot.slane %v2152_v9, 7  ;;  %v2292_v11 = vrot.slane %v2213_v59, 7 }
 0x234   :  { %v2293_v29 = vrot.slane %v2217_v27, 7  ;;  %v2155_v54 = vshrl.u32 %v2134_v17, 16  ;;  %v2158_v12 = vshrl.u32 %v2135_v13, 16  ;;  %v2221_v21 = vshll.u32 %v2134_v17, 16 }
 0x235   :  { %v1997_v46 = vadd.f32 %v1996_v10, %v1977_v32  ;;  %v2215_v19 = vor.u32 %v2213_v59, %v2212_v38  ;;  %v2219_v3 = vor.u32 %v2217_v27, %v2216_v31  ;;  %v2225_v8 = vshll.u32 %v2135_v13, 16 }
 0x236   :  { %v2220_v30 = vrot.slane %v2155_v54, 7  ;;  %v2224_v56 = vrot.slane %v2158_v12, 7  ;;  %v2294_v35 = vrot.slane %v2221_v21, 7  ;;  %v5976_v42 = vpack.c.b16 %v2121_v52, %v2121_v52 }
 0x237   :  { %v1998_v7 = vadd.f32 %v1997_v46, %v1978_v53  ;;  %v2324_v36 = vsel %vm5078_vm4, %v2149_v28, %v2215_v19  ;;  %v2325_v49 = vsel %vm5078_vm4, %v2152_v9, %v2219_v3  ;;  %v2295_v24 = vrot.slane %v2225_v8, 7 }
 0x238   :  { %v2340_v22 = vsel %vm5084_vm5, %v2324_v36, %v2292_v11  ;;  %v2341_v25 = vsel %vm5084_vm5, %v2325_v49, %v2293_v29  ;;  %v2223_v33 = vor.u32 %v2221_v21, %v2220_v30  ;;  %v2227_v62 = vor.u32 %v2225_v8, %v2224_v56 }
 0x239   :  { %v1999_v34 = vadd.f32 %v1998_v7, %v1979_v44  ;;  %v2370_v51 = vunpack.c.l.b16 %v2340_v22  ;;  %v2371_v43 = vunpack.c.h.b16 %v2340_v22  ;;  %v2372_v32 = vunpack.c.l.b16 %v2341_v25 }
 0x23a   :  { %v2373_v53 = vunpack.c.h.b16 %v2341_v25  ;;  %v2326_v5 = vsel %vm5078_vm4, %v2155_v54, %v2223_v33  ;;  %v2327_v41 = vsel %vm5078_vm4, %v2158_v12, %v2227_v62 }
 0x23b   :  { %v2000_v48 = vadd.f32 %v1999_v34, %v1980_v57  ;;  %v2399_v2 = vpack.c.b16 %v2371_v43, %v2371_v43  ;;  %v2400_v6 = vpack.c.b16 %v2372_v32, %v2372_v32  ;;  %v2848_v0 = vpack.c.b16 %v2370_v51, %v2372_v32 }
 0x23c   :  { %v2401_v58 = vpack.c.b16 %v2373_v53, %v2373_v53  ;;  %v2678_v28 = vpack.c.b16 %v2372_v32, %v2370_v51  ;;  %v2398_v9 = vpack.c.b16 %v2370_v51, %v2370_v51  ;;  %v2342_v44 = vsel %vm5084_vm5, %v2326_v5, %v2294_v35 }
 0x23d   :  { %v2001_v59 = vrot.slane %v2000_v48, 4  ;;  %3100 = vmatmul.bf16.vlgmr.msra.gmra.mxu1 %v2848_v0  ;;  %v2624_v27 = vrot.slane %v2399_v2, 5  ;;  %v4402_v17 = vrot.slane %v2400_v6, 9  ;;  %v2436_v13 = vshll.u32 %v2399_v2, 16 }
 0x23e   :  { %3391 = vmatmul.bf16.vlgmr.msrb.gmra.mxu0 %v2678_v28  ;;  %v4401_v10 = vrot.slane %v2398_v9, 9  ;;  %v2628_v38 = vrot.slane %v2401_v58, 5  ;;  %v2427_v52 = vshrl.u32 %v2398_v9, 16  ;;  %v2430_v31 = vshll.u32 %v2398_v9, 16 }
 0x23f   :  { %v2002_v57 = vadd.f32 %v2001_v59, %v2000_v48  ;;  %v2438_v11 = vrot.slane %v2436_v13, 5  ;;  %v2441_v29 = vshrl.u32 %v2400_v6, 16  ;;  %v2444_v54 = vshll.u32 %v2400_v6, 16 }
 0x240   :  { %v2625_v12 = vsel %vm5470_vm11, %v4401_v10, %v2624_v27  ;;  %v5984_v21 = vsel %vm5470_vm11, %v4402_v17, %v2628_v38  ;;  %v2429_v46 = vrot.slane %v2427_v52, 4  ;;  %v2432_v19 = vrot.slane %v2430_v31, 5 }
 0x241   :  { %v2003_v3 = vrot.slane %v2002_v57, 2  ;;  %v5986_v8 = vunpack.c.l.b16 %v2625_v12  ;;  %v2725_v30 = vunpack.c.l.b16 %v5984_v21  ;;  %v2443_v56 = vrot.slane %v2441_v29, 4 }
 0x242   :  { %v2433_v35 = vor.u32 %v2432_v19, %v2429_v46  ;;  %v2446_v7 = vrot.slane %v2444_v54, 5  ;;  %v2450_v36 = vshll.u32 %v2401_v58, 16  ;;  %v2343_v49 = vsel %vm5084_vm5, %v2327_v41, %v2295_v24 }
 0x243   :  { %v2004_v22 = vadd.f32 %v2003_v3, %v2002_v57  ;;  %v2884_v25 = vpack.c.b16 %v5986_v8, %v2725_v30  ;;  %v2374_v33 = vunpack.c.l.b16 %v2342_v44  ;;  %v2375_v62 = vunpack.c.h.b16 %v2342_v44 }
 0x244   :  { %v2434_v34 = vrot.slane %v2433_v35, 4  ;;  %v2447_v43 = vor.u32 %v2446_v7, %v2443_v56  ;;  %v2452_v32 = vrot.slane %v2450_v36, 5  ;;  %v5994_v53 = vunpack.c.l.b16 %v2343_v49 }
 0x245   :  { %v2005_v5 = vrot.slane %v2004_v22, 1  ;;  %3198 = vmatmul.bf16.vlgmr.msrb.gmra.mxu3 %v2884_v25  ;;  %v2377_v48 = vunpack.c.h.b16 %v2343_v49  ;;  %v2402_v2 = vpack.c.b16 %v2374_v33, %v2374_v33  ;;  %v2403_v6 = vpack.c.b16 %v2375_v62, %v2375_v62 }
 0x246   :  { %v2439_v24 = vsel %vm5171_vm8, %v2434_v34, %v2438_v11  ;;  %v2448_v41 = vrot.slane %v2447_v43, 4  ;;  %v2404_v58 = vpack.c.b16 %v5994_v53, %v5994_v53  ;;  %v2849_v28 = vpack.c.b16 %v5994_v53, %v2374_v33 }
 0x247   :  { %v2006_v9 = vadd.f32 %v2005_v5, %v2004_v22  ;;  %v6001_v44 = vunpack.c.l.b16 %v2439_v24  ;;  %v2405_v59 = vpack.c.b16 %v2377_v48, %v2377_v48  ;;  %v6003_v27 = vpack.c.b16 %v2374_v33, %v2370_v51 }
 0x248   :  { %v2453_v17 = vsel %vm5171_vm8, %v2448_v41, %v2452_v32  ;;  %v4403_v13 = vrot.slane %v2402_v2, 9  ;;  %v2632_v10 = vrot.slane %v2403_v6, 5  ;;  %v4404_v38 = vrot.slane %v2404_v58, 9 }
 0x249   :  { %v2008_v52 = vmul.f32 0.015625, %v2006_v9  ;;  %v6007_v31 = vunpack.c.l.b16 %v2453_v17  ;;  %v2636_v57 = vrot.slane %v2405_v59, 5  ;;  %v2455_v11 = vshrl.u32 %v2402_v2, 16  ;;  %v4792_v9 = vld [vmem:[#allocation7 + $0x78] sm:$0xff] }
 0x24a   :  { %v6011_v29 = vsel %vm5470_vm11, %v4403_v13, %v2632_v10  ;;  %v2458_v54 = vshll.u32 %v2402_v2, 16  ;;  %v2464_v12 = vshll.u32 %v2403_v6, 16  ;;  %v2469_v46 = vshrl.u32 %v2404_v58, 16  ;;  %3432 = vmatpush.bf16.msrb.mxu1 %v4792_v9 }
 0x24b   :  { %v6013_v51 = vadd.f32 1e-05, %v2008_v52  ;;  %v2866_v19 = vpack.c.b16 %v6001_v44, %v6007_v31  ;;  %v6019_v3 = vsel %vm5470_vm11, %v4404_v38, %v2636_v57  ;;  %v2726_v56 = vunpack.c.l.b16 %v6011_v29 }
 0x24c   :  { %v2240_v35 = vrot.slane %v2170_v55, 7  ;;  %v2727_v7 = vunpack.c.l.b16 %v6019_v3  ;;  %v2457_v36 = vrot.slane %v2455_v11, 4  ;;  %v2460_v49 = vrot.slane %v2458_v54, 5  ;;  %v4791_v11 = vld [vmem:[#allocation7 + $0x70] sm:$0xff] }
 0x24d   :  { %4876 = vrsqrt.f32 %v6013_v51  ;;  %3149 = vmatmul.bf16.vlgmr.msrb.gmra.mxu2 %v2866_v19  ;;  %3105 = vmatmul.bf16.gmra.mxu1 %v2849_v28  ;;  %v2466_v22 = vrot.slane %v2464_v12, 5  ;;  %v2471_v25 = vrot.slane %v2469_v46, 4  ;;  %v2472_v33 = vshll.u32 %v2404_v58, 16 }
 0x24e   :  { %3396 = vmatmul.bf16.gmra.mxu0 %v6003_v27  ;;  %v2885_v62 = vpack.c.b16 %v2727_v7, %v2726_v56  ;;  %v2461_v34 = vor.u32 %v2460_v49, %v2457_v36  ;;  %v2478_v43 = vshll.u32 %v2405_v59, 16  ;;  %v2161_v32 = vshrl.u32 %v5962_v45, 16  ;;  %3433 = vmatpush.bf16.msrb.mxu1 %v4791_v11 }
 0x24f   :  { %v2474_v5 = vrot.slane %v2472_v33, 5  ;;  %v2164_v48 = vshrl.u32 %v5976_v42, 16  ;;  %v2229_v2 = vshll.u32 %v5962_v45, 16  ;;  %v2233_v6 = vshll.u32 %v5976_v42, 16 }
 0x250   :  { %v2462_v24 = vrot.slane %v2461_v34, 4  ;;  %v2480_v41 = vrot.slane %v2478_v43, 5  ;;  %v2228_v58 = vrot.slane %v2161_v32, 7  ;;  %v2090_v28 = vpack.c.bf16 %v2074_v60, %v2074_v60 }
 0x251   :  { %v2475_v17 = vor.u32 %v2474_v5, %v2471_v25  ;;  %v2232_v13 = vrot.slane %v2164_v48, 7  ;;  %v2296_v59 = vrot.slane %v2229_v2, 7  ;;  %v2297_v10 = vrot.slane %v2233_v6, 7 }
 0x252   :  { %v2467_v38 = vsel %vm5171_vm8, %v2462_v24, %v2466_v22  ;;  %v2231_v52 = vor.u32 %v2229_v2, %v2228_v58  ;;  %v2122_v57 = vunpack.c.l.b16 %v2090_v28  ;;  %v6042_v45 = vor.u32 %v2241_v16, %v2240_v35  ;;  %v4790_v2 = vld [vmem:[#allocation7 + $0x68] sm:$0xff] }
 0x253   :  { %v4877_v42 = vpop.eup %4876  ;;  %v2476_v18 = vrot.slane %v2475_v17, 4  ;;  %v2696_v54 = vunpack.c.l.b16 %v2467_v38  ;;  %v2235_v60 = vor.u32 %v2233_v6, %v2232_v13  ;;  %v6046_v12 = vrot.slane %v2241_v16, 7  ;;  %3434 = vmatpush.bf16.msrb.mxu1 %v4790_v2 }
 0x254   :  { %v2022_v46 = vmul.f32 %v4877_v42, %v6013_v51  ;;  %vm2027_vm15 = vweird.f32 %v6013_v51  ;;  %vm2028_vm0 = vweird.f32 %v4877_v42  ;;  %v2328_v19 = vsel %vm5078_vm4, %v2161_v32, %v2231_v52 }
 0x255   :  { %v6052_v35 = vpack.c.b16 %v2122_v57, %v2122_v57  ;;  %3203 = vmatmul.bf16.gmra.mxu3 %v2885_v62  ;;  %v2481_v36 = vsel %vm5171_vm8, %v2476_v18, %v2480_v41  ;;  %v6057_v49 = vpack.c.b16 %v2696_v54, %v6001_v44  ;;  %v2329_v16 = vsel %vm5078_vm4, %v2164_v48, %v2235_v60  ;;  %v4789_v60 = vld [vmem:[#allocation7 + $0x60] sm:$0xff]  ;;  %vm2029_vm1 = vmor %vm2027_vm15, %vm2028_vm0 }
 0x256   :  { %v2344_v22 = vsel %vm5084_vm5, %v2328_v19, %v2296_v59  ;;  %v2023_v25 = vmul.f32 %v4877_v42, %v2022_v46  ;;  %v6063_v33 = vunpack.c.l.b16 %v2481_v36  ;;  %v2345_v34 = vsel %vm5084_vm5, %v2329_v16, %v2297_v10 }
 0x257   :  { %v2378_v43 = vunpack.c.l.b16 %v2344_v22  ;;  %v2379_v62 = vunpack.c.h.b16 %v2344_v22  ;;  %v6067_v32 = vunpack.c.l.b16 %v2345_v34  ;;  %v2381_v5 = vunpack.c.h.b16 %v2345_v34  ;;  %3435 = vmatpush.bf16.msrb.mxu1 %v4789_v60 }
 0x258   :  { %v2167_v6 = vshrl.u32 %v6052_v35, 16  ;;  %v2024_v24 = vmul.f32 0.5, %v2023_v25  ;;  %v2867_v48 = vpack.c.b16 %v6063_v33, %v2696_v54  ;;  %v6797_v0 = vpack.c.b16 %v6007_v31, %v6001_v44 }
 0x259   :  { %v2406_v41 = vpack.c.b16 %v2378_v43, %v2378_v43  ;;  %v6072_v58 = vpack.c.b16 %v2378_v43, %v5994_v53  ;;  %v2407_v28 = vpack.c.b16 %v2379_v62, %v2379_v62  ;;  %v2408_v9 = vpack.c.b16 %v6067_v32, %v6067_v32 }
 0x25a   :  { %v2409_v17 = vpack.c.b16 %v2381_v5, %v2381_v5  ;;  %v2850_v13 = vpack.c.b16 %v6067_v32, %v2378_v43  ;;  %v2025_v59 = vsub.f32 1.5, %v2024_v24 }
 0x25b   :  { %v4405_v10 = vrot.slane %v2406_v41, 9  ;;  %v2483_v38 = vshrl.u32 %v2406_v41, 16  ;;  %v2486_v52 = vshll.u32 %v2406_v41, 16  ;;  %v2640_v57 = vrot.slane %v2407_v28, 5 }
 0x25c   :  { %v4406_v11 = vrot.slane %v2408_v9, 9  ;;  %v2644_v18 = vrot.slane %v2409_v17, 5  ;;  %v2492_v54 = vshll.u32 %v2407_v28, 16  ;;  %v2026_v46 = vmul.f32 %v4877_v42, %v2025_v59 }
 0x25d   :  { %v2485_v53 = vrot.slane %v2483_v38, 4  ;;  %v2488_v19 = vrot.slane %v2486_v52, 5  ;;  %v2497_v36 = vshrl.u32 %v2408_v9, 16  ;;  %3154 = vmatmul.bf16.gmra.mxu2 %v2867_v48  ;;  %3110 = vmatmul.bf16.gmra.mxu1 %v2850_v13  ;;  %v6082_v16 = vsel %vm5470_vm11, %v4405_v10, %v2640_v57 }
 0x25e   :  { %v6086_v22 = vsel %vm5470_vm11, %v4406_v11, %v2644_v18  ;;  %v2494_v25 = vrot.slane %v2492_v54, 5  ;;  %v2500_v34 = vshll.u32 %v2408_v9, 16  ;;  %v2030_v43 = vsel %vm2029_vm1, %v4877_v42, %v2026_v46  ;;  %3401 = vmatmul.bf16.gmra.mxu0 %v6072_v58 }
 0x25f   :  { %v2728_v62 = vunpack.c.l.b16 %v6082_v16  ;;  %v6729_v51 = vunpack.c.l.b16 %v6086_v22  ;;  %v2489_v5 = vor.u32 %v2488_v19, %v2485_v53  ;;  %v2032_v2 = vmul.f32 %v2030_v43, %v5892_v1 }
 0x260   :  { %v2499_v24 = vrot.slane %v2497_v36, 4  ;;  %v2502_v48 = vrot.slane %v2500_v34, 5  ;;  %v2506_v41 = vshll.u32 %v2409_v17, 16  ;;  %v2236_v42 = vrot.slane %v2167_v6, 7  ;;  %v4788_v36 = vld [vmem:[#allocation7 + $0x58] sm:$0xff] }
 0x261   :  { %v2886_v28 = vpack.c.b16 %v6729_v51, %v2728_v62  ;;  %v2490_v9 = vrot.slane %v2489_v5, 4  ;;  %v2237_v13 = vshll.u32 %v6052_v35, 16  ;;  %v6097_v59 = vperm.slane %v2032_v2, 0  ;;  %3436 = vmatpush.bf16.msrb.mxu1 %v4788_v36  ;;  %v4839_v51 = vld [vmem:[#allocation7 + $0x1f0] sm:$0xff] }
 0x262   :  { %v2503_v10 = vor.u32 %v2502_v48, %v2499_v24  ;;  %v2508_v38 = vrot.slane %v2506_v41, 5  ;;  %v2331_v1 = vsel %vm5078_vm4, %v2170_v55, %v6042_v45  ;;  %v6207_v29 = vpack.c.b16 %v2728_v62, %v2727_v7 }
 0x263   :  { %v2495_v17 = vsel %vm5171_vm8, %v2490_v9, %v2494_v25  ;;  %v2239_v52 = vor.u32 %v2237_v13, %v2236_v42  ;;  %v2298_v57 = vrot.slane %v2237_v13, 7  ;;  %v2347_v11 = vsel %vm5084_vm5, %v2331_v1, %v6046_v12 }
 0x264   :  { %v6111_v35 = vmul.f32 %v6097_v59, %v5933_v14  ;;  %v2049_v18 = vmul.f32 %v6097_v59, %v5936_v63  ;;  %v2050_v4 = vmul.f32 %v6097_v59, %v5941_v26  ;;  %v2504_v55 = vrot.slane %v2503_v10, 4 }
 0x265   :  { %v6117_v45 = vunpack.c.l.b16 %v2495_v17  ;;  %v2330_v54 = vsel %vm5078_vm4, %v2167_v6, %v2239_v52  ;;  %v6121_v60 = vunpack.c.l.b16 %v2347_v11  ;;  %v2805_v46 = vunpack.c.h.b16 %v2347_v11  ;;  %3208 = vmatmul.bf16.gmra.mxu3 %v2886_v28 }
 0x266   :  { %v2067_v12 = vadd.f32 %v5897_v23, %v2050_v4  ;;  %v2509_v14 = vsel %vm5171_vm8, %v2504_v55, %v2508_v38  ;;  %v2346_v63 = vsel %vm5084_vm5, %v2330_v54, %v2298_v57  ;;  %v6135_v25 = vadd.f32 %v5897_v23, %v2049_v18 }
 0x267   :  { %v6128_v53 = vunpack.c.l.b16 %v2509_v14  ;;  %v6130_v26 = vunpack.c.l.b16 %v2346_v63  ;;  %v2383_v19 = vunpack.c.h.b16 %v2346_v63  ;;  %v2808_v6 = vpack.c.b16 %v6121_v60, %v6121_v60 }
 0x268   :  { %v2083_v34 = vmax.f32 %v2067_v12, 0.0  ;;  %v2809_v43 = vpack.c.b16 %v2805_v46, %v2805_v46  ;;  %v2043_v5 = vmul.f32 %v6097_v59, %v5918_v40  ;;  %v2044_v36 = vmul.f32 %v6097_v59, %v5921_v37 }
 0x269   :  { %v2868_v2 = vpack.c.b16 %v6128_v53, %v6117_v45  ;;  %v2411_v24 = vpack.c.b16 %v2383_v19, %v2383_v19  ;;  %v2851_v48 = vpack.c.b16 %v6121_v60, %v6130_v26  ;;  %v6145_v41 = vpack.c.b16 %v6130_v26, %v6067_v32 }
 0x26a   :  { %v2099_v28 = vpack.c.bf16 %v2083_v34, %v2083_v34  ;;  %v2410_v9 = vpack.c.b16 %v6130_v26, %v6130_v26  ;;  %v4415_v42 = vrot.slane %v2808_v6, 9  ;;  %v2842_v13 = vrot.slane %v2809_v43, 5 }
 0x26b   :  { %v2648_v10 = vrot.slane %v2411_v24, 5  ;;  %v2520_v40 = vshll.u32 %v2411_v24, 16  ;;  %v2813_v38 = vshrl.u32 %v2808_v6, 16  ;;  %v2816_v1 = vshll.u32 %v2808_v6, 16 }
 0x26c   :  { %v2131_v17 = vunpack.c.l.b16 %v2099_v28  ;;  %v4407_v52 = vrot.slane %v2410_v9, 9  ;;  %v6151_v57 = vsel %vm5470_vm11, %v4415_v42, %v2842_v13  ;;  %v2511_v11 = vshrl.u32 %v2410_v9, 16 }
 0x26d   :  { %v2082_v32 = vmax.f32 %v6135_v25, 0.0  ;;  %v6731_v18 = vunpack.c.l.b16 %v6151_v57  ;;  %v2514_v4 = vshll.u32 %v2410_v9, 16  ;;  %v2815_v55 = vrot.slane %v2813_v38, 4  ;;  %3159 = vmatmul.bf16.gmra.mxu2 %v2868_v2  ;;  %3115 = vmatmul.bf16.gmra.mxu1 %v2851_v48  ;;  %v4831_v25 = vld [vmem:[#allocation7 + $0x1b0] sm:$0xff] }
 0x26e   :  { %v6155_v54 = vpack.c.b16 %v2131_v17, %v2131_v17  ;;  %v2649_v46 = vsel %vm5470_vm11, %v4407_v52, %v2648_v10  ;;  %v2513_v12 = vrot.slane %v2511_v11, 4  ;;  %v2818_v14 = vrot.slane %v2816_v1, 5  ;;  %3406 = vmatmul.bf16.gmra.mxu0 %v6145_v41 }
 0x26f   :  { %v6160_v63 = vunpack.c.l.b16 %v2649_v46  ;;  %v2516_v19 = vrot.slane %v2514_v4, 5  ;;  %v2822_v6 = vshll.u32 %v2809_v43, 16  ;;  %v2522_v24 = vrot.slane %v2520_v40, 5 }
 0x270   :  { %v6732_v34 = vshrl.u32 %v6155_v54, 16  ;;  %v2819_v28 = vor.u32 %v2818_v14, %v2815_v55  ;;  %v2060_v2 = vadd.f32 %v5897_v23, %v2043_v5  ;;  %v2061_v13 = vadd.f32 %v5897_v23, %v2044_v36 }
 0x271   :  { %v2887_v9 = vpack.c.b16 %v6731_v18, %v6160_v63  ;;  %v2517_v42 = vor.u32 %v2516_v19, %v2513_v12  ;;  %v2824_v43 = vrot.slane %v2822_v6, 5  ;;  %v6176_v5 = vpack.c.b16 %v2725_v30, %v5986_v8  ;;  %v4787_v19 = vld [vmem:[#allocation7 + $0x50] sm:$0xff] }
 0x272   :  { %v2820_v10 = vrot.slane %v2819_v28, 4  ;;  %v2076_v38 = vmax.f32 %v2060_v2, 0.0  ;;  %v2077_v40 = vmax.f32 %v2061_v13, 0.0  ;;  %v6180_v17 = vpack.c.b16 %v6117_v45, %v6063_v33  ;;  %3437 = vmatpush.bf16.msrb.mxu1 %v4787_v19 }
 0x273   :  { %v2518_v1 = vrot.slane %v2517_v42, 4  ;;  %v2045_v4 = vmul.f32 %v6097_v59, %v5924_v61  ;;  %v2046_v55 = vmul.f32 %v6097_v59, %v5927_v47  ;;  %v6195_v33 = vpack.c.b16 %v2726_v56, %v5986_v8 }
 0x274   :  { %v2825_v52 = vsel %vm5171_vm8, %v2820_v10, %v2824_v43  ;;  %v2092_v11 = vpack.c.bf16 %v2076_v38, %v2076_v38  ;;  %v2093_v30 = vpack.c.bf16 %v2077_v40, %v2077_v40  ;;  %v2047_v6 = vmul.f32 %v6097_v59, %v5930_v39 }
 0x275   :  { %v2523_v46 = vsel %vm5171_vm8, %v2518_v1, %v2522_v24  ;;  %v6190_v21 = vunpack.c.l.b16 %v2825_v52  ;;  %3213 = vmatmul.bf16.gmra.mxu3 %v2887_v9  ;;  %v2062_v61 = vadd.f32 %v5897_v23, %v2045_v4  ;;  %v2063_v14 = vadd.f32 %v5897_v23, %v2046_v55 }
 0x276   :  { %v6197_v45 = vunpack.c.l.b16 %v2523_v46  ;;  %v2125_v12 = vunpack.c.l.b16 %v2092_v11  ;;  %v2124_v47 = vunpack.c.l.b16 %v2093_v30  ;;  %v2064_v9 = vadd.f32 %v5897_v23, %v2047_v6 }
 0x277   :  { %v2078_v24 = vmax.f32 %v2062_v61, 0.0  ;;  %v2079_v28 = vmax.f32 %v2063_v14, 0.0  ;;  %v2065_v39 = vadd.f32 %v5897_v23, %v6111_v35  ;;  %v6222_v38 = vrot.slane %v6732_v34, 7 }
 0x278   :  { %v2869_v56 = vpack.c.b16 %v6190_v21, %v6197_v45  ;;  %v2141_v36 = vpack.c.b16 %v2125_v12, %v2125_v12  ;;  %v2140_v2 = vpack.c.b16 %v2124_v47, %v2124_v47  ;;  %v6218_v3 = vpack.c.b16 %v6197_v45, %v6128_v53 }
 0x279   :  { %v2094_v62 = vpack.c.bf16 %v2078_v24, %v2078_v24  ;;  %v2095_v59 = vpack.c.bf16 %v2079_v28, %v2079_v28  ;;  %v2080_v10 = vmax.f32 %v2064_v9, 0.0  ;;  %v2081_v43 = vmax.f32 %v2065_v39, 0.0 }
 0x27a   :  { %v2176_v7 = vshrl.u32 %v2141_v36, 16  ;;  %v2249_v16 = vshll.u32 %v2141_v36, 16  ;;  %v2173_v42 = vshrl.u32 %v2140_v2, 16  ;;  %v2245_v13 = vshll.u32 %v2140_v2, 16 }
 0x27b   :  { %v2126_v40 = vunpack.c.l.b16 %v2094_v62  ;;  %v2127_v52 = vunpack.c.l.b16 %v2095_v59  ;;  %v2096_v11 = vpack.c.bf16 %v2080_v10, %v2080_v10  ;;  %v6224_v53 = vpack.c.bf16 %v2081_v43, %v2081_v43 }
 0x27c   :  { %v2248_v1 = vrot.slane %v2176_v7, 7  ;;  %v2244_v23 = vrot.slane %v2173_v42, 7  ;;  %v2301_v35 = vrot.slane %v2249_v16, 7  ;;  %v2300_v55 = vrot.slane %v2245_v13, 7 }
 0x27d   :  { %3164 = vmatmul.bf16.gmra.mxu2 %v2869_v56  ;;  %v2142_v46 = vpack.c.b16 %v2126_v40, %v2126_v40  ;;  %v6226_v30 = vpack.c.b16 %v2127_v52, %v2127_v52  ;;  %v2128_v61 = vunpack.c.l.b16 %v2096_v11  ;;  %v2129_v14 = vunpack.c.l.b16 %v6224_v53 }
 0x27e   :  { %v2251_v4 = vor.u32 %v2249_v16, %v2248_v1  ;;  %v2247_v12 = vor.u32 %v2245_v13, %v2244_v23 }
 0x27f   :  { %v2179_v6 = vshrl.u32 %v2142_v46, 16  ;;  %v2182_v36 = vshrl.u32 %v6226_v30, 16  ;;  %v2253_v24 = vshll.u32 %v2142_v46, 16  ;;  %v2257_v2 = vshll.u32 %v6226_v30, 16 }
 0x280   :  { %v2333_v19 = vsel %vm5078_vm4, %v2176_v7, %v2251_v4  ;;  %v2332_v56 = vsel %vm5078_vm4, %v2173_v42, %v2247_v12  ;;  %v6239_v9 = vpack.c.b16 %v2128_v61, %v2128_v61 }
 0x281   :  { %v2349_v28 = vsel %vm5084_vm5, %v2333_v19, %v2301_v35  ;;  %v2348_v39 = vsel %vm5084_vm5, %v2332_v56, %v2300_v55  ;;  %v2252_v7 = vrot.slane %v2179_v6, 7  ;;  %v2256_v10 = vrot.slane %v2182_v36, 7 }
 0x282   :  { %v2386_v16 = vunpack.c.l.b16 %v2349_v28  ;;  %v2387_v62 = vunpack.c.h.b16 %v2349_v28  ;;  %v6243_v59 = vunpack.c.l.b16 %v2348_v39  ;;  %v2385_v13 = vunpack.c.h.b16 %v2348_v39  ;;  %v4840_v28 = vld [vmem:[#allocation7 + $0x1f8] sm:$0xff] }
 0x283   :  { %v2302_v43 = vrot.slane %v2253_v24, 7  ;;  %v2255_v40 = vor.u32 %v2253_v24, %v2252_v7  ;;  %v2303_v52 = vrot.slane %v2257_v2, 7  ;;  %v4786_v24 = vld [vmem:[#allocation7 + $0x48] sm:$0xff]  ;;  %3783 = vmatpush.bf16.msra.mxu0 %v4840_v28 }
 0x284   :  { %v2414_v1 = vpack.c.b16 %v2386_v16, %v2386_v16  ;;  %v2415_v42 = vpack.c.b16 %v2387_v62, %v2387_v62  ;;  %v2413_v23 = vpack.c.b16 %v2385_v13, %v2385_v13  ;;  %v2852_v35 = vpack.c.b16 %v6243_v59, %v2386_v16  ;;  %3438 = vmatpush.bf16.msrb.mxu1 %v4786_v24 }
 0x285   :  { %v2682_v11 = vpack.c.b16 %v2386_v16, %v6243_v59  ;;  %v2412_v53 = vpack.c.b16 %v6243_v59, %v6243_v59 }
 0x286   :  { %v4409_v4 = vrot.slane %v2414_v1, 9  ;;  %v2656_v55 = vrot.slane %v2415_v42, 5  ;;  %v2539_v46 = vshrl.u32 %v2414_v1, 16  ;;  %v2542_v30 = vshll.u32 %v2414_v1, 16  ;;  %3120 = vmatmul.bf16.gmra.mxu1 %v2852_v35 }
 0x287   :  { %3411 = vmatmul.bf16.gmra.mxu0 %v2682_v11  ;;  %v4408_v12 = vrot.slane %v2412_v53, 9  ;;  %v2652_v61 = vrot.slane %v2413_v23, 5  ;;  %v2525_v19 = vshrl.u32 %v2412_v53, 16  ;;  %v2528_v56 = vshll.u32 %v2412_v53, 16 }
 0x288   :  { %v6251_v39 = vsel %vm5470_vm11, %v4409_v4, %v2656_v55  ;;  %v2534_v16 = vshll.u32 %v2413_v23, 16  ;;  %v2541_v62 = vrot.slane %v2539_v46, 4  ;;  %v2544_v7 = vrot.slane %v2542_v30, 5  ;;  %3784 = vmatpush.bf16.msra.mxu0 %v4839_v51 }
 0x289   :  { %v2653_v13 = vsel %vm5470_vm11, %v4408_v12, %v2652_v61  ;;  %v6730_v1 = vunpack.c.l.b16 %v6251_v39  ;;  %v2527_v35 = vrot.slane %v2525_v19, 4  ;;  %v2530_v11 = vrot.slane %v2528_v56, 5 }
 0x28a   :  { %v6256_v53 = vunpack.c.l.b16 %v2653_v13  ;;  %v2536_v8 = vrot.slane %v2534_v16, 5  ;;  %v2545_v47 = vor.u32 %v2544_v7, %v2541_v62  ;;  %v2548_v37 = vshll.u32 %v2415_v42, 16 }
 0x28b   :  { %v2531_v4 = vor.u32 %v2530_v11, %v2527_v35  ;;  %v2259_v55 = vor.u32 %v2257_v2, %v2256_v10  ;;  %v2334_v23 = vsel %vm5078_vm4, %v2179_v6, %v2255_v40  ;;  %v6260_v46 = vpack.c.b16 %v2129_v14, %v2129_v14  ;;  %v4838_v10 = vld [vmem:[#allocation7 + $0x1e8] sm:$0xff] }
 0x28c   :  { %v2888_v30 = vpack.c.b16 %v6256_v53, %v6730_v1  ;;  %v2546_v12 = vrot.slane %v2545_v47, 4  ;;  %v2550_v61 = vrot.slane %v2548_v37, 5  ;;  %v2350_v19 = vsel %vm5084_vm5, %v2334_v23, %v2302_v43  ;;  %v4832_v37 = vld [vmem:[#allocation7 + $0x1b8] sm:$0xff]  ;;  %3785 = vmatpush.bf16.msra.mxu0 %v4838_v10 }
 0x28d   :  { %v2532_v56 = vrot.slane %v2531_v4, 4  ;;  %v2335_v42 = vsel %vm5078_vm4, %v2182_v36, %v2259_v55  ;;  %v2388_v24 = vunpack.c.l.b16 %v2350_v19  ;;  %v2389_v2 = vunpack.c.h.b16 %v2350_v19  ;;  %3734 = vmatpush.bf16.msra.mxu3 %v4832_v37 }
 0x28e   :  { %3218 = vmatmul.bf16.gmra.mxu3 %v2888_v30  ;;  %v2551_v14 = vsel %vm5171_vm8, %v2546_v12, %v2550_v61  ;;  %v2351_v6 = vsel %vm5084_vm5, %v2335_v42, %v2303_v52  ;;  %v2185_v47 = vshrl.u32 %v6239_v9, 16  ;;  %v6277_v43 = vpack.c.bf16 %v2082_v32, %v2082_v32 }
 0x28f   :  { %v2537_v36 = vsel %vm5171_vm8, %v2532_v56, %v2536_v8  ;;  %v6281_v51 = vunpack.c.l.b16 %v2551_v14  ;;  %v6283_v40 = vunpack.c.l.b16 %v2351_v6  ;;  %v2391_v28 = vunpack.c.h.b16 %v2351_v6  ;;  %v4800_v14 = vld [vmem:[#allocation7 + $0xb8] sm:$0xff] }
 0x290   :  { %v6285_v16 = vunpack.c.l.b16 %v2537_v36  ;;  %v2416_v52 = vpack.c.b16 %v2388_v24, %v2388_v24  ;;  %v2417_v62 = vpack.c.b16 %v2389_v2, %v2389_v2  ;;  %v6288_v7 = vpack.c.b16 %v2388_v24, %v6243_v59  ;;  %v4837_v2 = vld [vmem:[#allocation7 + $0x1e0] sm:$0xff]  ;;  %3481 = vmatpush.bf16.msra.mxu2 %v4800_v14 }
 0x291   :  { %v2418_v32 = vpack.c.b16 %v6283_v40, %v6283_v40  ;;  %v2419_v13 = vpack.c.b16 %v2391_v28, %v2391_v28  ;;  %v2853_v8 = vpack.c.b16 %v6283_v40, %v2388_v24  ;;  %v2188_v35 = vshrl.u32 %v6260_v46, 16  ;;  %3735 = vmatpush.bf16.msra.mxu3 %v4831_v25  ;;  %3786 = vmatpush.bf16.msra.mxu0 %v4837_v2 }
 0x292   :  { %v2870_v11 = vpack.c.b16 %v6285_v16, %v6281_v51  ;;  %v4410_v4 = vrot.slane %v2416_v52, 9  ;;  %v2660_v55 = vrot.slane %v2417_v62, 5  ;;  %v2553_v23 = vshrl.u32 %v2416_v52, 16 }
 0x293   :  { %v4411_v30 = vrot.slane %v2418_v32, 9  ;;  %v2664_v59 = vrot.slane %v2419_v13, 5  ;;  %v2556_v12 = vshll.u32 %v2416_v52, 16  ;;  %v2562_v61 = vshll.u32 %v2417_v62, 16 }
 0x294   :  { %3169 = vmatmul.bf16.gmra.mxu2 %v2870_v11  ;;  %v6298_v19 = vsel %vm5470_vm11, %v4410_v4, %v2660_v55  ;;  %v2555_v56 = vrot.slane %v2553_v23, 4  ;;  %v2567_v42 = vshrl.u32 %v2418_v32, 16  ;;  %v2570_v24 = vshll.u32 %v2418_v32, 16  ;;  %v4785_v23 = vld [vmem:[#allocation7 + $0x40] sm:$0xff] }
 0x295   :  { %v6302_v6 = vsel %vm5470_vm11, %v4411_v30, %v2664_v59  ;;  %v6734_v37 = vunpack.c.l.b16 %v6298_v19  ;;  %v2558_v10 = vrot.slane %v2556_v12, 5  ;;  %v2260_v36 = vrot.slane %v2185_v47, 7  ;;  %v4830_v30 = vld [vmem:[#allocation7 + $0x1a8] sm:$0xff]  ;;  %v4836_v59 = vld [vmem:[#allocation7 + $0x1d8] sm:$0xff]  ;;  %3439 = vmatpush.bf16.msrb.mxu1 %v4785_v23 }
 0x296   :  { %v6733_v28 = vunpack.c.l.b16 %v6302_v6  ;;  %v2569_v52 = vrot.slane %v2567_v42, 4  ;;  %v2572_v62 = vrot.slane %v2570_v24, 5  ;;  %v2576_v11 = vshll.u32 %v2419_v13, 16  ;;  %3125 = vmatmul.bf16.gmra.mxu1 %v2853_v8  ;;  %v4799_v24 = vld [vmem:[#allocation7 + $0xb0] sm:$0xff]  ;;  %3736 = vmatpush.bf16.msra.mxu3 %v4830_v30 }
 0x297   :  { %3416 = vmatmul.bf16.gmra.mxu0 %v6288_v7  ;;  %v2559_v25 = vor.u32 %v2558_v10, %v2555_v56  ;;  %v2261_v32 = vshll.u32 %v6239_v9, 16  ;;  %v2264_v4 = vrot.slane %v2188_v35, 7  ;;  %v2265_v55 = vshll.u32 %v6260_v46, 16  ;;  %v4829_v46 = vld [vmem:[#allocation7 + $0x1a0] sm:$0xff]  ;;  %3482 = vmatpush.bf16.msra.mxu2 %v4799_v24 }
 0x298   :  { %v2889_v12 = vpack.c.b16 %v6733_v28, %v6734_v37  ;;  %v2564_v13 = vrot.slane %v2562_v61, 5  ;;  %v2573_v42 = vor.u32 %v2572_v62, %v2569_v52  ;;  %v2130_v8 = vunpack.c.l.b16 %v6277_v43  ;;  %3787 = vmatpush.bf16.msra.mxu0 %v4836_v59  ;;  %v4835_v28 = vld [vmem:[#allocation7 + $0x1d0] sm:$0xff] }
 0x299   :  { %v2560_v2 = vrot.slane %v2559_v25, 4  ;;  %v2578_v56 = vrot.slane %v2576_v11, 5  ;;  %v2263_v14 = vor.u32 %v2261_v32, %v2260_v36  ;;  %v2267_v10 = vor.u32 %v2265_v55, %v2264_v4  ;;  %v4798_v11 = vld [vmem:[#allocation7 + $0xa8] sm:$0xff] }
 0x29a   :  { %v2574_v1 = vrot.slane %v2573_v42, 4  ;;  %v2304_v18 = vrot.slane %v2261_v32, 7  ;;  %v2305_v34 = vrot.slane %v2265_v55, 7  ;;  %v6316_v48 = vpack.c.b16 %v2130_v8, %v2130_v8  ;;  %3737 = vmatpush.bf16.msra.mxu3 %v4829_v46  ;;  %v4834_v42 = vld [vmem:[#allocation7 + $0x1c8] sm:$0xff] }
 0x29b   :  { %v2565_v61 = vsel %vm5171_vm8, %v2560_v2, %v2564_v13  ;;  %v2336_v43 = vsel %vm5078_vm4, %v2185_v47, %v2263_v14  ;;  %v2337_v36 = vsel %vm5078_vm4, %v2188_v35, %v2267_v10  ;;  %v6792_v52 = vshll.u32 %v6155_v54, 16  ;;  %3483 = vmatpush.bf16.msra.mxu2 %v4798_v11 }
 0x29c   :  { %v2579_v25 = vsel %vm5171_vm8, %v2574_v1, %v2578_v56  ;;  %v6331_v32 = vunpack.c.l.b16 %v2565_v61  ;;  %v2352_v4 = vsel %vm5084_vm5, %v2336_v43, %v2304_v18  ;;  %v2353_v9 = vsel %vm5084_vm5, %v2337_v36, %v2305_v34  ;;  %3788 = vmatpush.bf16.msra.mxu0 %v4835_v28  ;;  %v4828_v18 = vld [vmem:[#allocation7 + $0x198] sm:$0xff]  ;;  %v4797_v56 = vld [vmem:[#allocation7 + $0xa0] sm:$0xff] }
 0x29d   :  { %v2275_v62 = vor.u32 %v6792_v52, %v6222_v38  ;;  %v6337_v47 = vunpack.c.l.b16 %v2579_v25  ;;  %v2392_v55 = vunpack.c.l.b16 %v2352_v4  ;;  %v2393_v35 = vunpack.c.h.b16 %v2352_v4 }
 0x29e   :  { %v6339_v23 = vunpack.c.l.b16 %v2353_v9  ;;  %3223 = vmatmul.bf16.gmra.mxu3 %v2889_v12  ;;  %v2395_v38 = vunpack.c.h.b16 %v2353_v9  ;;  %v2191_v30 = vshrl.u32 %v6316_v48, 16  ;;  %v2269_v1 = vshll.u32 %v6316_v48, 16 }
 0x29f   :  { %v6793_v59 = vmov %v6792_v52  ;;  %v2420_v34 = vpack.c.b16 %v2392_v55, %v2392_v55  ;;  %v2421_v8 = vpack.c.b16 %v2393_v35, %v2393_v35  ;;  %v6794_v2 = vshrl.u32 %v6155_v54, 16  ;;  %3738 = vmatpush.bf16.msra.mxu3 %v4828_v18  ;;  %v4827_v52 = vld [vmem:[#allocation7 + $0x190] sm:$0xff]  ;;  %3484 = vmatpush.bf16.msra.mxu2 %v4797_v56 }
 0x2a0   :  { %v2307_v13 = vrot.slane %v6793_v59, 7  ;;  %v2422_v24 = vpack.c.b16 %v6339_v23, %v6339_v23  ;;  %v2871_v48 = vpack.c.b16 %v6337_v47, %v6331_v32  ;;  %v2423_v14 = vpack.c.b16 %v2395_v38, %v2395_v38  ;;  %3789 = vmatpush.bf16.msra.mxu0 %v4834_v42  ;;  %v4833_v42 = vld [vmem:[#allocation7 + $0x1c0] sm:$0xff] }
 0x2a1   :  { %v2339_v12 = vsel %vm5078_vm4, %v6794_v2, %v2275_v62  ;;  %v2854_v28 = vpack.c.b16 %v6339_v23, %v2392_v55  ;;  %v2268_v10 = vrot.slane %v2191_v30, 7  ;;  %v4412_v46 = vrot.slane %v2420_v34, 9  ;;  %v4796_v2 = vld [vmem:[#allocation7 + $0x98] sm:$0xff] }
 0x2a2   :  { %v2668_v61 = vrot.slane %v2421_v8, 5  ;;  %v4413_v43 = vrot.slane %v2422_v24, 9  ;;  %v2581_v36 = vshrl.u32 %v2420_v34, 16  ;;  %v2672_v25 = vrot.slane %v2423_v14, 5 }
 0x2a3   :  { %v2584_v54 = vshll.u32 %v2420_v34, 16  ;;  %v2590_v4 = vshll.u32 %v2421_v8, 16  ;;  %v2595_v9 = vshrl.u32 %v2422_v24, 16  ;;  %v6355_v62 = vpack.c.b16 %v2392_v55, %v6283_v40  ;;  %3739 = vmatpush.bf16.msra.mxu3 %v4827_v52  ;;  %v4826_v52 = vld [vmem:[#allocation7 + $0x188] sm:$0xff]  ;;  %3485 = vmatpush.bf16.msra.mxu2 %v4796_v2 }
 0x2a4   :  { %v6359_v11 = vsel %vm5470_vm11, %v4412_v46, %v2668_v61  ;;  %v2583_v35 = vrot.slane %v2581_v36, 4  ;;  %v2598_v38 = vshll.u32 %v2422_v24, 16  ;;  %3174 = vmatmul.bf16.gmra.mxu2 %v2871_v48  ;;  %v6363_v59 = vsel %vm5470_vm11, %v4413_v43, %v2672_v25  ;;  %3790 = vmatpush.bf16.msra.mxu0 %v4833_v42 }
 0x2a5   :  { %v6736_v18 = vunpack.c.l.b16 %v6359_v11  ;;  %v2586_v34 = vrot.slane %v2584_v54, 5  ;;  %v2604_v8 = vshll.u32 %v2423_v14, 16  ;;  %v6735_v40 = vunpack.c.l.b16 %v6363_v59  ;;  %v4848_v54 = vld [vmem:[#allocation7 + $0x238] sm:$0xff] }
 0x2a6   :  { %v2592_v55 = vrot.slane %v2590_v4, 5  ;;  %v2597_v37 = vrot.slane %v2595_v9, 4  ;;  %v2600_v46 = vrot.slane %v2598_v38, 5  ;;  %v2271_v24 = vor.u32 %v2269_v1, %v2268_v10  ;;  %3130 = vmatmul.bf16.gmra.mxu1 %v2854_v28 }
 0x2a7   :  { %v2587_v61 = vor.u32 %v2586_v34, %v2583_v35  ;;  %v2306_v56 = vrot.slane %v2269_v1, 7  ;;  %v2355_v48 = vsel %vm5084_vm5, %v2339_v12, %v2307_v13  ;;  %3421 = vmatmul.bf16.gmra.mxu0 %v6355_v62  ;;  %v2890_v14 = vpack.c.b16 %v6735_v40, %v6736_v18  ;;  %v4795_v12 = vld [vmem:[#allocation7 + $0x90] sm:$0xff]  ;;  %3740 = vmatpush.bf16.msra.mxu3 %v4826_v52  ;;  %v4825_v34 = vld [vmem:[#allocation7 + $0x180] sm:$0xff] }
 0x2a8   :  { %v2601_v43 = vor.u32 %v2600_v46, %v2597_v37  ;;  %v6374_v36 = vunpack.c.l.b16 %v2355_v48  ;;  %v2807_v25 = vunpack.c.h.b16 %v2355_v48  ;;  %v2606_v1 = vrot.slane %v2604_v8, 5  ;;  %3832 = vmatpush.bf16.msra.mxu1 %v4848_v54  ;;  %3486 = vmatpush.bf16.msra.mxu2 %v4795_v12 }
 0x2a9   :  { %v2588_v10 = vrot.slane %v2587_v61, 4  ;;  %v2338_v13 = vsel %vm5078_vm4, %v2191_v30, %v2271_v24  ;;  %v6795_v28 = vunpack.c.l.b16 %v6151_v57  ;;  %v6802_v44 = vunpack.c.l.b16 %v6363_v59 }
 0x2aa   :  { %v2602_v9 = vrot.slane %v2601_v43, 4  ;;  %v2354_v37 = vsel %vm5084_vm5, %v2338_v13, %v2306_v56  ;;  %v2810_v35 = vpack.c.b16 %v6374_v36, %v6374_v36  ;;  %v2811_v38 = vpack.c.b16 %v2807_v25, %v2807_v25 }
 0x2ab   :  { %v6381_v4 = vpack.c.b16 %v6160_v63, %v6795_v28  ;;  %v2593_v50 = vsel %vm5171_vm8, %v2588_v10, %v2592_v55  ;;  %v6389_v30 = vunpack.c.l.b16 %v2354_v37  ;;  %v2397_v57 = vunpack.c.h.b16 %v2354_v37  ;;  %v4794_v55 = vld [vmem:[#allocation7 + $0x88] sm:$0xff]  ;;  %3741 = vmatpush.bf16.msra.mxu3 %v4825_v34  ;;  %v4793_v34 = vld [vmem:[#allocation7 + $0x80] sm:$0xff] }
 0x2ac   :  { %v2607_v8 = vsel %vm5171_vm8, %v2602_v9, %v2606_v1  ;;  %v6393_v42 = vunpack.c.l.b16 %v2593_v50  ;;  %v4416_v15 = vrot.slane %v2810_v35, 9  ;;  %v2846_v2 = vrot.slane %v2811_v38, 5  ;;  %3487 = vmatpush.bf16.msra.mxu2 %v4794_v55  ;;  %v4847_v55 = vld [vmem:[#allocation7 + $0x230] sm:$0xff] }
 0x2ad   :  { %6796 = vst [vmem:[#allocation21_spill] sm:$0xff] %v6381_v4  ;;  %v6395_v46 = vunpack.c.l.b16 %v2607_v8  ;;  %v2425_v61 = vpack.c.b16 %v2397_v57, %v2397_v57  ;;  %v2855_v24 = vpack.c.b16 %v6374_v36, %v6389_v30  ;;  %v6401_v56 = vpack.c.b16 %v6389_v30, %v6339_v23  ;;  %3833 = vmatpush.bf16.msra.mxu1 %v4847_v55 }
 0x2ae   :  { %v2424_v48 = vpack.c.b16 %v6389_v30, %v6389_v30  ;;  %v2847_v43 = vsel %vm5470_vm11, %v4416_v15, %v2846_v2  ;;  %v2827_v25 = vshrl.u32 %v2810_v35, 16  ;;  %v2830_v52 = vshll.u32 %v2810_v35, 16  ;;  %3228 = vmatmul.bf16.gmra.mxu3 %v2890_v14 }
 0x2af   :  { %v2872_v54 = vpack.c.b16 %v6395_v46, %v6393_v42  ;;  %v2676_v10 = vrot.slane %v2425_v61, 5  ;;  %v2883_v12 = vunpack.c.l.b16 %v2847_v43  ;;  %v2836_v37 = vshll.u32 %v2811_v38, 16 }
 0x2b0   :  { %v4414_v1 = vrot.slane %v2424_v48, 9  ;;  %v2609_v13 = vshrl.u32 %v2424_v48, 16  ;;  %v2612_v23 = vshll.u32 %v2424_v48, 16  ;;  %v2829_v28 = vrot.slane %v2827_v25, 4  ;;  %3488 = vmatpush.bf16.msra.mxu2 %v4793_v34 }
 0x2b1   :  { %v2832_v9 = vrot.slane %v2830_v52, 5  ;;  %v2618_v35 = vshll.u32 %v2425_v61, 16  ;;  %v2838_v4 = vrot.slane %v2836_v37, 5 }
 0x2b2   :  { %v2677_v50 = vsel %vm5470_vm11, %v4414_v1, %v2676_v10  ;;  %v2611_v57 = vrot.slane %v2609_v13, 4  ;;  %v2614_v8 = vrot.slane %v2612_v23, 5  ;;  %v6798_v10 = vunpack.c.l.b16 %v6251_v39 }
 0x2b3   :  { %v2737_v14 = vunpack.c.l.b16 %v2677_v50  ;;  %v2833_v15 = vor.u32 %v2832_v9, %v2829_v28  ;;  %v2620_v25 = vrot.slane %v2618_v35, 5  ;;  %v6800_v23 = vunpack.c.l.b16 %v6302_v6 }
 0x2b4   :  { %v2615_v2 = vor.u32 %v2614_v8, %v2611_v57  ;;  %3179 = vmatmul.bf16.gmra.mxu2 %v2872_v54  ;;  %v6431_v1 = vpack.c.b16 %v6798_v10, %v6256_v53  ;;  %v6801_v28 = vunpack.c.l.b16 %v6359_v11  ;;  %v6459_v6 = vpack.c.b16 %v6393_v42, %v6337_v47 }
 0x2b5   :  { %v2891_v40 = vpack.c.b16 %v2883_v12, %v2737_v14  ;;  %v2834_v18 = vrot.slane %v2833_v15, 4  ;;  %v6446_v31 = vpack.c.b16 %v2737_v14, %v6802_v44  ;;  %v6448_v39 = vpack.c.b16 %v2737_v14, %v2883_v12 }
 0x2b6   :  { %v2616_v48 = vrot.slane %v2615_v2, 4  ;;  %3135 = vmatmul.bf16.gmra.mxu1 %v2855_v24  ;;  %v4846_v24 = vld [vmem:[#allocation7 + $0x228] sm:$0xff]  ;;  %v6442_v9 = vpack.c.b16 %v6801_v28, %v6800_v23  ;;  %v4844_v2 = vld [vmem:[#allocation7 + $0x218] sm:$0xff] }
 0x2b7   :  { %v2839_v38 = vsel %vm5171_vm8, %v2834_v18, %v2838_v4  ;;  %3426 = vmatmul.bf16.gmra.mxu0 %v6401_v56  ;;  %v3531_v18 = vpack.c.b16 %v6389_v30, %v6374_v36  ;;  %3834 = vmatpush.bf16.msra.mxu1 %v4846_v24 }
 0x2b8   :  { %v2621_v20 = vsel %vm5171_vm8, %v2616_v48, %v2620_v25  ;;  %v6416_v61 = vunpack.c.l.b16 %v2839_v38 }
 0x2b9   :  { %v6418_v43 = vunpack.c.l.b16 %v2621_v20 }
 0x2ba   :  { %v3101_v54 = vpop.f32.mrf.mxu1 }
 0x2bb   :  { %v2873_v52 = vpack.c.b16 %v6416_v61, %v6418_v43  ;;  %v6463_v11 = vpack.c.b16 %v6418_v43, %v6395_v46  ;;  %v3535_v59 = vpack.c.b16 %v6418_v43, %v6416_v61  ;;  %v6483_v55 = vpop.f32.mrf.mxu0 }
 0x2be   :  { %3233 = vmatmul.bf16.gmra.mxu3 %v2891_v40  ;;  %v6799_v40 = vunpack.c.l.b16 %v6298_v19  ;;  %v6455_v19 = vpack.c.b16 %v6331_v32, %v6285_v16 }
 0x2c0   :  { %v6436_v13 = vpack.c.b16 %v6799_v40, %v6256_v53  ;;  %v2712_v53 = vpack.c.b16 %v6281_v51, %v6285_v16  ;;  %v4845_v16 = vld [vmem:[#allocation7 + $0x220] sm:$0xff] }
 0x2c1   :  { %3835 = vmatpush.bf16.msra.mxu1 %v4845_v16  ;;  %v4842_v16 = vld [vmem:[#allocation7 + $0x208] sm:$0xff] }
 0x2c2   :  { %v3103_v4 = vpop.f32.mrf.mxu1 }
 0x2c3   :  { %v6492_v23 = vpop.f32.mrf.mxu0 }
 0x2c4   :  { %3184 = vmatmul.bf16.gmra.mxu2 %v2873_v52 }
 0x2c5   :  { %3836 = vmatpush.bf16.msra.mxu1 %v4844_v2 }
 0x2c6   :  { %3440 = vmatmul.bf16.vlgmr.msrb.gmra.mxu1 %v6797_v0  ;;  %v6803_v0 = vpack.c.b16 %v6197_v45, %v6190_v21 }
 0x2c7   :  { %3791 = vmatmul.bf16.vlgmr.msra.gmra.mxu0 %v6057_v49 }
 0x2c8   :  { %v3199_v37 = vpop.f32.mrf.mxu3 }
 0x2ca   :  { %v3106_v50 = vpop.f32.mrf.mxu1 }
 0x2ce   :  { %3742 = vmatmul.bf16.vlgmr.msra.gmra.mxu3 %v6003_v27 }
 0x2d0   :  { %v3150_v12 = vpop.f32.mrf.mxu2  ;;  %v3201_v27 = vpop.f32.mrf.mxu3 }
 0x2d1   :  { %v3151_v57 = vadd.f32 %v3150_v12, %v3101_v54 }
 0x2d2   :  { %v3108_v8 = vpop.f32.mrf.mxu1 }
 0x2d3   :  { %v6468_v51 = vadd.f32 %v3199_v37, %v3151_v57  ;;  %v6804_v37 = vpack.c.b16 %v6130_v26, %v6121_v60  ;;  %v6507_v57 = vpop.f32.mrf.mxu0 }
 0x2d4   :  { %3489 = vmatmul.bf16.vlgmr.msra.gmra.mxu2 %v6176_v5 }
 0x2d6   :  { %3445 = vmatmul.bf16.gmra.mxu1 %v6057_v49 }
 0x2d7   :  { %3796 = vmatmul.bf16.gmra.mxu0 %v6180_v17 }
 0x2d8   :  { %v3152_v32 = vpop.f32.mrf.mxu2  ;;  %v3204_v47 = vpop.f32.mrf.mxu3 }
 0x2d9   :  { %v3153_v42 = vadd.f32 %v3152_v32, %v3103_v4 }
 0x2da   :  { %v3111_v35 = vpop.f32.mrf.mxu1 }
 0x2db   :  { %v6472_v46 = vadd.f32 %v3201_v27, %v3153_v42 }
 0x2dd   :  { %v3395_v36 = vadd.f32 %v6492_v23, %v6472_v46 }
 0x2de   :  { %3747 = vmatmul.bf16.gmra.mxu3 %v6072_v58 }
 0x2e0   :  { %v3155_v34 = vpop.f32.mrf.mxu2  ;;  %v3206_v14 = vpop.f32.mrf.mxu3 }
 0x2e1   :  { %v3156_v15 = vadd.f32 %v3155_v34, %v3106_v50 }
 0x2e2   :  { %v3113_v49 = vpop.f32.mrf.mxu1 }
 0x2e3   :  { %v6476_v5 = vadd.f32 %v3204_v47, %v3156_v15 }
 0x2e4   :  { %3494 = vmatmul.bf16.gmra.mxu2 %v6195_v33 }
 0x2e6   :  { %3450 = vmatmul.bf16.gmra.mxu1 %v6180_v17 }
 0x2e7   :  { %3801 = vmatmul.bf16.gmra.mxu0 %v6218_v3 }
 0x2e8   :  { %v3157_v48 = vpop.f32.mrf.mxu2  ;;  %v3209_v25 = vpop.f32.mrf.mxu3 }
 0x2e9   :  { %v3158_v38 = vadd.f32 %v3157_v48, %v3108_v8 }
 0x2ea   :  { %v3116_v58 = vpop.f32.mrf.mxu1 }
 0x2eb   :  { %v6480_v20 = vadd.f32 %v3206_v14, %v3158_v38 }
 0x2ee   :  { %3752 = vmatmul.bf16.gmra.mxu3 %v6145_v41  ;;  %v4843_v41 = vld [vmem:[#allocation7 + $0x210] sm:$0xff] }
 0x2ef   :  { %3837 = vmatpush.bf16.msra.mxu1 %v4843_v41 }
 0x2f0   :  { %v3160_v52 = vpop.f32.mrf.mxu2  ;;  %v3211_v4 = vpop.f32.mrf.mxu3 }
 0x2f1   :  { %v3161_v54 = vadd.f32 %v3160_v52, %v3111_v35 }
 0x2f2   :  { %v3118_v10 = vpop.f32.mrf.mxu1 }
 0x2f3   :  { %v6486_v17 = vadd.f32 %v3209_v25, %v3161_v54  ;;  %3838 = vmatpush.bf16.msra.mxu1 %v4842_v16 }
 0x2f4   :  { %3499 = vmatmul.bf16.gmra.mxu2 %v6207_v29 }
 0x2f6   :  { %3455 = vmatmul.bf16.gmra.mxu1 %v6218_v3  ;;  %v6805_v3 = vunpack.c.l.b16 %v6086_v22 }
 0x2f7   :  { %3806 = vmatmul.bf16.gmra.mxu0 %v6803_v0 }
 0x2f8   :  { %v3162_v24 = vpop.f32.mrf.mxu2  ;;  %v3214_v44 = vpop.f32.mrf.mxu3  ;;  %v6502_v21 = vpack.c.b16 %v6160_v63, %v6805_v3 }
 0x2f9   :  { %v3163_v40 = vadd.f32 %v3162_v24, %v3113_v49  ;;  %v6513_v63 = vpop.f32.mrf.mxu0  ;;  %v4841_v49 = vld [vmem:[#allocation7 + $0x200] sm:$0xff] }
 0x2fa   :  { %3839 = vmatpush.bf16.msra.mxu1 %v4841_v49 }
 0x2fb   :  { %v6494_v28 = vadd.f32 %v3211_v4, %v3163_v40 }
 0x2fe   :  { %3757 = vmatmul.bf16.gmra.mxu3 %v6804_v37 }
 0x300   :  { %v3165_v50 = vpop.f32.mrf.mxu2  ;;  %v3216_v8 = vpop.f32.mrf.mxu3 }
 0x301   :  { %v3166_v45 = vadd.f32 %v3165_v50, %v3116_v58  ;;  %v6518_v34 = vpop.f32.mrf.mxu0 }
 0x303   :  { %v3121_v12 = vpop.f32.mrf.mxu1  ;;  %v6505_v27 = vadd.f32 %v3214_v44, %v3166_v45 }
 0x304   :  { %3504 = vmatmul.bf16.gmra.mxu2 %v6502_v21 }
 0x306   :  { %3460 = vmatmul.bf16.gmra.mxu1 %v2712_v53 }
 0x307   :  { %3811 = vmatmul.bf16.gmra.mxu0 %v6455_v19 }
 0x308   :  { %v3167_v60 = vpop.f32.mrf.mxu2 }
 0x309   :  { %v3168_v26 = vadd.f32 %v3167_v60, %v3118_v10  ;;  %v3404_v38 = vpop.f32.mrf.mxu0 }
 0x30b   :  { %v3123_v32 = vpop.f32.mrf.mxu1  ;;  %v6510_v22 = vadd.f32 %v3216_v8, %v3168_v26 }
 0x30e   :  { %3762 = vmatmul.bf16.gmra.mxu3 %v6288_v7 }
 0x311   :  { %v3219_v47 = vpop.f32.mrf.mxu3 }
 0x313   :  { %v3126_v42 = vpop.f32.mrf.mxu1 }
 0x314   :  { %3509 = vmatmul.bf16.gmra.mxu2 %v6431_v1 }
 0x316   :  { %3465 = vmatmul.bf16.gmra.mxu1 %v6455_v19 }
 0x317   :  { %v3170_v35 = vpop.f32.mrf.mxu2  ;;  %3816 = vmatmul.bf16.gmra.mxu0 %v6459_v6 }
 0x318   :  { %v3171_v53 = vadd.f32 %v3170_v35, %v3121_v12  ;;  %v3398_v35 = vadd.f32 %v6507_v57, %v6476_v5  ;;  %v3405_v5 = vadd.f32 %v3404_v38, %v6494_v28 }
 0x319   :  { %v3221_v14 = vpop.f32.mrf.mxu3 }
 0x31a   :  { %v6520_v15 = vadd.f32 %v3219_v47, %v3171_v53 }
 0x31b   :  { %v3128_v2 = vpop.f32.mrf.mxu1 }
 0x31e   :  { %3767 = vmatmul.bf16.gmra.mxu3 %v6355_v62  ;;  %v3407_v62 = vpop.f32.mrf.mxu0 }
 0x31f   :  { %v3172_v7 = vpop.f32.mrf.mxu2 }
 0x320   :  { %v3173_v48 = vadd.f32 %v3172_v7, %v3123_v32 }
 0x321   :  { %v3224_v25 = vpop.f32.mrf.mxu3 }
 0x322   :  { %v6523_v1 = vadd.f32 %v3221_v14, %v3173_v48 }
 0x323   :  { %v3131_v19 = vpop.f32.mrf.mxu1 }
 0x324   :  { %3514 = vmatmul.bf16.gmra.mxu2 %v6436_v13 }
 0x326   :  { %3470 = vmatmul.bf16.gmra.mxu1 %v6459_v6  ;;  %v3409_v37 = vpop.f32.mrf.mxu0 }
 0x327   :  { %v3175_v58 = vpop.f32.mrf.mxu2  ;;  %3821 = vmatmul.bf16.gmra.mxu0 %v6463_v11 }
 0x328   :  { %v3176_v52 = vadd.f32 %v3175_v58, %v3126_v42 }
 0x329   :  { %v3226_v54 = vpop.f32.mrf.mxu3 }
 0x32a   :  { %v6528_v4 = vadd.f32 %v3224_v25, %v3176_v52  ;;  %v6806_v52 = vld [vmem:[#allocation21_spill] sm:$0xff] }
 0x32b   :  { %v3133_v0 = vpop.f32.mrf.mxu1 }
 0x32e   :  { %3772 = vmatmul.bf16.gmra.mxu3 %v6401_v56  ;;  %v3412_v23 = vpop.f32.mrf.mxu0 }
 0x32f   :  { %v3177_v24 = vpop.f32.mrf.mxu2  ;;  %v3413_v28 = vadd.f32 %v3412_v23, %v6520_v15 }
 0x330   :  { %v3178_v10 = vadd.f32 %v3177_v24, %v3128_v2  ;;  %v3403_v2 = vadd.f32 %v6518_v34, %v6486_v17  ;;  %v3410_v17 = vadd.f32 %v3409_v37, %v6510_v22 }
 0x331   :  { %v3229_v41 = vpop.f32.mrf.mxu3 }
 0x332   :  { %v6531_v40 = vadd.f32 %v3226_v54, %v3178_v10 }
 0x333   :  { %v3136_v44 = vpop.f32.mrf.mxu1 }
 0x334   :  { %3519 = vmatmul.bf16.gmra.mxu2 %v6442_v9 }
 0x336   :  { %3475 = vmatmul.bf16.gmra.mxu1 %v6463_v11  ;;  %v3393_v11 = vadd.f32 %v6483_v55, %v6468_v51  ;;  %v3414_v25 = vpop.f32.mrf.mxu0 }
 0x337   :  { %v3180_v6 = vpop.f32.mrf.mxu2  ;;  %3826 = vmatmul.bf16.gmra.mxu0 %v3535_v59 }
 0x338   :  { %v3181_v50 = vadd.f32 %v3180_v6, %v3131_v19 }
 0x339   :  { %v3231_v45 = vpop.f32.mrf.mxu3 }
 0x33a   :  { %v6538_v3 = vadd.f32 %v3229_v41, %v3181_v50 }
 0x33b   :  { %v3138_v56 = vpop.f32.mrf.mxu1 }
 0x33e   :  { %3777 = vmatmul.bf16.gmra.mxu3 %v3531_v18  ;;  %v3417_v58 = vpop.f32.mrf.mxu0 }
 0x33f   :  { %v3182_v12 = vpop.f32.mrf.mxu2  ;;  %v3418_v41 = vadd.f32 %v3417_v58, %v6528_v4 }
 0x340   :  { %v3183_v8 = vadd.f32 %v3182_v12, %v3133_v0 }
 0x341   :  { %v3234_v43 = vpop.f32.mrf.mxu3 }
 0x342   :  { %v6543_v60 = vadd.f32 %v3231_v45, %v3183_v8 }
 0x343   :  { %v3441_v26 = vpop.f32.mrf.mxu1 }
 0x344   :  { %3524 = vmatmul.bf16.gmra.mxu2 %v6446_v31  ;;  %v6548_v61 = vadd.f32 %v3441_v26, %v3393_v11 }
 0x346   :  { %3840 = vmatmul.bf16.vlgmr.msra.gmra.mxu1 %v6195_v33  ;;  %v3400_v33 = vadd.f32 %v6513_v63, %v6480_v20  ;;  %v3408_v20 = vadd.f32 %v3407_v62, %v6505_v27  ;;  %v3415_v62 = vadd.f32 %v3414_v25, %v6523_v1 }
 0x347   :  { %v3185_v59 = vpop.f32.mrf.mxu2 }
 0x348   :  { %v3186_v16 = vadd.f32 %v3185_v59, %v3136_v44 }
 0x349   :  { %v3236_v51 = vpop.f32.mrf.mxu3 }
 0x34a   :  { %v3235_v32 = vadd.f32 %v3234_v43, %v3186_v16 }
 0x34b   :  { %v3443_v30 = vpop.f32.mrf.mxu1 }
 0x34c   :  { %v6553_v18 = vadd.f32 %v3443_v30, %v3395_v36 }
 0x34f   :  { %v3187_v47 = vpop.f32.mrf.mxu2 }
 0x350   :  { %v3188_v42 = vadd.f32 %v3187_v47, %v3138_v56 }
 0x352   :  { %v3237_v55 = vadd.f32 %v3236_v51, %v3188_v42 }
 0x353   :  { %v3446_v53 = vpop.f32.mrf.mxu1 }
 0x354   :  { %v6557_v14 = vadd.f32 %v3446_v53, %v3398_v35 }
 0x356   :  { %3845 = vmatmul.bf16.gmra.mxu1 %v6207_v29 }
 0x357   :  { %v3490_v43 = vpop.f32.mrf.mxu2 }
 0x35b   :  { %v3448_v49 = vpop.f32.mrf.mxu1 }
 0x35c   :  { %v6562_v46 = vadd.f32 %v3448_v49, %v3400_v33 }
 0x35f   :  { %v3492_v42 = vpop.f32.mrf.mxu2 }
 0x363   :  { %v3451_v7 = vpop.f32.mrf.mxu1 }
 0x364   :  { %v6566_v48 = vadd.f32 %v3451_v7, %v3403_v2  ;;  %v3491_v2 = vadd.f32 %v3490_v43, %v6548_v61  ;;  %v3493_v7 = vadd.f32 %v3492_v42, %v6553_v18 }
 0x366   :  { %3850 = vmatmul.bf16.gmra.mxu1 %v6502_v21  ;;  %v3419_v21 = vpop.f32.mrf.mxu0 }
 0x367   :  { %v3420_v15 = vadd.f32 %v3419_v21, %v6531_v40  ;;  %v3495_v53 = vpop.f32.mrf.mxu2 }
 0x36b   :  { %v3453_v57 = vpop.f32.mrf.mxu1 }
 0x36c   :  { %v6570_v29 = vadd.f32 %v3453_v57, %v3405_v5 }
 0x36e   :  { %v3422_v27 = vpop.f32.mrf.mxu0 }
 0x36f   :  { %v3423_v56 = vadd.f32 %v3422_v27, %v6538_v3 }
 0x373   :  { %v3456_v63 = vpop.f32.mrf.mxu1 }
 0x374   :  { %v6573_v19 = vadd.f32 %v3456_v63, %v3408_v20  ;;  %v3497_v63 = vpop.f32.mrf.mxu2 }
 0x375   :  { %v3498_v18 = vadd.f32 %v3497_v63, %v6562_v46 }
 0x376   :  { %3855 = vmatmul.bf16.gmra.mxu1 %v6806_v52  ;;  %v3424_v44 = vpop.f32.mrf.mxu0 }
 0x377   :  { %v3425_v12 = vadd.f32 %v3424_v44, %v6543_v60 }
 0x37b   :  { %v3458_v34 = vpop.f32.mrf.mxu1 }
 0x37c   :  { %v6577_v54 = vadd.f32 %v3458_v34, %v3410_v17  ;;  %v3496_v17 = vadd.f32 %v3495_v53, %v6557_v14  ;;  %v3500_v61 = vpop.f32.mrf.mxu2 }
 0x383   :  { %v3461_v38 = vpop.f32.mrf.mxu1 }
 0x384   :  { %v6580_v0 = vadd.f32 %v3461_v38, %v3413_v28 }
 0x386   :  { %3860 = vmatmul.bf16.gmra.mxu1 %v6436_v13  ;;  %v3427_v13 = vpop.f32.mrf.mxu0 }
 0x387   :  { %v3428_v40 = vadd.f32 %v3427_v13, %v3235_v32 }
 0x38b   :  { %v3463_v24 = vpop.f32.mrf.mxu1 }
 0x38c   :  { %v6584_v10 = vadd.f32 %v3463_v24, %v3415_v62 }
 0x38e   :  { %v3429_v4 = vpop.f32.mrf.mxu0 }
 0x38f   :  { %v3430_v3 = vadd.f32 %v3429_v4, %v3237_v55  ;;  %v3502_v4 = vpop.f32.mrf.mxu2 }
 0x393   :  { %v3466_v22 = vpop.f32.mrf.mxu1 }
 0x394   :  { %v6587_v37 = vadd.f32 %v3466_v22, %v3418_v41 }
 0x396   :  { %3865 = vmatmul.bf16.gmra.mxu1 %v6442_v9  ;;  %v3743_v9 = vpop.f32.mrf.mxu3  ;;  %v3792_v26 = vpop.f32.mrf.mxu0 }
 0x397   :  { %v3793_v33 = vadd.f32 %v3792_v26, %v3743_v9 }
 0x39b   :  { %v3468_v6 = vpop.f32.mrf.mxu1 }
 0x39c   :  { %v6591_v50 = vadd.f32 %v3468_v6, %v3420_v15 }
 0x39e   :  { %v3745_v36 = vpop.f32.mrf.mxu3  ;;  %v3794_v47 = vpop.f32.mrf.mxu0 }
 0x39f   :  { %v3795_v49 = vadd.f32 %v3794_v47, %v3745_v36  ;;  %v3505_v36 = vpop.f32.mrf.mxu2 }
 0x3a3   :  { %v3471_v1 = vpop.f32.mrf.mxu1 }
 0x3a4   :  { %v6594_v45 = vadd.f32 %v3471_v1, %v3423_v56  ;;  %v3501_v56 = vadd.f32 %v3500_v61, %v6566_v48 }
 0x3a6   :  { %3870 = vmatmul.bf16.gmra.mxu1 %v6446_v31  ;;  %v3748_v51 = vpop.f32.mrf.mxu3  ;;  %v3797_v35 = vpop.f32.mrf.mxu0 }
 0x3a7   :  { %v3798_v58 = vadd.f32 %v3797_v35, %v3748_v51 }
 0x3ab   :  { %v3473_v8 = vpop.f32.mrf.mxu1 }
 0x3ac   :  { %v6598_v11 = vadd.f32 %v3473_v8, %v3425_v12 }
 0x3ae   :  { %v3750_v57 = vpop.f32.mrf.mxu3  ;;  %v3799_v25 = vpop.f32.mrf.mxu0 }
 0x3af   :  { %v3800_v62 = vadd.f32 %v3799_v25, %v3750_v57 }
 0x3b3   :  { %v3476_v59 = vpop.f32.mrf.mxu1 }
 0x3b4   :  { %v6600_v16 = vadd.f32 %v3476_v59, %v3428_v40  ;;  %v3503_v40 = vadd.f32 %v3502_v4, %v6570_v29 }
 0x3b6   :  { %3875 = vmatmul.bf16.gmra.mxu1 %v6448_v39  ;;  %v3753_v38 = vpop.f32.mrf.mxu3  ;;  %v3802_v27 = vpop.f32.mrf.mxu0 }
 0x3b7   :  { %v3803_v15 = vadd.f32 %v3802_v27, %v3753_v38 }
 0x3bb   :  { %v3478_v30 = vpop.f32.mrf.mxu1 }
 0x3bc   :  { %v6603_v31 = vadd.f32 %v3478_v30, %v3430_v3 }
 0x3be   :  { %v3755_v6 = vpop.f32.mrf.mxu3  ;;  %v3804_v14 = vpop.f32.mrf.mxu0 }
 0x3bf   :  { %v3805_v9 = vadd.f32 %v3804_v14, %v3755_v6 }
 0x3c3   :  { %v3841_v60 = vpop.f32.mrf.mxu1 }
 0x3c4   :  { %v3842_v32 = vadd.f32 %v3841_v60, %v3793_v33  ;;  %v3506_v60 = vadd.f32 %v3505_v36, %v6573_v19 }
 0x3c6   :  { %v3881_v55 = vadd.f32 %v3842_v32, %v3491_v2  ;;  %v3758_v59 = vpop.f32.mrf.mxu3  ;;  %v3807_v3 = vpop.f32.mrf.mxu0 }
 0x3c7   :  { %v3808_v47 = vadd.f32 %v3807_v3, %v3758_v59 }
 0x3cb   :  { %v3843_v23 = vpop.f32.mrf.mxu1 }
 0x3cc   :  { %v3844_v39 = vadd.f32 %v3843_v23, %v3795_v49  ;;  %v3507_v49 = vpop.f32.mrf.mxu2 }
 0x3cd   :  { %v3508_v29 = vadd.f32 %v3507_v49, %v6577_v54 }
 0x3ce   :  { %v3882_v5 = vadd.f32 %v3844_v39, %v3493_v7  ;;  %v3760_v35 = vpop.f32.mrf.mxu3  ;;  %v3809_v33 = vpop.f32.mrf.mxu0 }
 0x3cf   :  { %v3810_v32 = vadd.f32 %v3809_v33, %v3760_v35 }
 0x3d0   :  { %v3897_v20 = vadd.f32 %v3882_v5, %v3881_v55 }
 0x3d3   :  { %v3846_v52 = vpop.f32.mrf.mxu1 }
 0x3d4   :  { %v3847_v34 = vadd.f32 %v3846_v52, %v3798_v58 }
 0x3d6   :  { %v3883_v21 = vadd.f32 %v3847_v34, %v3496_v17 }
 0x3d8   :  { %v3898_v28 = vadd.f32 %v3897_v20, %v3883_v21 }
 0x3db   :  { %v3848_v24 = vpop.f32.mrf.mxu1 }
 0x3dc   :  { %v3849_v41 = vadd.f32 %v3848_v24, %v3800_v62 }
 0x3de   :  { %v3884_v22 = vadd.f32 %v3849_v41, %v3498_v18 }
 0x3e0   :  { %v3899_v44 = vadd.f32 %v3898_v28, %v3884_v22 }
 0x3e3   :  { %v3851_v13 = vpop.f32.mrf.mxu1 }
 0x3e4   :  { %v3852_v1 = vadd.f32 %v3851_v13, %v3803_v15 }
 0x3e6   :  { %v3885_v12 = vadd.f32 %v3852_v1, %v3501_v56 }
 0x3e8   :  { %v3900_v8 = vadd.f32 %v3899_v44, %v3885_v12 }
 0x3eb   :  { %v3853_v26 = vpop.f32.mrf.mxu1 }
 0x3ec   :  { %v3854_v43 = vadd.f32 %v3853_v26, %v3805_v9  ;;  %v3812_v9 = vpop.f32.mrf.mxu0 }
 0x3ee   :  { %v3886_v46 = vadd.f32 %v3854_v43, %v3503_v40  ;;  %v3510_v40 = vpop.f32.mrf.mxu2 }
 0x3f0   :  { %v3901_v30 = vadd.f32 %v3900_v8, %v3886_v46  ;;  %v3763_v8 = vpop.f32.mrf.mxu3 }
 0x3f3   :  { %v3856_v42 = vpop.f32.mrf.mxu1 }
 0x3f4   :  { %v3857_v48 = vadd.f32 %v3856_v42, %v3808_v47 }
 0x3f6   :  { %v3887_v51 = vadd.f32 %v3857_v48, %v3506_v60  ;;  %v3512_v42 = vpop.f32.mrf.mxu2 }
 0x3f8   :  { %v3902_v53 = vadd.f32 %v3901_v30, %v3887_v51  ;;  %v3765_v36 = vpop.f32.mrf.mxu3  ;;  %v3814_v30 = vpop.f32.mrf.mxu0 }
 0x3fb   :  { %v3858_v23 = vpop.f32.mrf.mxu1 }
 0x3fc   :  { %v3859_v2 = vadd.f32 %v3858_v23, %v3810_v32  ;;  %v3813_v32 = vadd.f32 %v3812_v9, %v3763_v8 }
 0x3fe   :  { %v3888_v7 = vadd.f32 %v3859_v2, %v3508_v29  ;;  %v3515_v33 = vpop.f32.mrf.mxu2  ;;  %v3815_v29 = vadd.f32 %v3814_v30, %v3765_v36  ;;  %v4885_v30 = vld [vmem:[#allocation2 + $0x10] sm:$0xff] }
 0x400   :  { %v3903_v39 = vadd.f32 %v3902_v53, %v3888_v7  ;;  %v3817_v53 = vpop.f32.mrf.mxu0 }
 0x402   :  { %v3904_v57 = vrot.slane %v3903_v39, 4 }
 0x403   :  { %v3861_v48 = vpop.f32.mrf.mxu1 }
 0x404   :  { %v3905_v25 = vadd.f32 %v3904_v57, %v3903_v39  ;;  %v3862_v2 = vadd.f32 %v3861_v48, %v3813_v32  ;;  %v3511_v57 = vadd.f32 %v3510_v40, %v6580_v0  ;;  %v6653_v0 = vld [vmem:[#allocation8] sm:$0xf]  ;;  %v4886_v48 = vld [vmem:[#allocation2 + $0x18] sm:$0xff] }
 0x406   :  { %v3906_v20 = vrot.slane %v3905_v25, 2 }
 0x408   :  { %v3907_v63 = vadd.f32 %v3906_v20, %v3905_v25  ;;  %v3513_v25 = vadd.f32 %v3512_v42, %v6584_v10 }
 0x40a   :  { %v3908_v58 = vrot.slane %v3907_v63, 1 }
 0x40b   :  { %v3863_v39 = vpop.f32.mrf.mxu1 }
 0x40c   :  { %v3909_v52 = vadd.f32 %v3908_v58, %v3907_v63  ;;  %v3864_v20 = vadd.f32 %v3863_v39, %v3815_v29  ;;  %v6647_v58 = vadd.f32 %v3862_v2, %v3511_v57  ;;  %v4889_v2 = vld [vmem:[#allocation2 + $0x30] sm:$0xff] }
 0x40e   :  { %v3923_v19 = vmul.f32 0.015625, %v3909_v52  ;;  %v6649_v52 = vadd.f32 %v3864_v20, %v3513_v25  ;;  %v4890_v25 = vld [vmem:[#allocation2 + $0x38] sm:$0xff] }
 0x410   :  { %v6613_v17 = vsub.f32 %v3881_v55, %v3923_v19  ;;  %v6615_v34 = vsub.f32 %v3882_v5, %v3923_v19  ;;  %v6617_v28 = vsub.f32 %v3883_v21, %v3923_v19  ;;  %v6619_v38 = vsub.f32 %v3884_v22, %v3923_v19 }
 0x411   :  { %v6621_v27 = vsub.f32 %v3885_v12, %v3923_v19  ;;  %v6623_v54 = vsub.f32 %v3886_v46, %v3923_v19  ;;  %v6625_v62 = vsub.f32 %v3887_v51, %v3923_v19  ;;  %v6627_v61 = vsub.f32 %v3888_v7, %v3923_v19  ;;  %v3768_v51 = vpop.f32.mrf.mxu3 }
 0x412   :  { %v3941_v24 = vmul.f32 %v6613_v17, %v6613_v17  ;;  %v3942_v55 = vmul.f32 %v6615_v34, %v6615_v34  ;;  %v3943_v5 = vmul.f32 %v6617_v28, %v6617_v28  ;;  %v3944_v18 = vmul.f32 %v6619_v38, %v6619_v38 }
 0x413   :  { %v3945_v22 = vmul.f32 %v6621_v27, %v6621_v27  ;;  %v3946_v15 = vmul.f32 %v6623_v54, %v6623_v54  ;;  %v3947_v13 = vmul.f32 %v6625_v62, %v6625_v62  ;;  %v3948_v1 = vmul.f32 %v6627_v61, %v6627_v61 }
 0x414   :  { %v3957_v21 = vadd.f32 %v3942_v55, %v3941_v24  ;;  %v3819_v55 = vpop.f32.mrf.mxu0 }
 0x416   :  { %v3958_v41 = vadd.f32 %v3957_v21, %v3943_v5  ;;  %v3910_v5 = vadd.f32 %v6649_v52, %v6647_v58  ;;  %v3517_v21 = vpop.f32.mrf.mxu2 }
 0x418   :  { %v3959_v44 = vadd.f32 %v3958_v41, %v3944_v18  ;;  %v3818_v41 = vadd.f32 %v3817_v53, %v3768_v51  ;;  %v4887_v53 = vld [vmem:[#allocation2 + $0x20] sm:$0xff] }
 0x419   :  { %v3770_v19 = vpop.f32.mrf.mxu3 }
 0x41a   :  { %v3960_v6 = vadd.f32 %v3959_v44, %v3945_v22  ;;  %v3866_v22 = vpop.f32.mrf.mxu1  ;;  %v6657_v44 = vperm.slane %v6653_v0, 3 }
 0x41c   :  { %v3961_v56 = vadd.f32 %v3960_v6, %v3946_v15  ;;  %v3867_v6 = vadd.f32 %v3866_v22, %v3818_v41 }
 0x41e   :  { %v3962_v14 = vadd.f32 %v3961_v56, %v3947_v13  ;;  %v3520_v42 = vpop.f32.mrf.mxu2 }
 0x420   :  { %v3963_v4 = vadd.f32 %v3962_v14, %v3948_v1 }
 0x422   :  { %v3964_v12 = vrot.slane %v3963_v4, 4  ;;  %v3868_v51 = vpop.f32.mrf.mxu1 }
 0x424   :  { %v3965_v26 = vadd.f32 %v3964_v12, %v3963_v4 }
 0x426   :  { %v3966_v43 = vrot.slane %v3965_v26, 2 }
 0x428   :  { %v3967_v59 = vadd.f32 %v3966_v43, %v3965_v26  ;;  %v3820_v43 = vadd.f32 %v3819_v55, %v3770_v19  ;;  %v3521_v55 = vadd.f32 %v3520_v42, %v6594_v45 }
 0x42a   :  { %v3968_v46 = vrot.slane %v3967_v59, 1  ;;  %v3869_v32 = vadd.f32 %v3868_v51, %v3820_v43 }
 0x42c   :  { %v3969_v3 = vadd.f32 %v3968_v46, %v3967_v59  ;;  %v3822_v59 = vpop.f32.mrf.mxu0 }
 0x42e   :  { %v3983_v47 = vmul.f32 0.015625, %v3969_v3  ;;  %v4884_v3 = vld [vmem:[#allocation2 + $0x8] sm:$0xff] }
 0x430   :  { %v3985_v60 = vadd.f32 1e-05, %v3983_v47 }
 0x432   :  { %4878 = vrsqrt.f32 %v3985_v60  ;;  %vm3993_vm3 = vweird.f32 %v3985_v60 }
 0x438   :  { %v4879_v35 = vpop.eup %4878 }
 0x439   :  { %v3988_v49 = vmul.f32 %v4879_v35, %v3985_v60  ;;  %vm3994_vm2 = vweird.f32 %v4879_v35 }
 0x43a   :  { %vm3995_vm4 = vmor %vm3993_vm3, %vm3994_vm2 }
 0x43b   :  { %v3989_v23 = vmul.f32 %v4879_v35, %v3988_v49 }
 0x43d   :  { %v3990_v7 = vmul.f32 0.5, %v3989_v23  ;;  %v4888_v23 = vld [vmem:[#allocation2 + $0x28] sm:$0xff] }
 0x43f   :  { %v3991_v63 = vsub.f32 1.5, %v3990_v7 }
 0x441   :  { %v3992_v24 = vmul.f32 %v4879_v35, %v3991_v63 }
 0x443   :  { %v3996_v18 = vsel %vm3995_vm4, %v4879_v35, %v3992_v24  ;;  %v3518_v35 = vadd.f32 %v3517_v21, %v6591_v50  ;;  %v3871_v24 = vpop.f32.mrf.mxu1 }
 0x444   :  { %v4007_v10 = vmul.f32 %v6653_v0, %v3996_v18  ;;  %v3824_v18 = vpop.f32.mrf.mxu0 }
 0x445   :  { %v3892_v57 = vadd.f32 %v3869_v32, %v3518_v35 }
 0x446   :  { %v4009_v15 = vperm.slane %v4007_v10, 2  ;;  %v3522_v10 = vpop.f32.mrf.mxu2 }
 0x448   :  { %v4011_v13 = vmul.f32 %v4009_v15, %v6613_v17  ;;  %v4012_v56 = vmul.f32 %v4009_v15, %v6615_v34  ;;  %v4013_v1 = vmul.f32 %v4009_v15, %v6617_v28  ;;  %v4014_v14 = vmul.f32 %v4009_v15, %v6619_v38  ;;  %v3773_v38 = vpop.f32.mrf.mxu3 }
 0x449   :  { %v4015_v4 = vmul.f32 %v4009_v15, %v6621_v27  ;;  %v4016_v12 = vmul.f32 %v4009_v15, %v6623_v54  ;;  %v4017_v8 = vmul.f32 %v4009_v15, %v6625_v62  ;;  %v4018_v9 = vmul.f32 %v4009_v15, %v6627_v61  ;;  %v4883_v61 = vld [vmem:[#allocation2] sm:$0xff] }
 0x44a   :  { %v4028_v26 = vadd.f32 %v6657_v44, %v4011_v13  ;;  %v4029_v40 = vadd.f32 %v6657_v44, %v4012_v56  ;;  %v4030_v17 = vadd.f32 %v6657_v44, %v4013_v1  ;;  %v4031_v34 = vadd.f32 %v6657_v44, %v4014_v14 }
 0x44b   :  { %v3516_v28 = vadd.f32 %v3515_v33, %v6587_v37  ;;  %v4032_v27 = vadd.f32 %v6657_v44, %v4015_v4  ;;  %v4033_v54 = vadd.f32 %v6657_v44, %v4016_v12  ;;  %v4034_v62 = vadd.f32 %v6657_v44, %v4017_v8  ;;  %v3873_v15 = vpop.f32.mrf.mxu1 }
 0x44c   :  { %v4044_v46 = vadd.f32 %v4883_v61, %v4028_v26  ;;  %v4045_v36 = vadd.f32 %v4884_v3, %v4029_v40  ;;  %v4046_v47 = vadd.f32 %v4885_v30, %v4030_v17  ;;  %v4035_v60 = vadd.f32 %v6657_v44, %v4018_v9  ;;  %v3827_v14 = vpop.f32.mrf.mxu0 }
 0x44d   :  { %v4047_v37 = vadd.f32 %v4886_v48, %v4031_v34  ;;  %v4048_v33 = vadd.f32 %v4887_v53, %v4032_v27  ;;  %v3891_v49 = vadd.f32 %v3867_v6, %v3516_v28  ;;  %v4049_v29 = vadd.f32 %v4888_v23, %v4033_v54 }
 0x44e   :  { %4060 = vst [vmem:[#allocation10] sm:$0xff] %v4044_v46  ;;  %v4050_v7 = vadd.f32 %v4889_v2, %v4034_v62  ;;  %v4051_v20 = vadd.f32 %v4890_v25, %v4035_v60  ;;  %v3823_v50 = vadd.f32 %v3822_v59, %v3773_v38  ;;  %v3523_v6 = vadd.f32 %v3522_v10, %v6598_v11  ;;  %v3525_v4 = vpop.f32.mrf.mxu2 }
 0x44f   :  { %4061 = vst [vmem:[#allocation10 + $0x8] sm:$0xff] %v4045_v36  ;;  %v3911_v39 = vadd.f32 %v3910_v5, %v3891_v49  ;;  %v3526_v26 = vadd.f32 %v3525_v4, %v6600_v16 }
 0x450   :  { %4062 = vst [vmem:[#allocation10 + $0x10] sm:$0xff] %v4046_v47  ;;  %v3775_v19 = vpop.f32.mrf.mxu3  ;;  %v3872_v21 = vadd.f32 %v3871_v24, %v3823_v50 }
 0x451   :  { %4063 = vst [vmem:[#allocation10 + $0x18] sm:$0xff] %v4047_v37  ;;  %v3912_v63 = vadd.f32 %v3911_v39, %v3892_v57  ;;  %v3825_v5 = vadd.f32 %v3824_v18, %v3775_v19 }
 0x452   :  { %4064 = vst [vmem:[#allocation10 + $0x20] sm:$0xff] %v4048_v33  ;;  %v3893_v41 = vadd.f32 %v3872_v21, %v3521_v55 }
 0x453   :  { %4065 = vst [vmem:[#allocation10 + $0x28] sm:$0xff] %v4049_v29  ;;  %v3874_v13 = vadd.f32 %v3873_v15, %v3825_v5  ;;  %v3876_v9 = vpop.f32.mrf.mxu1 }
 0x454   :  { %4066 = vst [vmem:[#allocation10 + $0x30] sm:$0xff] %v4050_v7  ;;  %v3913_v22 = vadd.f32 %v3912_v63, %v3893_v41  ;;  %v3829_v28 = vpop.f32.mrf.mxu0 }
 0x455   :  { %4067 = vst [vmem:[#allocation10 + $0x38] sm:$0xff] %v4051_v20  ;;  %v3894_v1 = vadd.f32 %v3874_v13, %v3523_v6 }
 0x456   :  { %v3527_v43 = vpop.f32.mrf.mxu2 }
 0x457   :  { %v3914_v12 = vadd.f32 %v3913_v22, %v3894_v1  ;;  %v3528_v11 = vadd.f32 %v3527_v43, %v6603_v31 }
 0x458   :  { %v3778_v56 = vpop.f32.mrf.mxu3 }
 0x459   :  { %v3828_v8 = vadd.f32 %v3827_v14, %v3778_v56 }
 0x45b   :  { %v3877_v45 = vadd.f32 %v3876_v9, %v3828_v8  ;;  %v3878_v27 = vpop.f32.mrf.mxu1 }
 0x45d   :  { %v3895_v40 = vadd.f32 %v3877_v45, %v3526_v26 }
 0x45f   :  { %v3915_v34 = vadd.f32 %v3914_v12, %v3895_v40 }
 0x460   :  { %v3780_v17 = vpop.f32.mrf.mxu3 }
 0x461   :  { %v3830_v38 = vadd.f32 %v3829_v28, %v3780_v17 }
 0x463   :  { %v3879_v54 = vadd.f32 %v3878_v27, %v3830_v38 }
 0x465   :  { %v3896_v59 = vadd.f32 %v3879_v54, %v3528_v11 }
 0x467   :  { %v3916_v62 = vadd.f32 %v3915_v34, %v3896_v59 }
 0x469   :  { %v3917_v61 = vrot.slane %v3916_v62, 4 }
 0x46b   :  { %v3918_v46 = vadd.f32 %v3917_v61, %v3916_v62  ;;  %v4891_v62 = vld [vmem:[#allocation2 + $0x40] sm:$0xff] }
 0x46d   :  { %v3919_v3 = vrot.slane %v3918_v46, 2 }
 0x46f   :  { %v3920_v36 = vadd.f32 %v3919_v3, %v3918_v46  ;;  %v4892_v46 = vld [vmem:[#allocation2 + $0x48] sm:$0xff] }
 0x471   :  { %v3921_v30 = vrot.slane %v3920_v36, 1 }
 0x473   :  { %v3922_v47 = vadd.f32 %v3921_v30, %v3920_v36  ;;  %v4893_v36 = vld [vmem:[#allocation2 + $0x50] sm:$0xff] }
 0x475   :  { %v3924_v16 = vmul.f32 0.015625, %v3922_v47 }
 0x477   :  { %v3933_v42 = vsub.f32 %v6647_v58, %v3924_v16  ;;  %v3934_v60 = vsub.f32 %v6649_v52, %v3924_v16  ;;  %v3935_v48 = vsub.f32 %v3891_v49, %v3924_v16  ;;  %v3936_v37 = vsub.f32 %v3892_v57, %v3924_v16 }
 0x478   :  { %v3937_v51 = vsub.f32 %v3893_v41, %v3924_v16  ;;  %v3938_v35 = vsub.f32 %v3894_v1, %v3924_v16  ;;  %v3939_v53 = vsub.f32 %v3895_v40, %v3924_v16  ;;  %v3940_v31 = vsub.f32 %v3896_v59, %v3924_v16  ;;  %v4894_v16 = vld [vmem:[#allocation2 + $0x58] sm:$0xff] }
 0x479   :  { %v3949_v33 = vmul.f32 %v3933_v42, %v3933_v42  ;;  %v3950_v32 = vmul.f32 %v3934_v60, %v3934_v60  ;;  %v3951_v23 = vmul.f32 %v3935_v48, %v3935_v48  ;;  %v3952_v2 = vmul.f32 %v3936_v37, %v3936_v37 }
 0x47a   :  { %v3953_v39 = vmul.f32 %v3937_v51, %v3937_v51  ;;  %v3954_v20 = vmul.f32 %v3938_v35, %v3938_v35  ;;  %v3955_v50 = vmul.f32 %v3939_v53, %v3939_v53  ;;  %v3956_v19 = vmul.f32 %v3940_v31, %v3940_v31 }
 0x47b   :  { %v3970_v29 = vadd.f32 %v3950_v32, %v3949_v33 }
 0x47d   :  { %v3971_v7 = vadd.f32 %v3970_v29, %v3951_v23 }
 0x47f   :  { %v3972_v25 = vadd.f32 %v3971_v7, %v3952_v2 }
 0x481   :  { %v3973_v63 = vadd.f32 %v3972_v25, %v3953_v39 }
 0x483   :  { %v3974_v58 = vadd.f32 %v3973_v63, %v3954_v20 }
 0x485   :  { %v3975_v52 = vadd.f32 %v3974_v58, %v3955_v50 }
 0x487   :  { %v3976_v49 = vadd.f32 %v3975_v52, %v3956_v19 }
 0x489   :  { %v3977_v57 = vrot.slane %v3976_v49, 4 }
 0x48b   :  { %v3978_v24 = vadd.f32 %v3977_v57, %v3976_v49 }
 0x48d   :  { %v3979_v55 = vrot.slane %v3978_v24, 2 }
 0x48f   :  { %v3980_v21 = vadd.f32 %v3979_v55, %v3978_v24 }
 0x491   :  { %v3981_v18 = vrot.slane %v3980_v21, 1 }
 0x493   :  { %v3982_v10 = vadd.f32 %v3981_v18, %v3980_v21 }
 0x495   :  { %v3984_v41 = vmul.f32 0.015625, %v3982_v10 }
 0x497   :  { %v3986_v22 = vadd.f32 1e-05, %v3984_v41 }
 0x499   :  { %4880 = vrsqrt.f32 %v3986_v22  ;;  %vm4003_vm6 = vweird.f32 %v3986_v22 }
 0x49f   :  { %v4881_v5 = vpop.eup %4880 }
 0x4a0   :  { %v3998_v15 = vmul.f32 %v4881_v5, %v3986_v22  ;;  %vm4004_vm5 = vweird.f32 %v4881_v5 }
 0x4a1   :  { %vm4005_vm7 = vmor %vm4003_vm6, %vm4004_vm5 }
 0x4a2   :  { %v3999_v6 = vmul.f32 %v4881_v5, %v3998_v15 }
 0x4a4   :  { %v4000_v13 = vmul.f32 0.5, %v3999_v6 }
 0x4a6   :  { %v4001_v56 = vsub.f32 1.5, %v4000_v13 }
 0x4a8   :  { %v4002_v1 = vmul.f32 %v4881_v5, %v4001_v56 }
 0x4aa   :  { %v4006_v14 = vsel %vm4005_vm7, %v4881_v5, %v4002_v1 }
 0x4ab   :  { %v4008_v4 = vmul.f32 %v6653_v0, %v4006_v14 }
 0x4ad   :  { %v4010_v12 = vperm.slane %v4008_v4, 2 }
 0x4af   :  { %v4019_v8 = vmul.f32 %v4010_v12, %v3933_v42  ;;  %v4020_v9 = vmul.f32 %v4010_v12, %v3934_v60  ;;  %v4021_v26 = vmul.f32 %v4010_v12, %v3935_v48  ;;  %v4022_v45 = vmul.f32 %v4010_v12, %v3936_v37  ;;  %v4895_v60 = vld [vmem:[#allocation2 + $0x60] sm:$0xff]  ;;  %v4896_v37 = vld [vmem:[#allocation2 + $0x68] sm:$0xff] }
 0x4b0   :  { %v4023_v40 = vmul.f32 %v4010_v12, %v3937_v51  ;;  %v4024_v17 = vmul.f32 %v4010_v12, %v3938_v35  ;;  %v4025_v34 = vmul.f32 %v4010_v12, %v3939_v53  ;;  %v4026_v28 = vmul.f32 %v4010_v12, %v3940_v31  ;;  %v4897_v35 = vld [vmem:[#allocation2 + $0x70] sm:$0xff]  ;;  %v4898_v31 = vld [vmem:[#allocation2 + $0x78] sm:$0xff] }
 0x4b1   :  { %v4036_v43 = vadd.f32 %v6657_v44, %v4019_v8  ;;  %v4037_v38 = vadd.f32 %v6657_v44, %v4020_v9  ;;  %v4038_v27 = vadd.f32 %v6657_v44, %v4021_v26  ;;  %v4039_v11 = vadd.f32 %v6657_v44, %v4022_v45 }
 0x4b2   :  { %v4040_v54 = vadd.f32 %v6657_v44, %v4023_v40  ;;  %v4041_v0 = vadd.f32 %v6657_v44, %v4024_v17  ;;  %v4042_v59 = vadd.f32 %v6657_v44, %v4025_v34  ;;  %v4043_v47 = vadd.f32 %v6657_v44, %v4026_v28 }
 0x4b3   :  { %v4052_v61 = vadd.f32 %v4891_v62, %v4036_v43  ;;  %v4053_v3 = vadd.f32 %v4892_v46, %v4037_v38  ;;  %v4054_v30 = vadd.f32 %v4893_v36, %v4038_v27  ;;  %v4055_v42 = vadd.f32 %v4894_v16, %v4039_v11 }
 0x4b4   :  { %v4056_v48 = vadd.f32 %v4895_v60, %v4040_v54  ;;  %v4057_v51 = vadd.f32 %v4896_v37, %v4041_v0  ;;  %v4058_v53 = vadd.f32 %v4897_v35, %v4042_v59  ;;  %v4059_v33 = vadd.f32 %v4898_v31, %v4043_v47 }
 0x4b5   :  { %4068 = vst [vmem:[#allocation10 + $0x40] sm:$0xff] %v4052_v61 }
 0x4b6   :  { %4069 = vst [vmem:[#allocation10 + $0x48] sm:$0xff] %v4053_v3 }
 0x4b7   :  { %4070 = vst [vmem:[#allocation10 + $0x50] sm:$0xff] %v4054_v30 }
 0x4b8   :  { %4071 = vst [vmem:[#allocation10 + $0x58] sm:$0xff] %v4055_v42 }
 0x4b9   :  { %4072 = vst [vmem:[#allocation10 + $0x60] sm:$0xff] %v4056_v48 }
 0x4ba   :  { %4073 = vst [vmem:[#allocation10 + $0x68] sm:$0xff] %v4057_v51 }
 0x4bb   :  { %4074 = vst [vmem:[#allocation10 + $0x70] sm:$0xff] %v4058_v53 }
 0x4bc   :  { %4075 = vst [vmem:[#allocation10 + $0x78] sm:$0xff] %v4059_v33 }
 0x4bd   :  { %4088 = dma.vmem_to_hbm [thread:$0]  %s4081_s3, 2048, %s4083_s13, [#allocation4], %s5031_s27, %s5031_s27, %s5032_s28  }
 0x4be   :  { %5025 = dma.done.wait [#allocation4], 2048  }
 0x4bf   :  { %5026 = vsyncadd [#allocation4], 4294965248 }
 0x4c0   :  { %4093 = vsyncpa [#allocation3], 1 }
 0x4c1   :  { %4094 = vsyncpa [#allocation6], 1 }
 0x4c2   :  { %4095 = vsyncpa [#allocation9], 1 }
 0x4c3   :  { %4096 = vsyncpa [#allocation4], 1 }

</bundles_post_ra>
